<compile_context>
chip_gen: v6e
topology: v6e:2x2x1
jax: 0.10.0
libtpu: 0.0.40
codegen_flags: <defaults>
</compile_context>

<pallas_src>
import functools

import jax
import jax.numpy as jnp
from jax.experimental import pallas as pl
from jax.experimental.pallas import tpu as pltpu


def _block_cnn_kernel(x_ref, w1_ref, b1_ref, w2_ref, b2_ref, w3_ref, b3_ref,
                      o_ref, ap1, ap2, ap3, *, H, W, K, Cin, Cout):
    """Fused conv1->relu -> conv2->relu -> conv3->relu -> (x1 + x3).

    One batch element per grid step.

    x_ref : (1, H, W*Cin)              input in lane-dense HWC layout
    wX_ref: (K*K, W*Cin_l, W*Cout)     block-diagonal per-tap weights
    bX_ref: (1, W*Cout)                bias tiled across W
    o_ref : (1, H, W*Cout)             output (lane-dense, 128 lanes)
    apX   : (Hp, Wp*C) VMEM scratch    zero-padded activation per layer
    """
    p = K // 2

    def conv_relu(ap_ref, wbd_ref, b_ref, C):
        # Shift-and-matmul: every (kh, kw) tap is a contiguous 2-D window of
        # the padded slab times a block-diagonal (W*C, W*Cout) weight on the
        # MXU.  No reshapes, no relayouts; accumulator is dense (H, W*Cout).
        acc = jnp.zeros((H, W * Cout), jnp.float32)
        for kh in range(K):                      # K is small & static -> unrolled
            for kw in range(K):
                s = ap_ref[kh:kh + H, kw * C:kw * C + W * C]      # (H, W*C)
                acc = acc + jnp.dot(s, wbd_ref[kh * K + kw],
                                    preferred_element_type=jnp.float32)
        return jnp.maximum(acc + b_ref[...], 0.0)                 # bias + ReLU

    # Zero the padded scratches: their borders implement the "same" padding.
    ap1[...] = jnp.zeros_like(ap1)
    ap2[...] = jnp.zeros_like(ap2)
    ap3[...] = jnp.zeros_like(ap3)

    # Layer 1
    ap1[p:p + H, p * Cin:p * Cin + W * Cin] = x_ref[0]
    x1 = conv_relu(ap1, w1_ref, b1_ref, Cin)                      # (H, W*Cout)

    # Layer 2 (x1 handed over through VMEM, never leaves the chip)
    ap2[p:p + H, p * Cout:p * Cout + W * Cout] = x1
    x2 = conv_relu(ap2, w2_ref, b2_ref, Cout)

    # Layer 3
    ap3[p:p + H, p * Cout:p * Cout + W * Cout] = x2
    x3 = conv_relu(ap3, w3_ref, b3_ref, Cout)

    # Fused residual; full-width (128-lane) store.
    o_ref[0] = (x1 + x3).astype(o_ref.dtype)


def init_params(key, in_channels, out_channels, kernel_size):
    """Deterministic PyTorch-style init: U(-1/sqrt(fan_in), 1/sqrt(fan_in)).

    Weights are produced in HWIO layout (K, K, Cin, Cout)."""
    keys = jax.random.split(key, 6)
    params = {}
    cins = [in_channels, out_channels, out_channels]
    for i in range(3):
        cin = cins[i]
        fan_in = cin * kernel_size * kernel_size
        bound = 1.0 / jnp.sqrt(jnp.float32(fan_in))
        w = jax.random.uniform(keys[2 * i],
                               (kernel_size, kernel_size, cin, out_channels),
                               jnp.float32, -bound, bound)
        b = jax.random.uniform(keys[2 * i + 1], (out_channels,),
                               jnp.float32, -bound, bound)
        params[f"w{i + 1}"] = w
        params[f"b{i + 1}"] = b
    return params


def prepare_params(params, width):
    """One-time parameter prep (outside the hot path).

    Expands each (K, K, C, Cout) HWIO weight into per-tap block-diagonal
    matrices of shape (K*K, W*C, W*Cout) so the kernel's taps are full-lane
    MXU matmuls, and tiles biases to (1, W*Cout)."""
    W = width
    kp = {}
    for i in (1, 2, 3):
        w = params[f"w{i}"]                      # (K, K, C, Cout)
        b = params[f"b{i}"]                      # (Cout,)
        K, _, cin, cout = w.shape
        eye = jnp.eye(W, dtype=w.dtype)          # (W, W)
        wt = w.reshape(K * K, cin, cout)         # tap-major (kh*K + kw)
        wbd = jnp.einsum("ab,tcd->tacbd", eye, wt)
        kp[f"w{i}"] = wbd.reshape(K * K, W * cin, W * cout)
        kp[f"b{i}"] = jnp.tile(b, (W,)).reshape(1, W * cout)
    return kp


@jax.jit
def block_cnn_forward(x_nchw, kparams):
    """Matches BlockCNN.forward: x1 = relu(conv1(x)); x3 = relu(conv3(relu(conv2(x1)))); return x1 + x3."""
    N, Cin, H, W = x_nchw.shape
    K = int(round(kparams["w1"].shape[0] ** 0.5))
    Cout = kparams["b1"].shape[1] // W
    p = K // 2
    Hp, Wp = H + 2 * p, W + 2 * p

    # NCHW -> lane-dense (N, H, W*Cin) HWC slab (tiny one-off XLA transpose).
    x_hwc = jnp.transpose(x_nchw, (0, 2, 3, 1)).reshape(N, H, W * Cin)

    kernel = functools.partial(_block_cnn_kernel,
                               H=H, W=W, K=K, Cin=Cin, Cout=Cout)
    out_flat = pl.pallas_call(
        kernel,
        out_shape=jax.ShapeDtypeStruct((N, H, W * Cout), jnp.float32),
        grid=(N,),
        in_specs=[
            pl.BlockSpec((1, H, W * Cin), lambda n: (n, 0, 0)),
            pl.BlockSpec((K * K, W * Cin, W * Cout), lambda n: (0, 0, 0)),
            pl.BlockSpec((1, W * Cout), lambda n: (0, 0)),
            pl.BlockSpec((K * K, W * Cout, W * Cout), lambda n: (0, 0, 0)),
            pl.BlockSpec((1, W * Cout), lambda n: (0, 0)),
            pl.BlockSpec((K * K, W * Cout, W * Cout), lambda n: (0, 0, 0)),
            pl.BlockSpec((1, W * Cout), lambda n: (0, 0)),
        ],
        out_specs=pl.BlockSpec((1, H, W * Cout), lambda n: (n, 0, 0)),
        scratch_shapes=[
            pltpu.VMEM((Hp, Wp * Cin), jnp.float32),     # padded x
            pltpu.VMEM((Hp, Wp * Cout), jnp.float32),    # padded x1
            pltpu.VMEM((Hp, Wp * Cout), jnp.float32),    # padded x2
        ],
        compiler_params=pltpu.CompilerParams(
            dimension_semantics=("parallel",)),
    )(x_hwc, kparams["w1"], kparams["b1"], kparams["w2"], kparams["b2"],
      kparams["w3"], kparams["b3"])

    # (N, H, W*Cout) -> NCHW
    return jnp.transpose(out_flat.reshape(N, H, W, Cout), (0, 3, 1, 2))


def _reference_forward(x_nchw, params):
    """Pure-JAX reference (lax.conv) for the correctness check."""
    def conv(x, w, b):
        y = jax.lax.conv_general_dilated(
            x, w, window_strides=(1, 1), padding="SAME",
            dimension_numbers=("NCHW", "HWIO", "NCHW"),
            precision=jax.lax.Precision.HIGHEST)
        return jax.nn.relu(y + b[None, :, None, None])

    x1 = conv(x_nchw, params["w1"], params["b1"])
    x2 = conv(x1, params["w2"], params["b2"])
    x3 = conv(x2, params["w3"], params["b3"])
    return x1 + x3


if __name__ == "__main__":
    N, C_IN, H, W = 2, 4, 16, 16
    C_OUT, K = 8, 3

    key = jax.random.PRNGKey(0)
    k_x, k_p = jax.random.split(key)
    x = jax.random.normal(k_x, (N, C_IN, H, W), jnp.float32)
    params = init_params(k_p, C_IN, C_OUT, K)
    kparams = prepare_params(params, width=W)     # one-time kernel-layout prep

    out = jax.block_until_ready(block_cnn_forward(x, kparams))
    assert out.shape == (N, C_OUT, H, W), out.shape

    ref = _reference_forward(x, params)
    max_err = float(jnp.max(jnp.abs(out - ref)))
    assert max_err < 5e-3, f"mismatch vs reference: max_err={max_err}"

    print("KERNEL_OK")
</pallas_src>

<mosaic_0001>
module attributes {stable_mosaic.version = 11 : i64} {
  func.func @_block_cnn_kernel(%arg0: i32, %arg1: memref<1x16x64xf32, #tpu.memory_space<vmem>>, %arg2: memref<9x64x128xf32, #tpu.memory_space<vmem>>, %arg3: memref<1x128xf32, #tpu.memory_space<vmem>>, %arg4: memref<9x128x128xf32, #tpu.memory_space<vmem>>, %arg5: memref<1x128xf32, #tpu.memory_space<vmem>>, %arg6: memref<9x128x128xf32, #tpu.memory_space<vmem>>, %arg7: memref<1x128xf32, #tpu.memory_space<vmem>>, %arg8: memref<1x16x128xf32, #tpu.memory_space<vmem>>, %arg9: memref<18x72xf32, #tpu.memory_space<vmem>>, %arg10: memref<18x144xf32, #tpu.memory_space<vmem>>, %arg11: memref<18x144xf32, #tpu.memory_space<vmem>>) attributes {dimension_semantics = [#tpu.dimension_semantics<parallel>], iteration_bounds = array<i64: 2>, scalar_prefetch = 0 : i64, scratch_operands = 3 : i64, tpu.core_type = #tpu.core_type<tc>, window_params = [{transform_indices = @transform_0, window_bounds = array<i64: 1, 16, 64>}, {pipeline_mode = #tpu.pipeline_mode<synchronous>, transform_indices = @transform_1, window_bounds = array<i64: 9, 64, 128>}, {pipeline_mode = #tpu.pipeline_mode<synchronous>, transform_indices = @transform_2, window_bounds = array<i64: 1, 128>}, {pipeline_mode = #tpu.pipeline_mode<synchronous>, transform_indices = @transform_3, window_bounds = array<i64: 9, 128, 128>}, {pipeline_mode = #tpu.pipeline_mode<synchronous>, transform_indices = @transform_4, window_bounds = array<i64: 1, 128>}, {pipeline_mode = #tpu.pipeline_mode<synchronous>, transform_indices = @transform_5, window_bounds = array<i64: 9, 128, 128>}, {pipeline_mode = #tpu.pipeline_mode<synchronous>, transform_indices = @transform_6, window_bounds = array<i64: 1, 128>}, {transform_indices = @transform_7, window_bounds = array<i64: 1, 16, 128>}]} {
    %cst = arith.constant 0.000000e+00 : f32
    %0 = vector.broadcast %cst : f32 to vector<18x72xf32>
    %c0 = arith.constant 0 : index
    %c0_0 = arith.constant 0 : index
    %1 = vector.load %arg9[%c0, %c0_0] : memref<18x72xf32, #tpu.memory_space<vmem>>, vector<18x72xf32>
    tpu.vector_store %arg9[%c0, %c0_0], %0 {strides = array<i32>} : memref<18x72xf32, #tpu.memory_space<vmem>>, vector<18x72xf32>,
    %cst_1 = arith.constant 0.000000e+00 : f32
    %2 = vector.broadcast %cst_1 : f32 to vector<18x144xf32>
    %c0_2 = arith.constant 0 : index
    %c0_3 = arith.constant 0 : index
    %3 = vector.load %arg10[%c0_2, %c0_3] : memref<18x144xf32, #tpu.memory_space<vmem>>, vector<18x144xf32>
    tpu.vector_store %arg10[%c0_2, %c0_3], %2 {strides = array<i32>} : memref<18x144xf32, #tpu.memory_space<vmem>>, vector<18x144xf32>,
    %cst_4 = arith.constant 0.000000e+00 : f32
    %4 = vector.broadcast %cst_4 : f32 to vector<18x144xf32>
    %c0_5 = arith.constant 0 : index
    %c0_6 = arith.constant 0 : index
    %5 = vector.load %arg11[%c0_5, %c0_6] : memref<18x144xf32, #tpu.memory_space<vmem>>, vector<18x144xf32>
    tpu.vector_store %arg11[%c0_5, %c0_6], %4 {strides = array<i32>} : memref<18x144xf32, #tpu.memory_space<vmem>>, vector<18x144xf32>,
    %c0_7 = arith.constant 0 : index
    %c0_8 = arith.constant 0 : index
    %c0_9 = arith.constant 0 : index
    %6 = vector.load %arg1[%c0_7, %c0_8, %c0_9] : memref<1x16x64xf32, #tpu.memory_space<vmem>>, vector<1x16x64xf32>
    %7 = vector.shape_cast %6 : vector<1x16x64xf32> to vector<16x64xf32>
    %c1 = arith.constant 1 : index
    %c4 = arith.constant 4 : index
    %8 = vector.load %arg9[%c1, %c4] : memref<18x72xf32, #tpu.memory_space<vmem>>, vector<16x64xf32>
    tpu.vector_store %arg9[%c1, %c4], %7 {strides = array<i32>} : memref<18x72xf32, #tpu.memory_space<vmem>>, vector<16x64xf32>,
    %cst_10 = arith.constant 0.000000e+00 : f32
    %9 = vector.broadcast %cst_10 : f32 to vector<16x128xf32>
    %c0_11 = arith.constant 0 : index
    %c0_12 = arith.constant 0 : index
    %10 = vector.load %arg9[%c0_11, %c0_12] : memref<18x72xf32, #tpu.memory_space<vmem>>, vector<16x64xf32>
    %c0_13 = arith.constant 0 : index
    %c0_14 = arith.constant 0 : index
    %c0_15 = arith.constant 0 : index
    %11 = vector.load %arg2[%c0_13, %c0_14, %c0_15] : memref<9x64x128xf32, #tpu.memory_space<vmem>>, vector<1x64x128xf32>
    %12 = vector.shape_cast %11 : vector<1x64x128xf32> to vector<64x128xf32>
    %cst_16 = arith.constant dense<0.000000e+00> : vector<16x128xf32>
    %13 = tpu.matmul %10, %12, %cst_16 {dimension_numbers = #tpu.dot_dimension_numbers<[1], [0], [0], [1], [0, 0, 1, 1], [], []>} : vector<16x64xf32>, vector<64x128xf32>, vector<16x128xf32> -> vector<16x128xf32>
    %14 = arith.addf %9, %13 : vector<16x128xf32>
    %c0_17 = arith.constant 0 : index
    %c4_18 = arith.constant 4 : index
    %15 = vector.load %arg9[%c0_17, %c4_18] : memref<18x72xf32, #tpu.memory_space<vmem>>, vector<16x64xf32>
    %c1_19 = arith.constant 1 : index
    %c0_20 = arith.constant 0 : index
    %c0_21 = arith.constant 0 : index
    %16 = vector.load %arg2[%c1_19, %c0_20, %c0_21] : memref<9x64x128xf32, #tpu.memory_space<vmem>>, vector<1x64x128xf32>
    %17 = vector.shape_cast %16 : vector<1x64x128xf32> to vector<64x128xf32>
    %cst_22 = arith.constant dense<0.000000e+00> : vector<16x128xf32>
    %18 = tpu.matmul %15, %17, %cst_22 {dimension_numbers = #tpu.dot_dimension_numbers<[1], [0], [0], [1], [0, 0, 1, 1], [], []>} : vector<16x64xf32>, vector<64x128xf32>, vector<16x128xf32> -> vector<16x128xf32>
    %19 = arith.addf %14, %18 : vector<16x128xf32>
    %c0_23 = arith.constant 0 : index
    %c8 = arith.constant 8 : index
    %20 = vector.load %arg9[%c0_23, %c8] : memref<18x72xf32, #tpu.memory_space<vmem>>, vector<16x64xf32>
    %c2 = arith.constant 2 : index
    %c0_24 = arith.constant 0 : index
    %c0_25 = arith.constant 0 : index
    %21 = vector.load %arg2[%c2, %c0_24, %c0_25] : memref<9x64x128xf32, #tpu.memory_space<vmem>>, vector<1x64x128xf32>
    %22 = vector.shape_cast %21 : vector<1x64x128xf32> to vector<64x128xf32>
    %cst_26 = arith.constant dense<0.000000e+00> : vector<16x128xf32>
    %23 = tpu.matmul %20, %22, %cst_26 {dimension_numbers = #tpu.dot_dimension_numbers<[1], [0], [0], [1], [0, 0, 1, 1], [], []>} : vector<16x64xf32>, vector<64x128xf32>, vector<16x128xf32> -> vector<16x128xf32>
    %24 = arith.addf %19, %23 : vector<16x128xf32>
    %c1_27 = arith.constant 1 : index
    %c0_28 = arith.constant 0 : index
    %25 = vector.load %arg9[%c1_27, %c0_28] : memref<18x72xf32, #tpu.memory_space<vmem>>, vector<16x64xf32>
    %c3 = arith.constant 3 : index
    %c0_29 = arith.constant 0 : index
    %c0_30 = arith.constant 0 : index
    %26 = vector.load %arg2[%c3, %c0_29, %c0_30] : memref<9x64x128xf32, #tpu.memory_space<vmem>>, vector<1x64x128xf32>
    %27 = vector.shape_cast %26 : vector<1x64x128xf32> to vector<64x128xf32>
    %cst_31 = arith.constant dense<0.000000e+00> : vector<16x128xf32>
    %28 = tpu.matmul %25, %27, %cst_31 {dimension_numbers = #tpu.dot_dimension_numbers<[1], [0], [0], [1], [0, 0, 1, 1], [], []>} : vector<16x64xf32>, vector<64x128xf32>, vector<16x128xf32> -> vector<16x128xf32>
    %29 = arith.addf %24, %28 : vector<16x128xf32>
    %c1_32 = arith.constant 1 : index
    %c4_33 = arith.constant 4 : index
    %30 = vector.load %arg9[%c1_32, %c4_33] : memref<18x72xf32, #tpu.memory_space<vmem>>, vector<16x64xf32>
    %c4_34 = arith.constant 4 : index
    %c0_35 = arith.constant 0 : index
    %c0_36 = arith.constant 0 : index
    %31 = vector.load %arg2[%c4_34, %c0_35, %c0_36] : memref<9x64x128xf32, #tpu.memory_space<vmem>>, vector<1x64x128xf32>
    %32 = vector.shape_cast %31 : vector<1x64x128xf32> to vector<64x128xf32>
    %cst_37 = arith.constant dense<0.000000e+00> : vector<16x128xf32>
    %33 = tpu.matmul %30, %32, %cst_37 {dimension_numbers = #tpu.dot_dimension_numbers<[1], [0], [0], [1], [0, 0, 1, 1], [], []>} : vector<16x64xf32>, vector<64x128xf32>, vector<16x128xf32> -> vector<16x128xf32>
    %34 = arith.addf %29, %33 : vector<16x128xf32>
    %c1_38 = arith.constant 1 : index
    %c8_39 = arith.constant 8 : index
    %35 = vector.load %arg9[%c1_38, %c8_39] : memref<18x72xf32, #tpu.memory_space<vmem>>, vector<16x64xf32>
    %c5 = arith.constant 5 : index
    %c0_40 = arith.constant 0 : index
    %c0_41 = arith.constant 0 : index
    %36 = vector.load %arg2[%c5, %c0_40, %c0_41] : memref<9x64x128xf32, #tpu.memory_space<vmem>>, vector<1x64x128xf32>
    %37 = vector.shape_cast %36 : vector<1x64x128xf32> to vector<64x128xf32>
    %cst_42 = arith.constant dense<0.000000e+00> : vector<16x128xf32>
    %38 = tpu.matmul %35, %37, %cst_42 {dimension_numbers = #tpu.dot_dimension_numbers<[1], [0], [0], [1], [0, 0, 1, 1], [], []>} : vector<16x64xf32>, vector<64x128xf32>, vector<16x128xf32> -> vector<16x128xf32>
    %39 = arith.addf %34, %38 : vector<16x128xf32>
    %c2_43 = arith.constant 2 : index
    %c0_44 = arith.constant 0 : index
    %40 = vector.load %arg9[%c2_43, %c0_44] : memref<18x72xf32, #tpu.memory_space<vmem>>, vector<16x64xf32>
    %c6 = arith.constant 6 : index
    %c0_45 = arith.constant 0 : index
    %c0_46 = arith.constant 0 : index
    %41 = vector.load %arg2[%c6, %c0_45, %c0_46] : memref<9x64x128xf32, #tpu.memory_space<vmem>>, vector<1x64x128xf32>
    %42 = vector.shape_cast %41 : vector<1x64x128xf32> to vector<64x128xf32>
    %cst_47 = arith.constant dense<0.000000e+00> : vector<16x128xf32>
    %43 = tpu.matmul %40, %42, %cst_47 {dimension_numbers = #tpu.dot_dimension_numbers<[1], [0], [0], [1], [0, 0, 1, 1], [], []>} : vector<16x64xf32>, vector<64x128xf32>, vector<16x128xf32> -> vector<16x128xf32>
    %44 = arith.addf %39, %43 : vector<16x128xf32>
    %c2_48 = arith.constant 2 : index
    %c4_49 = arith.constant 4 : index
    %45 = vector.load %arg9[%c2_48, %c4_49] : memref<18x72xf32, #tpu.memory_space<vmem>>, vector<16x64xf32>
    %c7 = arith.constant 7 : index
    %c0_50 = arith.constant 0 : index
    %c0_51 = arith.constant 0 : index
    %46 = vector.load %arg2[%c7, %c0_50, %c0_51] : memref<9x64x128xf32, #tpu.memory_space<vmem>>, vector<1x64x128xf32>
    %47 = vector.shape_cast %46 : vector<1x64x128xf32> to vector<64x128xf32>
    %cst_52 = arith.constant dense<0.000000e+00> : vector<16x128xf32>
    %48 = tpu.matmul %45, %47, %cst_52 {dimension_numbers = #tpu.dot_dimension_numbers<[1], [0], [0], [1], [0, 0, 1, 1], [], []>} : vector<16x64xf32>, vector<64x128xf32>, vector<16x128xf32> -> vector<16x128xf32>
    %49 = arith.addf %44, %48 : vector<16x128xf32>
    %c2_53 = arith.constant 2 : index
    %c8_54 = arith.constant 8 : index
    %50 = vector.load %arg9[%c2_53, %c8_54] : memref<18x72xf32, #tpu.memory_space<vmem>>, vector<16x64xf32>
    %c8_55 = arith.constant 8 : index
    %c0_56 = arith.constant 0 : index
    %c0_57 = arith.constant 0 : index
    %51 = vector.load %arg2[%c8_55, %c0_56, %c0_57] : memref<9x64x128xf32, #tpu.memory_space<vmem>>, vector<1x64x128xf32>
    %52 = vector.shape_cast %51 : vector<1x64x128xf32> to vector<64x128xf32>
    %cst_58 = arith.constant dense<0.000000e+00> : vector<16x128xf32>
    %53 = tpu.matmul %50, %52, %cst_58 {dimension_numbers = #tpu.dot_dimension_numbers<[1], [0], [0], [1], [0, 0, 1, 1], [], []>} : vector<16x64xf32>, vector<64x128xf32>, vector<16x128xf32> -> vector<16x128xf32>
    %54 = arith.addf %49, %53 : vector<16x128xf32>
    %c0_59 = arith.constant 0 : index
    %c0_60 = arith.constant 0 : index
    %55 = vector.load %arg3[%c0_59, %c0_60] : memref<1x128xf32, #tpu.memory_space<vmem>>, vector<1x128xf32>
    %56 = vector.broadcast %55 : vector<1x128xf32> to vector<16x128xf32>
    %57 = arith.addf %54, %56 : vector<16x128xf32>
    %cst_61 = arith.constant 0.000000e+00 : f32
    %58 = vector.broadcast %cst_61 : f32 to vector<16x128xf32>
    %59 = arith.maximumf %57, %58 : vector<16x128xf32>
    %c1_62 = arith.constant 1 : index
    %c8_63 = arith.constant 8 : index
    %60 = vector.load %arg10[%c1_62, %c8_63] : memref<18x144xf32, #tpu.memory_space<vmem>>, vector<16x128xf32>
    tpu.vector_store %arg10[%c1_62, %c8_63], %59 {strides = array<i32>} : memref<18x144xf32, #tpu.memory_space<vmem>>, vector<16x128xf32>,
    %cst_64 = arith.constant 0.000000e+00 : f32
    %61 = vector.broadcast %cst_64 : f32 to vector<16x128xf32>
    %c0_65 = arith.constant 0 : index
    %c0_66 = arith.constant 0 : index
    %62 = vector.load %arg10[%c0_65, %c0_66] : memref<18x144xf32, #tpu.memory_space<vmem>>, vector<16x128xf32>
    %c0_67 = arith.constant 0 : index
    %c0_68 = arith.constant 0 : index
    %c0_69 = arith.constant 0 : index
    %63 = vector.load %arg4[%c0_67, %c0_68, %c0_69] : memref<9x128x128xf32, #tpu.memory_space<vmem>>, vector<1x128x128xf32>
    %64 = vector.shape_cast %63 : vector<1x128x128xf32> to vector<128x128xf32>
    %cst_70 = arith.constant dense<0.000000e+00> : vector<16x128xf32>
    %65 = tpu.matmul %62, %64, %cst_70 {dimension_numbers = #tpu.dot_dimension_numbers<[1], [0], [0], [1], [0, 0, 1, 1], [], []>} : vector<16x128xf32>, vector<128x128xf32>, vector<16x128xf32> -> vector<16x128xf32>
    %66 = arith.addf %61, %65 : vector<16x128xf32>
    %c0_71 = arith.constant 0 : index
    %c8_72 = arith.constant 8 : index
    %67 = vector.load %arg10[%c0_71, %c8_72] : memref<18x144xf32, #tpu.memory_space<vmem>>, vector<16x128xf32>
    %c1_73 = arith.constant 1 : index
    %c0_74 = arith.constant 0 : index
    %c0_75 = arith.constant 0 : index
    %68 = vector.load %arg4[%c1_73, %c0_74, %c0_75] : memref<9x128x128xf32, #tpu.memory_space<vmem>>, vector<1x128x128xf32>
    %69 = vector.shape_cast %68 : vector<1x128x128xf32> to vector<128x128xf32>
    %cst_76 = arith.constant dense<0.000000e+00> : vector<16x128xf32>
    %70 = tpu.matmul %67, %69, %cst_76 {dimension_numbers = #tpu.dot_dimension_numbers<[1], [0], [0], [1], [0, 0, 1, 1], [], []>} : vector<16x128xf32>, vector<128x128xf32>, vector<16x128xf32> -> vector<16x128xf32>
    %71 = arith.addf %66, %70 : vector<16x128xf32>
    %c0_77 = arith.constant 0 : index
    %c16 = arith.constant 16 : index
    %72 = vector.load %arg10[%c0_77, %c16] : memref<18x144xf32, #tpu.memory_space<vmem>>, vector<16x128xf32>
    %c2_78 = arith.constant 2 : index
    %c0_79 = arith.constant 0 : index
    %c0_80 = arith.constant 0 : index
    %73 = vector.load %arg4[%c2_78, %c0_79, %c0_80] : memref<9x128x128xf32, #tpu.memory_space<vmem>>, vector<1x128x128xf32>
    %74 = vector.shape_cast %73 : vector<1x128x128xf32> to vector<128x128xf32>
    %cst_81 = arith.constant dense<0.000000e+00> : vector<16x128xf32>
    %75 = tpu.matmul %72, %74, %cst_81 {dimension_numbers = #tpu.dot_dimension_numbers<[1], [0], [0], [1], [0, 0, 1, 1], [], []>} : vector<16x128xf32>, vector<128x128xf32>, vector<16x128xf32> -> vector<16x128xf32>
    %76 = arith.addf %71, %75 : vector<16x128xf32>
    %c1_82 = arith.constant 1 : index
    %c0_83 = arith.constant 0 : index
    %77 = vector.load %arg10[%c1_82, %c0_83] : memref<18x144xf32, #tpu.memory_space<vmem>>, vector<16x128xf32>
    %c3_84 = arith.constant 3 : index
    %c0_85 = arith.constant 0 : index
    %c0_86 = arith.constant 0 : index
    %78 = vector.load %arg4[%c3_84, %c0_85, %c0_86] : memref<9x128x128xf32, #tpu.memory_space<vmem>>, vector<1x128x128xf32>
    %79 = vector.shape_cast %78 : vector<1x128x128xf32> to vector<128x128xf32>
    %cst_87 = arith.constant dense<0.000000e+00> : vector<16x128xf32>
    %80 = tpu.matmul %77, %79, %cst_87 {dimension_numbers = #tpu.dot_dimension_numbers<[1], [0], [0], [1], [0, 0, 1, 1], [], []>} : vector<16x128xf32>, vector<128x128xf32>, vector<16x128xf32> -> vector<16x128xf32>
    %81 = arith.addf %76, %80 : vector<16x128xf32>
    %c1_88 = arith.constant 1 : index
    %c8_89 = arith.constant 8 : index
    %82 = vector.load %arg10[%c1_88, %c8_89] : memref<18x144xf32, #tpu.memory_space<vmem>>, vector<16x128xf32>
    %c4_90 = arith.constant 4 : index
    %c0_91 = arith.constant 0 : index
    %c0_92 = arith.constant 0 : index
    %83 = vector.load %arg4[%c4_90, %c0_91, %c0_92] : memref<9x128x128xf32, #tpu.memory_space<vmem>>, vector<1x128x128xf32>
    %84 = vector.shape_cast %83 : vector<1x128x128xf32> to vector<128x128xf32>
    %cst_93 = arith.constant dense<0.000000e+00> : vector<16x128xf32>
    %85 = tpu.matmul %82, %84, %cst_93 {dimension_numbers = #tpu.dot_dimension_numbers<[1], [0], [0], [1], [0, 0, 1, 1], [], []>} : vector<16x128xf32>, vector<128x128xf32>, vector<16x128xf32> -> vector<16x128xf32>
    %86 = arith.addf %81, %85 : vector<16x128xf32>
    %c1_94 = arith.constant 1 : index
    %c16_95 = arith.constant 16 : index
    %87 = vector.load %arg10[%c1_94, %c16_95] : memref<18x144xf32, #tpu.memory_space<vmem>>, vector<16x128xf32>
    %c5_96 = arith.constant 5 : index
    %c0_97 = arith.constant 0 : index
    %c0_98 = arith.constant 0 : index
    %88 = vector.load %arg4[%c5_96, %c0_97, %c0_98] : memref<9x128x128xf32, #tpu.memory_space<vmem>>, vector<1x128x128xf32>
    %89 = vector.shape_cast %88 : vector<1x128x128xf32> to vector<128x128xf32>
    %cst_99 = arith.constant dense<0.000000e+00> : vector<16x128xf32>
    %90 = tpu.matmul %87, %89, %cst_99 {dimension_numbers = #tpu.dot_dimension_numbers<[1], [0], [0], [1], [0, 0, 1, 1], [], []>} : vector<16x128xf32>, vector<128x128xf32>, vector<16x128xf32> -> vector<16x128xf32>
    %91 = arith.addf %86, %90 : vector<16x128xf32>
    %c2_100 = arith.constant 2 : index
    %c0_101 = arith.constant 0 : index
    %92 = vector.load %arg10[%c2_100, %c0_101] : memref<18x144xf32, #tpu.memory_space<vmem>>, vector<16x128xf32>
    %c6_102 = arith.constant 6 : index
    %c0_103 = arith.constant 0 : index
    %c0_104 = arith.constant 0 : index
    %93 = vector.load %arg4[%c6_102, %c0_103, %c0_104] : memref<9x128x128xf32, #tpu.memory_space<vmem>>, vector<1x128x128xf32>
    %94 = vector.shape_cast %93 : vector<1x128x128xf32> to vector<128x128xf32>
    %cst_105 = arith.constant dense<0.000000e+00> : vector<16x128xf32>
    %95 = tpu.matmul %92, %94, %cst_105 {dimension_numbers = #tpu.dot_dimension_numbers<[1], [0], [0], [1], [0, 0, 1, 1], [], []>} : vector<16x128xf32>, vector<128x128xf32>, vector<16x128xf32> -> vector<16x128xf32>
    %96 = arith.addf %91, %95 : vector<16x128xf32>
    %c2_106 = arith.constant 2 : index
    %c8_107 = arith.constant 8 : index
    %97 = vector.load %arg10[%c2_106, %c8_107] : memref<18x144xf32, #tpu.memory_space<vmem>>, vector<16x128xf32>
    %c7_108 = arith.constant 7 : index
    %c0_109 = arith.constant 0 : index
    %c0_110 = arith.constant 0 : index
    %98 = vector.load %arg4[%c7_108, %c0_109, %c0_110] : memref<9x128x128xf32, #tpu.memory_space<vmem>>, vector<1x128x128xf32>
    %99 = vector.shape_cast %98 : vector<1x128x128xf32> to vector<128x128xf32>
    %cst_111 = arith.constant dense<0.000000e+00> : vector<16x128xf32>
    %100 = tpu.matmul %97, %99, %cst_111 {dimension_numbers = #tpu.dot_dimension_numbers<[1], [0], [0], [1], [0, 0, 1, 1], [], []>} : vector<16x128xf32>, vector<128x128xf32>, vector<16x128xf32> -> vector<16x128xf32>
    %101 = arith.addf %96, %100 : vector<16x128xf32>
    %c2_112 = arith.constant 2 : index
    %c16_113 = arith.constant 16 : index
    %102 = vector.load %arg10[%c2_112, %c16_113] : memref<18x144xf32, #tpu.memory_space<vmem>>, vector<16x128xf32>
    %c8_114 = arith.constant 8 : index
    %c0_115 = arith.constant 0 : index
    %c0_116 = arith.constant 0 : index
    %103 = vector.load %arg4[%c8_114, %c0_115, %c0_116] : memref<9x128x128xf32, #tpu.memory_space<vmem>>, vector<1x128x128xf32>
    %104 = vector.shape_cast %103 : vector<1x128x128xf32> to vector<128x128xf32>
    %cst_117 = arith.constant dense<0.000000e+00> : vector<16x128xf32>
    %105 = tpu.matmul %102, %104, %cst_117 {dimension_numbers = #tpu.dot_dimension_numbers<[1], [0], [0], [1], [0, 0, 1, 1], [], []>} : vector<16x128xf32>, vector<128x128xf32>, vector<16x128xf32> -> vector<16x128xf32>
    %106 = arith.addf %101, %105 : vector<16x128xf32>
    %c0_118 = arith.constant 0 : index
    %c0_119 = arith.constant 0 : index
    %107 = vector.load %arg5[%c0_118, %c0_119] : memref<1x128xf32, #tpu.memory_space<vmem>>, vector<1x128xf32>
    %108 = vector.broadcast %107 : vector<1x128xf32> to vector<16x128xf32>
    %109 = arith.addf %106, %108 : vector<16x128xf32>
    %cst_120 = arith.constant 0.000000e+00 : f32
    %110 = vector.broadcast %cst_120 : f32 to vector<16x128xf32>
    %111 = arith.maximumf %109, %110 : vector<16x128xf32>
    %c1_121 = arith.constant 1 : index
    %c8_122 = arith.constant 8 : index
    %112 = vector.load %arg11[%c1_121, %c8_122] : memref<18x144xf32, #tpu.memory_space<vmem>>, vector<16x128xf32>
    tpu.vector_store %arg11[%c1_121, %c8_122], %111 {strides = array<i32>} : memref<18x144xf32, #tpu.memory_space<vmem>>, vector<16x128xf32>,
    %cst_123 = arith.constant 0.000000e+00 : f32
    %113 = vector.broadcast %cst_123 : f32 to vector<16x128xf32>
    %c0_124 = arith.constant 0 : index
    %c0_125 = arith.constant 0 : index
    %114 = vector.load %arg11[%c0_124, %c0_125] : memref<18x144xf32, #tpu.memory_space<vmem>>, vector<16x128xf32>
    %c0_126 = arith.constant 0 : index
    %c0_127 = arith.constant 0 : index
    %c0_128 = arith.constant 0 : index
    %115 = vector.load %arg6[%c0_126, %c0_127, %c0_128] : memref<9x128x128xf32, #tpu.memory_space<vmem>>, vector<1x128x128xf32>
    %116 = vector.shape_cast %115 : vector<1x128x128xf32> to vector<128x128xf32>
    %cst_129 = arith.constant dense<0.000000e+00> : vector<16x128xf32>
    %117 = tpu.matmul %114, %116, %cst_129 {dimension_numbers = #tpu.dot_dimension_numbers<[1], [0], [0], [1], [0, 0, 1, 1], [], []>} : vector<16x128xf32>, vector<128x128xf32>, vector<16x128xf32> -> vector<16x128xf32>
    %118 = arith.addf %113, %117 : vector<16x128xf32>
    %c0_130 = arith.constant 0 : index
    %c8_131 = arith.constant 8 : index
    %119 = vector.load %arg11[%c0_130, %c8_131] : memref<18x144xf32, #tpu.memory_space<vmem>>, vector<16x128xf32>
    %c1_132 = arith.constant 1 : index
    %c0_133 = arith.constant 0 : index
    %c0_134 = arith.constant 0 : index
    %120 = vector.load %arg6[%c1_132, %c0_133, %c0_134] : memref<9x128x128xf32, #tpu.memory_space<vmem>>, vector<1x128x128xf32>
    %121 = vector.shape_cast %120 : vector<1x128x128xf32> to vector<128x128xf32>
    %cst_135 = arith.constant dense<0.000000e+00> : vector<16x128xf32>
    %122 = tpu.matmul %119, %121, %cst_135 {dimension_numbers = #tpu.dot_dimension_numbers<[1], [0], [0], [1], [0, 0, 1, 1], [], []>} : vector<16x128xf32>, vector<128x128xf32>, vector<16x128xf32> -> vector<16x128xf32>
    %123 = arith.addf %118, %122 : vector<16x128xf32>
    %c0_136 = arith.constant 0 : index
    %c16_137 = arith.constant 16 : index
    %124 = vector.load %arg11[%c0_136, %c16_137] : memref<18x144xf32, #tpu.memory_space<vmem>>, vector<16x128xf32>
    %c2_138 = arith.constant 2 : index
    %c0_139 = arith.constant 0 : index
    %c0_140 = arith.constant 0 : index
    %125 = vector.load %arg6[%c2_138, %c0_139, %c0_140] : memref<9x128x128xf32, #tpu.memory_space<vmem>>, vector<1x128x128xf32>
    %126 = vector.shape_cast %125 : vector<1x128x128xf32> to vector<128x128xf32>
    %cst_141 = arith.constant dense<0.000000e+00> : vector<16x128xf32>
    %127 = tpu.matmul %124, %126, %cst_141 {dimension_numbers = #tpu.dot_dimension_numbers<[1], [0], [0], [1], [0, 0, 1, 1], [], []>} : vector<16x128xf32>, vector<128x128xf32>, vector<16x128xf32> -> vector<16x128xf32>
    %128 = arith.addf %123, %127 : vector<16x128xf32>
    %c1_142 = arith.constant 1 : index
    %c0_143 = arith.constant 0 : index
    %129 = vector.load %arg11[%c1_142, %c0_143] : memref<18x144xf32, #tpu.memory_space<vmem>>, vector<16x128xf32>
    %c3_144 = arith.constant 3 : index
    %c0_145 = arith.constant 0 : index
    %c0_146 = arith.constant 0 : index
    %130 = vector.load %arg6[%c3_144, %c0_145, %c0_146] : memref<9x128x128xf32, #tpu.memory_space<vmem>>, vector<1x128x128xf32>
    %131 = vector.shape_cast %130 : vector<1x128x128xf32> to vector<128x128xf32>
    %cst_147 = arith.constant dense<0.000000e+00> : vector<16x128xf32>
    %132 = tpu.matmul %129, %131, %cst_147 {dimension_numbers = #tpu.dot_dimension_numbers<[1], [0], [0], [1], [0, 0, 1, 1], [], []>} : vector<16x128xf32>, vector<128x128xf32>, vector<16x128xf32> -> vector<16x128xf32>
    %133 = arith.addf %128, %132 : vector<16x128xf32>
    %c1_148 = arith.constant 1 : index
    %c8_149 = arith.constant 8 : index
    %134 = vector.load %arg11[%c1_148, %c8_149] : memref<18x144xf32, #tpu.memory_space<vmem>>, vector<16x128xf32>
    %c4_150 = arith.constant 4 : index
    %c0_151 = arith.constant 0 : index
    %c0_152 = arith.constant 0 : index
    %135 = vector.load %arg6[%c4_150, %c0_151, %c0_152] : memref<9x128x128xf32, #tpu.memory_space<vmem>>, vector<1x128x128xf32>
    %136 = vector.shape_cast %135 : vector<1x128x128xf32> to vector<128x128xf32>
    %cst_153 = arith.constant dense<0.000000e+00> : vector<16x128xf32>
    %137 = tpu.matmul %134, %136, %cst_153 {dimension_numbers = #tpu.dot_dimension_numbers<[1], [0], [0], [1], [0, 0, 1, 1], [], []>} : vector<16x128xf32>, vector<128x128xf32>, vector<16x128xf32> -> vector<16x128xf32>
    %138 = arith.addf %133, %137 : vector<16x128xf32>
    %c1_154 = arith.constant 1 : index
    %c16_155 = arith.constant 16 : index
    %139 = vector.load %arg11[%c1_154, %c16_155] : memref<18x144xf32, #tpu.memory_space<vmem>>, vector<16x128xf32>
    %c5_156 = arith.constant 5 : index
    %c0_157 = arith.constant 0 : index
    %c0_158 = arith.constant 0 : index
    %140 = vector.load %arg6[%c5_156, %c0_157, %c0_158] : memref<9x128x128xf32, #tpu.memory_space<vmem>>, vector<1x128x128xf32>
    %141 = vector.shape_cast %140 : vector<1x128x128xf32> to vector<128x128xf32>
    %cst_159 = arith.constant dense<0.000000e+00> : vector<16x128xf32>
    %142 = tpu.matmul %139, %141, %cst_159 {dimension_numbers = #tpu.dot_dimension_numbers<[1], [0], [0], [1], [0, 0, 1, 1], [], []>} : vector<16x128xf32>, vector<128x128xf32>, vector<16x128xf32> -> vector<16x128xf32>
    %143 = arith.addf %138, %142 : vector<16x128xf32>
    %c2_160 = arith.constant 2 : index
    %c0_161 = arith.constant 0 : index
    %144 = vector.load %arg11[%c2_160, %c0_161] : memref<18x144xf32, #tpu.memory_space<vmem>>, vector<16x128xf32>
    %c6_162 = arith.constant 6 : index
    %c0_163 = arith.constant 0 : index
    %c0_164 = arith.constant 0 : index
    %145 = vector.load %arg6[%c6_162, %c0_163, %c0_164] : memref<9x128x128xf32, #tpu.memory_space<vmem>>, vector<1x128x128xf32>
    %146 = vector.shape_cast %145 : vector<1x128x128xf32> to vector<128x128xf32>
    %cst_165 = arith.constant dense<0.000000e+00> : vector<16x128xf32>
    %147 = tpu.matmul %144, %146, %cst_165 {dimension_numbers = #tpu.dot_dimension_numbers<[1], [0], [0], [1], [0, 0, 1, 1], [], []>} : vector<16x128xf32>, vector<128x128xf32>, vector<16x128xf32> -> vector<16x128xf32>
    %148 = arith.addf %143, %147 : vector<16x128xf32>
    %c2_166 = arith.constant 2 : index
    %c8_167 = arith.constant 8 : index
    %149 = vector.load %arg11[%c2_166, %c8_167] : memref<18x144xf32, #tpu.memory_space<vmem>>, vector<16x128xf32>
    %c7_168 = arith.constant 7 : index
    %c0_169 = arith.constant 0 : index
    %c0_170 = arith.constant 0 : index
    %150 = vector.load %arg6[%c7_168, %c0_169, %c0_170] : memref<9x128x128xf32, #tpu.memory_space<vmem>>, vector<1x128x128xf32>
    %151 = vector.shape_cast %150 : vector<1x128x128xf32> to vector<128x128xf32>
    %cst_171 = arith.constant dense<0.000000e+00> : vector<16x128xf32>
    %152 = tpu.matmul %149, %151, %cst_171 {dimension_numbers = #tpu.dot_dimension_numbers<[1], [0], [0], [1], [0, 0, 1, 1], [], []>} : vector<16x128xf32>, vector<128x128xf32>, vector<16x128xf32> -> vector<16x128xf32>
    %153 = arith.addf %148, %152 : vector<16x128xf32>
    %c2_172 = arith.constant 2 : index
    %c16_173 = arith.constant 16 : index
    %154 = vector.load %arg11[%c2_172, %c16_173] : memref<18x144xf32, #tpu.memory_space<vmem>>, vector<16x128xf32>
    %c8_174 = arith.constant 8 : index
    %c0_175 = arith.constant 0 : index
    %c0_176 = arith.constant 0 : index
    %155 = vector.load %arg6[%c8_174, %c0_175, %c0_176] : memref<9x128x128xf32, #tpu.memory_space<vmem>>, vector<1x128x128xf32>
    %156 = vector.shape_cast %155 : vector<1x128x128xf32> to vector<128x128xf32>
    %cst_177 = arith.constant dense<0.000000e+00> : vector<16x128xf32>
    %157 = tpu.matmul %154, %156, %cst_177 {dimension_numbers = #tpu.dot_dimension_numbers<[1], [0], [0], [1], [0, 0, 1, 1], [], []>} : vector<16x128xf32>, vector<128x128xf32>, vector<16x128xf32> -> vector<16x128xf32>
    %158 = arith.addf %153, %157 : vector<16x128xf32>
    %c0_178 = arith.constant 0 : index
    %c0_179 = arith.constant 0 : index
    %159 = vector.load %arg7[%c0_178, %c0_179] : memref<1x128xf32, #tpu.memory_space<vmem>>, vector<1x128xf32>
    %160 = vector.broadcast %159 : vector<1x128xf32> to vector<16x128xf32>
    %161 = arith.addf %158, %160 : vector<16x128xf32>
    %cst_180 = arith.constant 0.000000e+00 : f32
    %162 = vector.broadcast %cst_180 : f32 to vector<16x128xf32>
    %163 = arith.maximumf %161, %162 : vector<16x128xf32>
    %164 = arith.addf %59, %163 : vector<16x128xf32>
    %c0_181 = arith.constant 0 : index
    %c0_182 = arith.constant 0 : index
    %c0_183 = arith.constant 0 : index
    %165 = vector.load %arg8[%c0_181, %c0_182, %c0_183] : memref<1x16x128xf32, #tpu.memory_space<vmem>>, vector<1x16x128xf32>
    %166 = vector.shape_cast %165 : vector<1x16x128xf32> to vector<16x128xf32>
    %167 = vector.shape_cast %164 : vector<16x128xf32> to vector<1x16x128xf32>
    tpu.vector_store %arg8[%c0_181, %c0_182, %c0_183], %167 {strides = array<i32>} : memref<1x16x128xf32, #tpu.memory_space<vmem>>, vector<1x16x128xf32>,
    return
  }
  func.func @transform_0(%arg0: i32) -> (i32, i32, i32) {
    %c0_i32 = arith.constant 0 : i32
    %c0_i32_0 = arith.constant 0 : i32
    %c0_i32_1 = arith.constant 0 : i32
    return %arg0, %c0_i32, %c0_i32_0 : i32, i32, i32
  }
  func.func @transform_1(%arg0: i32) -> (i32, i32, i32) {
    %c0_i32 = arith.constant 0 : i32
    %c0_i32_0 = arith.constant 0 : i32
    %c0_i32_1 = arith.constant 0 : i32
    %c0_i32_2 = arith.constant 0 : i32
    return %c0_i32, %c0_i32_0, %c0_i32_1 : i32, i32, i32
  }
  func.func @transform_2(%arg0: i32) -> (i32, i32) {
    %c0_i32 = arith.constant 0 : i32
    %c0_i32_0 = arith.constant 0 : i32
    %c0_i32_1 = arith.constant 0 : i32
    return %c0_i32, %c0_i32_0 : i32, i32
  }
  func.func @transform_3(%arg0: i32) -> (i32, i32, i32) {
    %c0_i32 = arith.constant 0 : i32
    %c0_i32_0 = arith.constant 0 : i32
    %c0_i32_1 = arith.constant 0 : i32
    %c0_i32_2 = arith.constant 0 : i32
    return %c0_i32, %c0_i32_0, %c0_i32_1 : i32, i32, i32
  }
  func.func @transform_4(%arg0: i32) -> (i32, i32) {
    %c0_i32 = arith.constant 0 : i32
    %c0_i32_0 = arith.constant 0 : i32
    %c0_i32_1 = arith.constant 0 : i32
    return %c0_i32, %c0_i32_0 : i32, i32
  }
  func.func @transform_5(%arg0: i32) -> (i32, i32, i32) {
    %c0_i32 = arith.constant 0 : i32
    %c0_i32_0 = arith.constant 0 : i32
    %c0_i32_1 = arith.constant 0 : i32
    %c0_i32_2 = arith.constant 0 : i32
    return %c0_i32, %c0_i32_0, %c0_i32_1 : i32, i32, i32
  }
  func.func @transform_6(%arg0: i32) -> (i32, i32) {
    %c0_i32 = arith.constant 0 : i32
    %c0_i32_0 = arith.constant 0 : i32
    %c0_i32_1 = arith.constant 0 : i32
    return %c0_i32, %c0_i32_0 : i32, i32
  }
  func.func @transform_7(%arg0: i32) -> (i32, i32, i32) {
    %c0_i32 = arith.constant 0 : i32
    %c0_i32_0 = arith.constant 0 : i32
    %c0_i32_1 = arith.constant 0 : i32
    return %arg0, %c0_i32, %c0_i32_0 : i32, i32, i32
  }
}

</mosaic_0001>

<bundles_post_ra>
// kernel: block_cnn_forward.1
= control target key start
LH: loop header
LB: loop body
LE: loop exit
PB: predicated region body
PF: predicated region fallthrough
CT: control target
= control target key end

     0   :  { %12 = vsyncpa [#allocation6], 0  ;;  %s5243_s0 = inlined_call_operand.vmem [shape: f32[2,16,64], index: 0, kind: input, shape index: {}]   ;;  %s5244_s1 = inlined_call_operand.hbm [shape: f32[9,64,128], index: 1, kind: input, shape index: {}]   ;;  %s5245_s2 = inlined_call_operand.vmem [shape: f32[1,128], index: 2, kind: input, shape index: {}]   ;;  %s5246_s3 = inlined_call_operand.hbm [shape: f32[9,128,128], index: 3, kind: input, shape index: {}]   ;;  %s5247_s4 = inlined_call_operand.vmem [shape: f32[1,128], index: 4, kind: input, shape index: {}]   ;;  %s5248_s5 = inlined_call_operand.hbm [shape: f32[9,128,128], index: 5, kind: input, shape index: {}]   ;;  %s5249_s6 = inlined_call_operand.vmem [shape: f32[1,128], index: 6, kind: input, shape index: {}]   ;;  %s5250_s7 = inlined_call_operand.vmem [shape: f32[2,16,128], index: 7, kind: output, shape index: {}]  }
   0x1   :  { %13 = vsyncpa [#allocation8], 0  ;;  %s4908_s24 = smov 0  }
   0x2 LB: > { %s4914_s25 = sadd.s32 4294967295, %s4855_s24   ;;  %p3343_p0 = scmp.ge.s32.totalorder %s4855_s24, 1  ;;  %s4855_s24 = sphi %s4908_s24, %s19_s24  }
   0x3   : > { %p202_p1 = scmp.lt.s32.totalorder %s4855_s24, 3  ;;  %p4618_p2 = scmp.eq.s32.totalorder %s4914_s25, 0 }
   0x4   : > { %s4857_s27 = smov [#allocation7]   ;;  %s4858_s29 = smov [#allocation5]  }
   0x5   : > { %p4919_p3 = pnand %p3343_p0, %p202_p1  ;;  %s230_s28 = sshll.u32 %s4857_s27, 4  ;;  %s231_s28 = int_to_ptr.vmem [resolvable:$true] %s230_s28 }
   0x6   : > { %s214_s30 = sshll.u32 %s4858_s29, 4  ;;  %s4859_s9 = smov [#allocation9]   ;;  %s215_s30 = int_to_ptr.vmem [resolvable:$true] %s214_s30 }
   0x7   : > { %p4608_p4 = pneg %p4919_p3  ;;  %s246_s10 = sshll.u32 %s4859_s9, 4  ;;  %s4931_s10 = int_to_ptr.vmem [resolvable:$true] %s246_s10 }
   0x8   : > { %s4774_s11 = scalar_lea.vmem %s231_s28, 18432  ;;  %p4782_p10 = scmp.lt.s32.totalorder %s231_s28, %s231_s28 }
   0x9   : > { %p4927_p5 = pnand %p4618_p2, %p4608_p4  ;;  %p4775_p7 = scmp.ne.s32.totalorder %s231_s28, %s4774_s11 }
   0xa   : > { %p4783_p11 = scmp.lt.s32.totalorder %s4774_s11, %s4774_s11 }
   0xb   : > { %p4765_p6 = pneg %p4927_p5 }
   0xc   : > { %p4784_p12 = por %p4783_p11, %p4782_p10 }
   0xd   : > { %p4777_p8 = pnand %p4775_p7, %p4765_p6 }
   0xf   : > { %p4778_p9 = pneg %p4777_p8 }
  0x11   : > { %p4785_p13 = pnand %p4784_p12, %p4778_p9 }
  0x13   : > { %4788 = shalt.err (!%p4785_p13)
}
  0x14   : > { %s4860_s12 = smov 128   ;;  %s4861_s13 = smov 8  }
  0x15   : > { %4614 = dma.hbm_to_vmem [thread:$0]  (!%p4927_p5), %s5246_s3, 18432, %s231_s28, [#allocation8], %s4860_s12, %s4860_s12, %s4861_s13  }
  0x16   : > { %s4800_s16 = scalar_lea.vmem %s215_s30, 9216  ;;  %p4808_p7 = scmp.lt.s32.totalorder %s215_s30, %s215_s30 }
  0x17   : > { %p4801_p0 = scmp.ne.s32.totalorder %s215_s30, %s4800_s16  ;;  %p4809_p8 = scmp.lt.s32.totalorder %s4800_s16, %s4800_s16 }
  0x19   : > { %p4803_p1 = pnand %p4801_p0, %p4765_p6  ;;  %p4810_p10 = por %p4809_p8, %p4808_p7 }
  0x1b   : > { %p4804_p4 = pneg %p4803_p1 }
  0x1d   : > { %p4811_p9 = pnand %p4810_p10, %p4804_p4 }
  0x1f   : > { %4814 = shalt.err (!%p4811_p9)
}
  0x20   : > { %4611 = dma.hbm_to_vmem [thread:$0]  (!%p4927_p5), %s5244_s1, 9216, %s215_s30, [#allocation6], %s4860_s12, %s4860_s12, %s4861_s13  }
  0x21   : > { %s4826_s19 = scalar_lea.vmem %s4931_s10, 18432  ;;  %p4834_p0 = scmp.lt.s32.totalorder %s4931_s10, %s4931_s10 }
  0x22   : > { %p4827_p11 = scmp.ne.s32.totalorder %s4931_s10, %s4826_s19  ;;  %p4835_p1 = scmp.lt.s32.totalorder %s4826_s19, %s4826_s19 }
  0x24   : > { %p4829_p12 = pnand %p4827_p11, %p4765_p6  ;;  %p4836_p4 = por %p4835_p1, %p4834_p0 }
  0x26   : > { %p4830_p13 = pneg %p4829_p12 }
  0x28   : > { %p4837_p7 = pnand %p4836_p4, %p4830_p13 }
  0x2a   : > { %4840 = shalt.err (!%p4837_p7)
}
  0x2b   : > { %4617 = dma.hbm_to_vmem [thread:$0]  (!%p4927_p5), %s5248_s5, 18432, %s4931_s10, [#allocation8], %s4860_s12, %s4860_s12, %s4861_s13  }
  0x2c   : > { %273 = sbr.rel (%p4919_p3) target bundleno = 1726 (0x6be), region = 48 }
  0x31   : > { %4846 = dma.done.wait (%p4618_p2), [#allocation6], 9216  }
  0x32   : > { %4848 = vsyncadd (%p4618_p2), [#allocation6], 4294958080 }
  0x33   : > { %4850 = dma.done.wait (%p4618_p2), [#allocation8], 36864  }
  0x34   : > { %4852 = vsyncadd (%p4618_p2), [#allocation8], 4294930432  ;;  %p313_p6 = scmp.lt.s32.totalorder %s4914_s25, 1  ;;  %vm323_vm0 = vcmask 588800   ;;  %v4862_v0 = vmov 0.0   ;;  %vm326_vm1 = vcmask 582656  }
  0x35   : > { %324 = vst.msk [vmem:[#allocation2] sm:$0xff] %vm323_vm0, %v4862_v0  ;;  %325 = vst.msk [vmem:[#allocation2 + $0x8] sm:$0xff] %vm323_vm0, %v4862_v0  ;;  %v364_v2 = vld [vmem:[#allocation5 + $0x38] sm:$0xff]  ;;  %s4863_s28 = smov 4   ;;  %v363_v3 = vld [vmem:[#allocation5 + $0x30] sm:$0xff]  ;;  %vm352_vm2 = vcmask 556064  }
  0x36   : > { %328 = vst [vmem:[#allocation3] sm:$0xff] %v4862_v0  ;;  %331 = vst [vmem:[#allocation3 + $0x10] sm:$0xff] %v4862_v0  ;;  %s5254_s25 = smov (!%p313_p6, %s4914_s25), 1  ;;  %3814 = vmatprep.subr.mxu1 %v364_v2  ;;  %v362_v5 = vld [vmem:[#allocation5 + $0x28] sm:$0xff]  ;;  %v361_v6 = vld [vmem:[#allocation5 + $0x20] sm:$0xff]  ;;  %vm380_vm3 = vcmask 523264  }
  0x37   : > { %333 = vst [vmem:[#allocation3 + $0x20] sm:$0x3] %v4862_v0  ;;  %336 = vst [vmem:[#allocation4] sm:$0xff] %v4862_v0  ;;  %s3379_s22 = sshll.u32 %s5254_s25, 4  ;;  %3815 = vmatpush3.msra.mxu1 %v364_v2  ;;  %v360_v7 = vld [vmem:[#allocation5 + $0x18] sm:$0xff]  ;;  %v359_v8 = vld [vmem:[#allocation5 + $0x10] sm:$0xff] }
  0x38   : > { %338 = vst [vmem:[#allocation4 + $0x10] sm:$0xff] %v4862_v0  ;;  %340 = vst [vmem:[#allocation4 + $0x20] sm:$0x3] %v4862_v0  ;;  %s317_s27 = scalar_lea.vmem %s5243_s0, %s3379_s22  ;;  %3816 = vmatprep.subr.mxu1 %v363_v3  ;;  %v358_v9 = vld [vmem:[#allocation5 + $0x8] sm:$0xff]  ;;  %v357_v10 = vld [vmem:[#allocation5] sm:$0xff]  ;;  %s4864_s29 = smov 120  }
  0x39   : > { %327 = vst.msk [vmem:[#allocation2 + $0x10] sm:$0x3] %vm326_vm1, %v4862_v0  ;;  %v342_v1 = vld [vmem:[%s317_s27] sm:$0xff]  ;;  %v343_v4 = vld [vmem:[%s317_s27 + $0x8] sm:$0xff]  ;;  %3817 = vmatpush3.msra.mxu1 %v363_v3  ;;  %v643_v11 = vld [vmem:[#allocation5 + $0xf8] sm:$0xff]  ;;  %s4865_s30 = smov 124   ;;  %s322_s18 = scalar_lea.vmem %s5250_s7, %s3379_s22 }
  0x3a   : > { %346 = vrot.lane.b32.xlu0 %v342_v1, %s4863_s28  ;;  %3818 = vmatprep.subr.mxu1 %v362_v5  ;;  %v373_v12 = vld [vmem:[#allocation5 + $0x78] sm:$0xff]  ;;  %v372_v13 = vld [vmem:[#allocation5 + $0x70] sm:$0xff]  ;;  %v371_v14 = vld [vmem:[#allocation5 + $0x68] sm:$0xff]  ;;  %vm329_vm4 = vcmask 130048   ;;  %vm334_vm5 = vcmask 123904   ;;  %vm1210_vm6 = vcmask 1040384  }
  0x3b   : > { %3819 = vmatpush3.msra.mxu1 %v362_v5  ;;  %3795 = vmatprep.subr.mxu0 %v373_v12  ;;  %v370_v15 = vld [vmem:[#allocation5 + $0x60] sm:$0xff]  ;;  %v369_v16 = vld [vmem:[#allocation5 + $0x58] sm:$0xff]  ;;  %v368_v17 = vld [vmem:[#allocation5 + $0x50] sm:$0xff]  ;;  %330 = vst.msk [vmem:[#allocation3 + $0x8] sm:$0xff] %vm329_vm4, %v4862_v0  ;;  %s4866_s10 = smov 8   ;;  %vm1223_vm7 = vcmask 1047617  }
  0x3c   : > { %3820 = vmatprep.subr.mxu1 %v361_v6  ;;  %3796 = vmatpush3.msra.mxu0 %v373_v12  ;;  %v367_v18 = vld [vmem:[#allocation5 + $0x48] sm:$0xff]  ;;  %v366_v19 = vld [vmem:[#allocation5 + $0x40] sm:$0xff]  ;;  %v4993_v20 = vld [vmem:[#allocation5 + $0xb8] sm:$0xff]  ;;  %332 = vst.msk [vmem:[#allocation3 + $0x18] sm:$0xff] %vm329_vm4, %v4862_v0  ;;  %vm1225_vm8 = vcmask 64513   ;;  %vm1227_vm9 = vcmask 1047616  }
  0x3d   : > { %3821 = vmatpush3.msra.mxu1 %v361_v6  ;;  %3797 = vmatprep.subr.mxu0 %v372_v13  ;;  %v642_v26 = vld [vmem:[#allocation5 + $0xf0] sm:$0xff]  ;;  %v641_v27 = vld [vmem:[#allocation5 + $0xe8] sm:$0xff]  ;;  %v640_v28 = vld [vmem:[#allocation5 + $0xe0] sm:$0xff]  ;;  %337 = vst.msk [vmem:[#allocation4 + $0x8] sm:$0xff] %vm329_vm4, %v4862_v0  ;;  %vm1229_vm10 = vcmask 64512   ;;  %vm1231_vm11 = vcmask 1040448  }
  0x3e   : > { %348 = vrot.lane.b32.xlu0 %v343_v4, %s4863_s28  ;;  %3822 = vmatprep.subr.mxu1 %v360_v7  ;;  %v639_v29 = vld [vmem:[#allocation5 + $0xd8] sm:$0xff]  ;;  %v638_v32 = vld [vmem:[#allocation5 + $0xd0] sm:$0xff]  ;;  %v637_v33 = vld [vmem:[#allocation5 + $0xc8] sm:$0xff]  ;;  %339 = vst.msk [vmem:[#allocation4 + $0x18] sm:$0xff] %vm329_vm4, %v4862_v0  ;;  %vm1233_vm12 = vcmask 57344   ;;  %vm1569_vm13 = vcmask 1046528  }
  0x3f   : > { %3823 = vmatpush3.msra.mxu1 %v360_v7  ;;  %3798 = vmatpush3.msra.mxu0 %v372_v13  ;;  %v636_v34 = vld [vmem:[#allocation5 + $0xc0] sm:$0xff]  ;;  %v829_v35 = vld [vmem:[#allocation5 + $0x178] sm:$0xff]  ;;  %v828_v37 = vld [vmem:[#allocation5 + $0x170] sm:$0xff]  ;;  %335 = vst.msk [vmem:[#allocation3 + $0x28] sm:$0x3] %vm334_vm5, %v4862_v0  ;;  %s4867_s11 = smov 112  }
  0x40   : > { %3824 = vmatprep.subr.mxu1 %v359_v8  ;;  %3799 = vmatprep.subr.mxu0 %v371_v14  ;;  %v827_v38 = vld [vmem:[#allocation5 + $0x168] sm:$0xff]  ;;  %v826_v39 = vld [vmem:[#allocation5 + $0x160] sm:$0xff]  ;;  %v825_v40 = vld [vmem:[#allocation5 + $0x158] sm:$0xff]  ;;  %341 = vst.msk [vmem:[#allocation4 + $0x28] sm:$0x3] %vm334_vm5, %v4862_v0  ;;  %vm1909_vm14 = vcmask 1045504  }
  0x41   : > { %3825 = vmatpush3.msra.mxu1 %v359_v8  ;;  %3800 = vmatpush3.msra.mxu0 %v371_v14  ;;  %v824_v41 = vld [vmem:[#allocation5 + $0x150] sm:$0xff]  ;;  %v823_v42 = vld [vmem:[#allocation5 + $0x148] sm:$0xff]  ;;  %v822_v43 = vld [vmem:[#allocation5 + $0x140] sm:$0xff]  ;;  %vm1284_vm15 = vcmask 982016   ;;  %vm1464_vm0 = vcmask 916480  }
  0x42   : > { %3826 = vmatprep.subr.mxu1 %v358_v9  ;;  %3801 = vmatprep.subr.mxu0 %v370_v15  ;;  %v1017_v44 = vld [vmem:[#allocation5 + $0x1f8] sm:$0xff]  ;;  %v546_v49 = vld [vmem:[#allocation5 + $0xb0] sm:$0xff]  ;;  %v545_v50 = vld [vmem:[#allocation5 + $0xa8] sm:$0xff] }
  0x43   : > { %3827 = vmatpush3.msra.mxu1 %v358_v9  ;;  %3802 = vmatpush3.msra.mxu0 %v370_v15  ;;  %v544_v52 = vld [vmem:[#allocation5 + $0xa0] sm:$0xff]  ;;  %v543_v54 = vld [vmem:[#allocation5 + $0x98] sm:$0xff]  ;;  %v542_v55 = vld [vmem:[#allocation5 + $0x90] sm:$0xff] }
  0x44   : > { %3828 = vmatprep.subr.mxu1 %v357_v10  ;;  %3803 = vmatprep.subr.mxu0 %v369_v16  ;;  %v541_v57 = vld [vmem:[#allocation5 + $0x88] sm:$0xff]  ;;  %v540_v58 = vld [vmem:[#allocation5 + $0x80] sm:$0xff]  ;;  %v1016_v60 = vld [vmem:[#allocation5 + $0x1f0] sm:$0xff] }
  0x45   : > { %3829 = vmatpush3.msra.mxu1 %v357_v10  ;;  %3804 = vmatpush3.msra.mxu0 %v369_v16  ;;  %v735_v62 = vld [vmem:[#allocation5 + $0x138] sm:$0xff]  ;;  %v1015_v63 = vld [vmem:[#allocation5 + $0x1e8] sm:$0xff]  ;;  %v734_v1 = vld [vmem:[#allocation5 + $0x130] sm:$0xff] }
  0x46   : > { %3852 = vmatprep.subr.mxu1 %v643_v11  ;;  %3805 = vmatprep.subr.mxu0 %v368_v17  ;;  %v1014_v2 = vld [vmem:[#allocation5 + $0x1e0] sm:$0xff]  ;;  %v733_v3 = vld [vmem:[#allocation5 + $0x128] sm:$0xff]  ;;  %v1013_v4 = vld [vmem:[#allocation5 + $0x1d8] sm:$0xff] }
  0x47   : > { %3806 = vmatpush3.msra.mxu0 %v368_v17  ;;  %v732_v5 = vld [vmem:[#allocation5 + $0x120] sm:$0xff]  ;;  %v1012_v6 = vld [vmem:[#allocation5 + $0x1d0] sm:$0xff]  ;;  %v731_v7 = vld [vmem:[#allocation5 + $0x118] sm:$0xff] }
  0x48   : > { %3807 = vmatprep.subr.mxu0 %v367_v18  ;;  %v1011_v8 = vld [vmem:[#allocation5 + $0x1c8] sm:$0xff]  ;;  %v730_v9 = vld [vmem:[#allocation5 + $0x110] sm:$0xff]  ;;  %v1010_v10 = vld [vmem:[#allocation5 + $0x1c0] sm:$0xff] }
  0x49   : > { %3808 = vmatpush3.msra.mxu0 %v367_v18  ;;  %v728_v13 = vld [vmem:[#allocation5 + $0x100] sm:$0xff]  ;;  %v925_v14 = vld [vmem:[#allocation5 + $0x1b8] sm:$0xff]  ;;  %v924_v15 = vld [vmem:[#allocation5 + $0x1b0] sm:$0xff] }
  0x4a   : > { %3809 = vmatprep.subr.mxu0 %v366_v19  ;;  %v923_v16 = vld [vmem:[#allocation5 + $0x1a8] sm:$0xff]  ;;  %v922_v17 = vld [vmem:[#allocation5 + $0x1a0] sm:$0xff]  ;;  %v921_v18 = vld [vmem:[#allocation5 + $0x198] sm:$0xff] }
  0x4b   : > { %3810 = vmatpush3.msra.mxu0 %v366_v19  ;;  %v920_v19 = vld [vmem:[#allocation5 + $0x190] sm:$0xff] }
  0x4c   : > { %3833 = vmatprep.subr.mxu0 %v4993_v20 }
  0xac   : > { %v347_v21 = vpop.permute.xlu0 %346 }
  0xad   : > { %353 = vst.msk [vmem:[#allocation2 + $0x1] sm:$0xff] %vm352_vm2, %v347_v21  ;;  %v918_v21 = vld [vmem:[#allocation5 + $0x180] sm:$0xff] }
  0xb0   : > { %v349_v22 = vpop.permute.xlu0 %348 }
  0xb1   : > { %354 = vst.msk [vmem:[#allocation2 + $0x9] sm:$0xff] %vm352_vm2, %v349_v22  ;;  %v1111_v22 = vld [vmem:[#allocation5 + $0x238] sm:$0xff] }
  0xb4   : > { %v355_v23 = vld [vmem:[#allocation2] sm:$0xff] }
  0xb5   : > { %548 = vrot.lane.b32.xlu0 %v355_v23, %s4864_s29  ;;  %376 = vrot.lane.b32.xlu1 %v355_v23, %s4865_s30  ;;  %v633_v24 = vld [vmem:[#allocation2 + $0x1] sm:$0xff] }
  0xb6   : > { %3830 = vmatprep.mubr.msk.f32.mxu1 %vm380_vm3, %v355_v23  ;;  %v1110_v23 = vld [vmem:[#allocation5 + $0x230] sm:$0xff] }
  0xb8   : > { %v356_v25 = vld [vmem:[#allocation2 + $0x8] sm:$0xff] }
  0xb9   : > { %736 = vrot.lane.b32.xlu0 %v633_v24, %s4865_s30  ;;  %378 = vrot.lane.b32.xlu1 %v356_v25, %s4865_s30  ;;  %v5005_v30 = vld [vmem:[#allocation2 + $0x2] sm:$0xff]  ;;  %v5013_v36 = vld [vmem:[#allocation2 + $0xa] sm:$0xff] }
  0xba   : > { %3831 = vmatmul.mubr.msk.f32.vlgmr.msra.gmra.mxu1 %vm380_vm3, %v356_v25  ;;  %v634_v31 = vld [vmem:[#allocation2 + $0x9] sm:$0xff] }
  0xbb   : > { %3853 = vmatpush3.msra.mxu1 %v643_v11  ;;  %3868 = vmatprep.mubr.msk.f32.mxu1 %vm380_vm3, %v633_v24  ;;  %v729_v11 = vld [vmem:[#allocation5 + $0x108] sm:$0xff] }
  0xbc   : > { %3854 = vmatprep.subr.mxu1 %v642_v26 }
  0xbd   : > { %3855 = vmatpush3.msra.mxu1 %v642_v26  ;;  %830 = vrot.lane.b32.xlu0 %v633_v24, %s4864_s29  ;;  %v1108_v26 = vld [vmem:[#allocation5 + $0x220] sm:$0xff] }
  0xbe   : > { %3856 = vmatprep.subr.mxu1 %v641_v27  ;;  %550 = vrot.lane.b32.xlu1 %v356_v25, %s4864_s29  ;;  %v1109_v25 = vld [vmem:[#allocation5 + $0x228] sm:$0xff] }
  0xbf   : > { %3857 = vmatpush3.msra.mxu1 %v641_v27  ;;  %v1107_v27 = vld [vmem:[#allocation5 + $0x218] sm:$0xff] }
  0xc0   : > { %3858 = vmatprep.subr.mxu1 %v640_v28 }
  0xc1   : > { %3859 = vmatpush3.msra.mxu1 %v640_v28  ;;  %1018 = vrot.lane.b32.xlu0 %v5005_v30, %s4865_s30  ;;  %v1106_v28 = vld [vmem:[#allocation5 + $0x210] sm:$0xff] }
  0xc2   : > { %3860 = vmatprep.subr.mxu1 %v639_v29  ;;  %738 = vrot.lane.b32.xlu1 %v634_v31, %s4865_s30 }
  0xc3   : > { %3861 = vmatpush3.msra.mxu1 %v639_v29  ;;  %v1105_v29 = vld [vmem:[#allocation5 + $0x208] sm:$0xff] }
  0xc4   : > { %3862 = vmatprep.subr.mxu1 %v638_v32 }
  0xc5   : > { %3863 = vmatpush3.msra.mxu1 %v638_v32  ;;  %1112 = vrot.lane.b32.xlu0 %v5005_v30, %s4864_s29  ;;  %v1252_v32 = vld [vmem:[#allocation7 + $0x78] sm:$0xff] }
  0xc6   : > { %3864 = vmatprep.subr.mxu1 %v637_v33  ;;  %832 = vrot.lane.b32.xlu1 %v634_v31, %s4864_s29 }
  0xc7   : > { %3865 = vmatpush3.msra.mxu1 %v637_v33  ;;  %v1251_v33 = vld [vmem:[#allocation7 + $0x70] sm:$0xff] }
  0xc8   : > { %3866 = vmatprep.subr.mxu1 %v636_v34 }
  0xc9   : > { %3867 = vmatpush3.msra.mxu1 %v636_v34  ;;  %v1250_v34 = vld [vmem:[#allocation7 + $0x68] sm:$0xff] }
  0xca   : > { %3869 = vmatmul.mubr.msk.f32.vlgmr.msra.gmra.mxu1 %vm380_vm3, %v634_v31  ;;  %1020 = vrot.lane.b32.xlu1 %v5013_v36, %s4865_s30 }
  0xcb   : > { %3890 = vmatprep.subr.mxu1 %v829_v35 }
  0xcc   : > { %3891 = vmatpush3.msra.mxu1 %v829_v35  ;;  %v1249_v35 = vld [vmem:[#allocation7 + $0x60] sm:$0xff] }
  0xcd   : > { %3892 = vmatprep.subr.mxu1 %v828_v37 }
  0xce   : > { %1114 = vrot.lane.b32.xlu1 %v5013_v36, %s4864_s29  ;;  %3893 = vmatpush3.msra.mxu1 %v828_v37  ;;  %v1247_v37 = vld [vmem:[#allocation7 + $0x50] sm:$0xff] }
  0xcf   : > { %3894 = vmatprep.subr.mxu1 %v827_v38 }
  0xd0   : > { %3895 = vmatpush3.msra.mxu1 %v827_v38  ;;  %v1246_v38 = vld [vmem:[#allocation7 + $0x48] sm:$0xff] }
  0xd1   : > { %3896 = vmatprep.subr.mxu1 %v826_v39 }
  0xd2   : > { %3897 = vmatpush3.msra.mxu1 %v826_v39  ;;  %v1245_v39 = vld [vmem:[#allocation7 + $0x40] sm:$0xff] }
  0xd3   : > { %3898 = vmatprep.subr.mxu1 %v825_v40 }
  0xd4   : > { %3899 = vmatpush3.msra.mxu1 %v825_v40  ;;  %v1244_v40 = vld [vmem:[#allocation7 + $0x38] sm:$0xff] }
  0xd5   : > { %3900 = vmatprep.subr.mxu1 %v824_v41 }
  0xd6   : > { %3901 = vmatpush3.msra.mxu1 %v824_v41  ;;  %v1243_v41 = vld [vmem:[#allocation7 + $0x30] sm:$0xff] }
  0xd7   : > { %3902 = vmatprep.subr.mxu1 %v823_v42 }
  0xd8   : > { %3903 = vmatpush3.msra.mxu1 %v823_v42  ;;  %v1242_v42 = vld [vmem:[#allocation7 + $0x28] sm:$0xff] }
  0xd9   : > { %3904 = vmatprep.subr.mxu1 %v822_v43 }
  0xda   : > { %3905 = vmatpush3.msra.mxu1 %v822_v43  ;;  %v1241_v43 = vld [vmem:[#allocation7 + $0x20] sm:$0xff] }
  0xdb   : > { %3928 = vmatprep.subr.mxu1 %v1017_v44 }
 0x127   : > { %v549_v45 = vpop.permute.xlu0 %548  ;;  %v377_v46 = vpop.permute.xlu1 %376 }
 0x128   : > { %3811 = vmatprep.mubr.msk.f32.mxu0 %vm380_vm3, %v377_v46 }
 0x12b   : > { %v737_v47 = vpop.permute.xlu0 %736  ;;  %v379_v48 = vpop.permute.xlu1 %378 }
 0x12c   : > { %3812 = vmatmul.mubr.msk.f32.vlgmr.msra.gmra.mxu0 %vm380_vm3, %v379_v48 }
 0x12d   : > { %3834 = vmatpush3.msra.mxu0 %v4993_v20  ;;  %3849 = vmatprep.mubr.msk.f32.mxu0 %vm380_vm3, %v549_v45  ;;  %v919_v20 = vld [vmem:[#allocation5 + $0x188] sm:$0xff] }
 0x12e   : > { %3835 = vmatprep.subr.mxu0 %v546_v49 }
 0x12f   : > { %3836 = vmatpush3.msra.mxu0 %v546_v49  ;;  %v831_v51 = vpop.permute.xlu0 %830 }
 0x130   : > { %3837 = vmatprep.subr.mxu0 %v545_v50  ;;  %v551_v53 = vpop.permute.xlu1 %550  ;;  %3906 = vmatprep.mubr.msk.f32.mxu1 %vm380_vm3, %v831_v51 }
 0x131   : > { %3838 = vmatpush3.msra.mxu0 %v545_v50 }
 0x132   : > { %3839 = vmatprep.subr.mxu0 %v544_v52 }
 0x133   : > { %3840 = vmatpush3.msra.mxu0 %v544_v52  ;;  %v1019_v61 = vpop.permute.xlu0 %1018 }
 0x134   : > { %3841 = vmatprep.subr.mxu0 %v543_v54  ;;  %v5025_v56 = vpop.permute.xlu1 %738 }
 0x135   : > { %3842 = vmatpush3.msra.mxu0 %v543_v54 }
 0x136   : > { %3843 = vmatprep.subr.mxu0 %v542_v55 }
 0x137   : > { %3844 = vmatpush3.msra.mxu0 %v542_v55  ;;  %v1113_v24 = vpop.permute.xlu0 %1112 }
 0x138   : > { %3845 = vmatprep.subr.mxu0 %v541_v57  ;;  %v833_v59 = vpop.permute.xlu1 %832 }
 0x139   : > { %3846 = vmatpush3.msra.mxu0 %v541_v57  ;;  %3907 = vmatmul.mubr.msk.f32.vlgmr.msra.gmra.mxu1 %vm380_vm3, %v833_v59 }
 0x13a   : > { %3929 = vmatpush3.msra.mxu1 %v1017_v44  ;;  %3847 = vmatprep.subr.mxu0 %v540_v58 }
 0x13b   : > { %3930 = vmatprep.subr.mxu1 %v1016_v60  ;;  %3944 = vmatprep.mubr.msk.f32.mxu1 %vm380_vm3, %v1019_v61 }
 0x13c   : > { %3848 = vmatpush3.msra.mxu0 %v540_v58  ;;  %3931 = vmatpush3.msra.mxu1 %v1016_v60  ;;  %v1021_v12 = vpop.permute.xlu1 %1020 }
 0x13d   : > { %3850 = vmatmul.mubr.msk.f32.vlgmr.msra.gmra.mxu0 %vm380_vm3, %v551_v53  ;;  %3871 = vmatprep.subr.mxu0 %v735_v62 }
 0x13e   : > { %3932 = vmatprep.subr.mxu1 %v1015_v63  ;;  %3872 = vmatpush3.msra.mxu0 %v735_v62 }
 0x13f   : > { %3887 = vmatprep.mubr.msk.f32.mxu0 %vm380_vm3, %v737_v47  ;;  %3933 = vmatpush3.msra.mxu1 %v1015_v63 }
 0x140   : > { %3873 = vmatprep.subr.mxu0 %v734_v1  ;;  %3934 = vmatprep.subr.mxu1 %v1014_v2  ;;  %v1115_v31 = vpop.permute.xlu1 %1114 }
 0x141   : > { %3874 = vmatpush3.msra.mxu0 %v734_v1  ;;  %3935 = vmatpush3.msra.mxu1 %v1014_v2 }
 0x142   : > { %3875 = vmatprep.subr.mxu0 %v733_v3  ;;  %3936 = vmatprep.subr.mxu1 %v1013_v4 }
 0x143   : > { %3876 = vmatpush3.msra.mxu0 %v733_v3  ;;  %3937 = vmatpush3.msra.mxu1 %v1013_v4 }
 0x144   : > { %3877 = vmatprep.subr.mxu0 %v732_v5  ;;  %3938 = vmatprep.subr.mxu1 %v1012_v6 }
 0x145   : > { %3878 = vmatpush3.msra.mxu0 %v732_v5  ;;  %3939 = vmatpush3.msra.mxu1 %v1012_v6 }
 0x146   : > { %3879 = vmatprep.subr.mxu0 %v731_v7  ;;  %3940 = vmatprep.subr.mxu1 %v1011_v8 }
 0x147   : > { %3880 = vmatpush3.msra.mxu0 %v731_v7  ;;  %3941 = vmatpush3.msra.mxu1 %v1011_v8  ;;  %v1240_v8 = vld [vmem:[#allocation7 + $0x18] sm:$0xff] }
 0x148   : > { %3881 = vmatprep.subr.mxu0 %v730_v9  ;;  %3942 = vmatprep.subr.mxu1 %v1010_v10 }
 0x149   : > { %3882 = vmatpush3.msra.mxu0 %v730_v9  ;;  %3943 = vmatpush3.msra.mxu1 %v1010_v10  ;;  %v1239_v10 = vld [vmem:[#allocation7 + $0x10] sm:$0xff] }
 0x14a   : > { %3883 = vmatprep.subr.mxu0 %v729_v11  ;;  %3945 = vmatmul.mubr.msk.f32.vlgmr.msra.gmra.mxu1 %vm380_vm3, %v1021_v12 }
 0x14b   : > { %3884 = vmatpush3.msra.mxu0 %v729_v11 }
 0x14c   : > { %3885 = vmatprep.subr.mxu0 %v728_v13 }
 0x14d   : > { %3886 = vmatpush3.msra.mxu0 %v728_v13  ;;  %v3374_v13 = vld [vmem:[%s5245_s2] ss:$0 sm:$0xff] }
 0x14e   : > { %3888 = vmatmul.mubr.msk.f32.vlgmr.msra.gmra.mxu0 %vm380_vm3, %v5025_v56  ;;  %3909 = vmatprep.subr.mxu0 %v925_v14 }
 0x14f   : > { %3910 = vmatpush3.msra.mxu0 %v925_v14  ;;  %3925 = vmatprep.mubr.msk.f32.mxu0 %vm380_vm3, %v5005_v30  ;;  %v1104_v30 = vld [vmem:[#allocation5 + $0x200] sm:$0xff] }
 0x150   : > { %3911 = vmatprep.subr.mxu0 %v924_v15 }
 0x151   : > { %3912 = vmatpush3.msra.mxu0 %v924_v15 }
 0x152   : > { %3913 = vmatprep.subr.mxu0 %v923_v16 }
 0x153   : > { %3914 = vmatpush3.msra.mxu0 %v923_v16  ;;  %v1238_v16 = vld [vmem:[#allocation7 + $0x8] sm:$0xff] }
 0x154   : > { %3915 = vmatprep.subr.mxu0 %v922_v17 }
 0x155   : > { %3916 = vmatpush3.msra.mxu0 %v922_v17 }
 0x156   : > { %3917 = vmatprep.subr.mxu0 %v921_v18 }
 0x157   : > { %3918 = vmatpush3.msra.mxu0 %v921_v18  ;;  %v1237_v18 = vld [vmem:[#allocation7] sm:$0xff] }
 0x158   : > { %3919 = vmatprep.subr.mxu0 %v920_v19 }
 0x159   : > { %3920 = vmatpush3.msra.mxu0 %v920_v19 }
 0x15a   : > { %3921 = vmatprep.subr.mxu0 %v919_v20 }
 0x15b   : > { %3922 = vmatpush3.msra.mxu0 %v919_v20 }
 0x15c   : > { %3923 = vmatprep.subr.mxu0 %v918_v21 }
 0x15d   : > { %3924 = vmatpush3.msra.mxu0 %v918_v21 }
 0x15e   : > { %3926 = vmatmul.mubr.msk.f32.vlgmr.msra.gmra.mxu0 %vm380_vm3, %v5013_v36  ;;  %3947 = vmatprep.subr.mxu0 %v1111_v22  ;;  %v1248_v36 = vld [vmem:[#allocation7 + $0x58] sm:$0xff] }
 0x15f   : > { %3948 = vmatpush3.msra.mxu0 %v1111_v22  ;;  %3963 = vmatprep.mubr.msk.f32.mxu0 %vm380_vm3, %v1113_v24 }
 0x160   : > { %3949 = vmatprep.subr.mxu0 %v1110_v23 }
 0x161   : > { %3950 = vmatpush3.msra.mxu0 %v1110_v23  ;;  %v5054_v23 = vld [vmem:[#allocation7 + $0x1f8] sm:$0xff] }
 0x162   : > { %3951 = vmatprep.subr.mxu0 %v1109_v25 }
 0x163   : > { %3952 = vmatpush3.msra.mxu0 %v1109_v25 }
 0x164   : > { %3953 = vmatprep.subr.mxu0 %v1108_v26 }
 0x165   : > { %3954 = vmatpush3.msra.mxu0 %v1108_v26 }
 0x166   : > { %3955 = vmatprep.subr.mxu0 %v1107_v27 }
 0x167   : > { %3956 = vmatpush3.msra.mxu0 %v1107_v27  ;;  %v1271_v27 = vld [vmem:[#allocation7 + $0xf8] sm:$0xff] }
 0x168   : > { %3957 = vmatprep.subr.mxu0 %v1106_v28  ;;  %3966 = vmatprep.subr.mxu1 %v1271_v27 }
 0x169   : > { %3958 = vmatpush3.msra.mxu0 %v1106_v28  ;;  %v1270_v28 = vld [vmem:[#allocation7 + $0xf0] sm:$0xff]  ;;  %3967 = vmatpush3.msra.mxu1 %v1271_v27 }
 0x16a   : > { %3959 = vmatprep.subr.mxu0 %v1105_v29  ;;  %3968 = vmatprep.subr.mxu1 %v1270_v28 }
 0x16b   : > { %3960 = vmatpush3.msra.mxu0 %v1105_v29  ;;  %v1269_v29 = vld [vmem:[#allocation7 + $0xe8] sm:$0xff]  ;;  %3969 = vmatpush3.msra.mxu1 %v1270_v28  ;;  %v1558_v28 = vld [vmem:[#allocation7 + $0x1c0] sm:$0xff] }
 0x16c   : > { %3961 = vmatprep.subr.mxu0 %v1104_v30  ;;  %3970 = vmatprep.subr.mxu1 %v1269_v29 }
 0x16d   : > { %3962 = vmatpush3.msra.mxu0 %v1104_v30  ;;  %v1268_v30 = vld [vmem:[#allocation7 + $0xe0] sm:$0xff]  ;;  %3971 = vmatpush3.msra.mxu1 %v1269_v29 }
 0x16e   : > { %3964 = vmatmul.mubr.msk.f32.vlgmr.msra.gmra.mxu0 %vm380_vm3, %v1115_v31  ;;  %4001 = vmatprep.subr.mxu0 %v1252_v32  ;;  %v1267_v31 = vld [vmem:[#allocation7 + $0xd8] sm:$0xff] }
 0x16f   : > { %4002 = vmatpush3.msra.mxu0 %v1252_v32  ;;  %3972 = vmatprep.subr.mxu1 %v1268_v30  ;;  %v1266_v32 = vld [vmem:[#allocation7 + $0xd0] sm:$0xff] }
 0x170   : > { %4003 = vmatprep.subr.mxu0 %v1251_v33  ;;  %3973 = vmatpush3.msra.mxu1 %v1268_v30 }
 0x171   : > { %4004 = vmatpush3.msra.mxu0 %v1251_v33  ;;  %3974 = vmatprep.subr.mxu1 %v1267_v31  ;;  %v1265_v33 = vld [vmem:[#allocation7 + $0xc8] sm:$0xff] }
 0x172   : > { %4005 = vmatprep.subr.mxu0 %v1250_v34  ;;  %3975 = vmatpush3.msra.mxu1 %v1267_v31  ;;  %v1557_v31 = vld [vmem:[#allocation7 + $0x1b8] sm:$0xff] }
 0x173   : > { %4006 = vmatpush3.msra.mxu0 %v1250_v34  ;;  %3976 = vmatprep.subr.mxu1 %v1266_v32  ;;  %v1264_v34 = vld [vmem:[#allocation7 + $0xc0] sm:$0xff] }
 0x174   : > { %4007 = vmatprep.subr.mxu0 %v1249_v35  ;;  %3977 = vmatpush3.msra.mxu1 %v1266_v32 }
 0x175   : > { %4008 = vmatpush3.msra.mxu0 %v1249_v35  ;;  %3978 = vmatprep.subr.mxu1 %v1265_v33  ;;  %v1263_v35 = vld [vmem:[#allocation7 + $0xb8] sm:$0xff] }
 0x176   : > { %4009 = vmatprep.subr.mxu0 %v1248_v36  ;;  %3979 = vmatpush3.msra.mxu1 %v1265_v33 }
 0x177   : > { %4010 = vmatpush3.msra.mxu0 %v1248_v36  ;;  %3980 = vmatprep.subr.mxu1 %v1264_v34  ;;  %v1262_v36 = vld [vmem:[#allocation7 + $0xb0] sm:$0xff] }
 0x178   : > { %4011 = vmatprep.subr.mxu0 %v1247_v37  ;;  %3981 = vmatpush3.msra.mxu1 %v1264_v34 }
 0x179   : > { %4012 = vmatpush3.msra.mxu0 %v1247_v37  ;;  %3982 = vmatprep.subr.mxu1 %v1263_v35  ;;  %v1261_v37 = vld [vmem:[#allocation7 + $0xa8] sm:$0xff] }
 0x17a   : > { %4013 = vmatprep.subr.mxu0 %v1246_v38  ;;  %v3832_v46 = vpop.f32.mrf.mxu1  ;;  %3983 = vmatpush3.msra.mxu1 %v1263_v35  ;;  %v1556_v35 = vld [vmem:[#allocation7 + $0x1b0] sm:$0xff] }
 0x17b   : > { %4014 = vmatpush3.msra.mxu0 %v1246_v38  ;;  %3984 = vmatprep.subr.mxu1 %v1262_v36  ;;  %v1260_v38 = vld [vmem:[#allocation7 + $0xa0] sm:$0xff] }
 0x17c   : > { %4015 = vmatprep.subr.mxu0 %v1245_v39  ;;  %v530_v49 = vpop.f32.mrf.mxu1  ;;  %3985 = vmatpush3.msra.mxu1 %v1262_v36 }
 0x17d   : > { %4016 = vmatpush3.msra.mxu0 %v1245_v39  ;;  %3986 = vmatprep.subr.mxu1 %v1261_v37  ;;  %v1259_v39 = vld [vmem:[#allocation7 + $0x98] sm:$0xff] }
 0x17e   : > { %4017 = vmatprep.subr.mxu0 %v1244_v40  ;;  %3987 = vmatpush3.msra.mxu1 %v1261_v37  ;;  %v1555_v37 = vld [vmem:[#allocation7 + $0x1a8] sm:$0xff] }
 0x17f   : > { %4018 = vmatpush3.msra.mxu0 %v1244_v40  ;;  %3988 = vmatprep.subr.mxu1 %v1260_v38  ;;  %v1258_v40 = vld [vmem:[#allocation7 + $0x90] sm:$0xff] }
 0x180   : > { %4019 = vmatprep.subr.mxu0 %v1243_v41  ;;  %3989 = vmatpush3.msra.mxu1 %v1260_v38  ;;  %v1554_v38 = vld [vmem:[#allocation7 + $0x1a0] sm:$0xff] }
 0x181   : > { %4020 = vmatpush3.msra.mxu0 %v1243_v41  ;;  %3990 = vmatprep.subr.mxu1 %v1259_v39  ;;  %v1257_v41 = vld [vmem:[#allocation7 + $0x88] sm:$0xff] }
 0x182   : > { %4021 = vmatprep.subr.mxu0 %v1242_v42  ;;  %3991 = vmatpush3.msra.mxu1 %v1259_v39  ;;  %v1553_v39 = vld [vmem:[#allocation7 + $0x198] sm:$0xff] }
 0x183   : > { %4022 = vmatpush3.msra.mxu0 %v1242_v42  ;;  %3992 = vmatprep.subr.mxu1 %v1258_v40  ;;  %v1256_v42 = vld [vmem:[#allocation7 + $0x80] sm:$0xff] }
 0x184   : > { %4023 = vmatprep.subr.mxu0 %v1241_v43  ;;  %3993 = vmatpush3.msra.mxu1 %v1258_v40  ;;  %v1552_v40 = vld [vmem:[#allocation7 + $0x190] sm:$0xff] }
 0x185   : > { %4024 = vmatpush3.msra.mxu0 %v1241_v43  ;;  %3994 = vmatprep.subr.mxu1 %v1257_v41  ;;  %v5066_v43 = vld [vmem:[#allocation7 + $0x178] sm:$0xff] }
 0x186   : > { %4025 = vmatprep.subr.mxu0 %v1240_v8  ;;  %3995 = vmatpush3.msra.mxu1 %v1257_v41 }
 0x187   : > { %4026 = vmatpush3.msra.mxu0 %v1240_v8  ;;  %3996 = vmatprep.subr.mxu1 %v1256_v42  ;;  %v1561_v8 = vld [vmem:[#allocation7 + $0x1d8] sm:$0xff] }
 0x188   : > { %4027 = vmatprep.subr.mxu0 %v1239_v10  ;;  %3997 = vmatpush3.msra.mxu1 %v1256_v42  ;;  %v1551_v42 = vld [vmem:[#allocation7 + $0x188] sm:$0xff] }
 0x189   : > { %4028 = vmatpush3.msra.mxu0 %v1239_v10  ;;  %4036 = vmatprep.subr.mxu1 %v5066_v43 }
 0x18a   : > { %v3870_v53 = vpop.f32.mrf.mxu1  ;;  %4029 = vmatprep.subr.mxu0 %v1238_v16 }
 0x18b   : > { %4030 = vmatpush3.msra.mxu0 %v1238_v16  ;;  %v1560_v16 = vld [vmem:[#allocation7 + $0x1d0] sm:$0xff] }
 0x18c   : > { %v716_v57 = vpop.f32.mrf.mxu1  ;;  %4031 = vmatprep.subr.mxu0 %v1237_v18 }
 0x18d   : > { %4032 = vmatpush3.msra.mxu0 %v1237_v18 }
 0x18e   : > { %4071 = vmatprep.subr.mxu0 %v5054_v23 }
 0x1ec   : > { %v3813_v44 = vpop.f32.mrf.mxu0 }
 0x1ed   : > { %v536_v48 = vadd.f32 %v3832_v46, %v3813_v44 }
 0x1ee   : > { %v451_v45 = vpop.f32.mrf.mxu0 }
 0x1ef   : > { %v531_v51 = vadd.f32 %v530_v49, %v451_v45 }
 0x1f9   : > { %v3908_v61 = vpop.f32.mrf.mxu1 }
 0x1fb   : > { %v904_v2 = vpop.f32.mrf.mxu1 }
 0x1fd   : > { %v3851_v47 = vpop.f32.mrf.mxu0 }
 0x1fe   : > { %v632_v52 = vadd.f32 %v3851_v47, %v536_v48  ;;  %v1564_v47 = vld [vmem:[#allocation7 + $0x1f0] sm:$0xff] }
 0x1ff   : > { %v622_v50 = vpop.f32.mrf.mxu0 }
 0x200   : > { %v631_v55 = vadd.f32 %v622_v50, %v531_v51  ;;  %v726_v56 = vadd.f32 %v3870_v53, %v632_v52 }
 0x202   : > { %v725_v60 = vadd.f32 %v716_v57, %v631_v55 }
 0x20a   : > { %v3946_v6 = vpop.f32.mrf.mxu1 }
 0x20c   : > { %v1092_v11 = vpop.f32.mrf.mxu1 }
 0x20e   : > { %v3889_v54 = vpop.f32.mrf.mxu0 }
 0x20f   : > { %v820_v59 = vadd.f32 %v3889_v54, %v726_v56 }
 0x210   : > { %v810_v58 = vpop.f32.mrf.mxu0 }
 0x211   : > { %v819_v63 = vadd.f32 %v810_v58, %v725_v60  ;;  %v914_v1 = vadd.f32 %v3908_v61, %v820_v59  ;;  %v1563_v61 = vld [vmem:[#allocation7 + $0x1e8] sm:$0xff] }
 0x213   : > { %v913_v5 = vadd.f32 %v904_v2, %v819_v63 }
 0x21e   : > { %v3927_v62 = vpop.f32.mrf.mxu0 }
 0x21f   : > { %v1008_v4 = vadd.f32 %v3927_v62, %v914_v1 }
 0x220   : > { %v998_v3 = vpop.f32.mrf.mxu0 }
 0x221   : > { %v1007_v7 = vadd.f32 %v998_v3, %v913_v5  ;;  %v1102_v9 = vadd.f32 %v3946_v6, %v1008_v4  ;;  %v1562_v3 = vld [vmem:[#allocation7 + $0x1e0] sm:$0xff] }
 0x223   : > { %v1101_v15 = vadd.f32 %v1092_v11, %v1007_v7 }
 0x22e   : > { %v3965_v12 = vpop.f32.mrf.mxu0 }
 0x22f   : > { %v1196_v14 = vadd.f32 %v3965_v12, %v1102_v9 }
 0x230   : > { %v1186_v17 = vpop.f32.mrf.mxu0 }
 0x231   : > { %v5049_v19 = vadd.f32 %v3374_v13, %v1196_v14  ;;  %v1195_v20 = vadd.f32 %v1186_v17, %v1101_v15 }
 0x233   : > { %v1207_v21 = vmax.f32 %v5049_v19, 0.0  ;;  %v5052_v22 = vadd.f32 %v3374_v13, %v1195_v20 }
 0x235   : > { %v1206_v0 = vmax.f32 %v5052_v22, 0.0  ;;  %v1212_v24 = vrot.slane %v1207_v21, 7 }
 0x237   : > { %v1211_v25 = vrot.slane %v1206_v0, 7 }
 0x239   : > { %1214 = vrot.lane.b32.xlu0 %v1211_v25, %s4866_s10  ;;  %v1213_v26 = vsel %vm1210_vm6, %v1211_v25, %v1212_v24  ;;  %v1559_v25 = vld [vmem:[#allocation7 + $0x1c8] sm:$0xff] }
 0x23a   : > { %1216 = vrot.lane.b32.xlu1 %v1213_v26, %s4866_s10 }
 0x23d   : > { %1218 = vrot.lane.b32.xlu0 %v1212_v24, %s4866_s10 }
 0x2ab   : > { %v1215_v44 = vpop.permute.xlu0 %1214 }
 0x2ac   : > { %1224 = vst.msk [vmem:[#allocation3] sm:$0xfe] %vm1223_vm7, %v1215_v44  ;;  %v1217_v45 = vpop.permute.xlu1 %1216 }
 0x2ad   : > { %1226 = vst.msk [vmem:[#allocation3 + $0x8] sm:$0xfe] %vm1225_vm8, %v1215_v44  ;;  %v1550_v44 = vld [vmem:[#allocation7 + $0x180] sm:$0xff] }
 0x2ae   : > { %1228 = vst.msk [vmem:[#allocation3 + $0x10] sm:$0xff] %vm1227_vm9, %v1217_v45 }
 0x2af   : > { %1230 = vst.msk [vmem:[#allocation3 + $0x18] sm:$0xff] %vm1229_vm10, %v1217_v45  ;;  %v1219_v46 = vpop.permute.xlu0 %1218 }
 0x2b0   : > { %1232 = vst.msk [vmem:[#allocation3 + $0x20] sm:$0x1] %vm1231_vm11, %v1219_v46 }
 0x2b1   : > { %1234 = vst.msk [vmem:[#allocation3 + $0x28] sm:$0x1] %vm1233_vm12, %v1219_v46  ;;  %v1798_v46 = vld [vmem:[#allocation7 + $0x2f8] sm:$0xff] }
 0x2b3   : > { %v1235_v48 = vld [vmem:[#allocation3] sm:$0xff] }
 0x2b4   : > { %v1253_v49 = vld [vmem:[#allocation3 + $0x8] sm:$0xff]  ;;  %v1546_v50 = vld [vmem:[#allocation3] sm:$0xfe]  ;;  %4033 = vmatprep.mubr.f32.mxu0 %v1235_v48 }
 0x2b5   : > { %v1236_v51 = vld [vmem:[#allocation3 + $0x10] sm:$0xff]  ;;  %v4643_v52 = vpack.i.bf16 %v1253_v49, %v1235_v48  ;;  %v1570_v54 = vrot.slane %v1546_v50, 1  ;;  %v1654_v55 = vld [vmem:[#allocation3] sm:$0xfe]  ;;  %v1655_v58 = vld [vmem:[#allocation3 + $0x8] sm:$0xfe] }
 0x2b6   : > { %v5075_v53 = vld [vmem:[#allocation3 + $0x18] sm:$0xff]  ;;  %4034 = vmatmul.mubr.f32.vlgmr.msra.gmra.mxu0 %v1236_v51  ;;  %v5078_v57 = vrot.slane %v1236_v51, 1  ;;  %v1683_v59 = vrot.slane %v1654_v55, 1  ;;  %v1686_v62 = vrot.slane %v1655_v58, 1  ;;  %v1994_v11 = vld [vmem:[#allocation3] sm:$0xfc] }
 0x2b7   : > { %v4648_v56 = vpack.i.bf16 %v5075_v53, %v1236_v51  ;;  %v1687_v60 = vrot.slane %v5075_v53, 1  ;;  %4072 = vmatpush3.msra.mxu0 %v5054_v23  ;;  %4644 = vrot.lane.b32.xlu1 %v4643_v52, %s4864_s29  ;;  %v1658_v1 = vld [vmem:[#allocation3 + $0x20] sm:$0x1]  ;;  %v1995_v12 = vld [vmem:[#allocation3 + $0x8] sm:$0xfc]  ;;  %v5094_v17 = vrot.slane %v1236_v51, 2 }
 0x2b8   : > { %4073 = vmatprep.subr.mxu0 %v1564_v47  ;;  %v1572_v63 = vsel %vm1569_vm13, %v1570_v54, %v5078_v57  ;;  %v1659_v2 = vld [vmem:[#allocation3 + $0x28] sm:$0x1]  ;;  %v1689_v4 = vrot.slane %v1658_v1, 1  ;;  %v1685_v6 = vsel %vm1569_vm13, %v1683_v59, %v5078_v57  ;;  %v1996_v13 = vld [vmem:[#allocation3 + $0x20] sm:$0x3]  ;;  %v2019_v20 = vrot.slane %v1994_v11, 2 }
 0x2b9   : > { %4649 = vrot.lane.b32.xlu0 %v4648_v56, %s4864_s29  ;;  %4074 = vmatpush3.msra.mxu0 %v1564_v47  ;;  %v1691_v5 = vrot.slane %v1659_v2, 1  ;;  %v1688_v7 = vsel %vm1569_vm13, %v1686_v62, %v1687_v60  ;;  %v1997_v14 = vld [vmem:[#allocation3 + $0x28] sm:$0x3]  ;;  %v2022_v23 = vrot.slane %v1995_v12, 2  ;;  %v2023_v24 = vrot.slane %v5075_v53, 2  ;;  %v1797_v48 = vld [vmem:[#allocation7 + $0x2f0] sm:$0xff] }
 0x2ba   : > { %4103 = vmatprep.mubr.f32.mxu0 %v1572_v63  ;;  %4075 = vmatprep.subr.mxu0 %v1563_v61  ;;  %v1690_v9 = vsel %vm1569_vm13, %v5078_v57, %v1689_v4  ;;  %v4663_v15 = vpack.i.bf16 %v1688_v7, %v1685_v6  ;;  %v2025_v26 = vrot.slane %v1996_v13, 2  ;;  %v2027_v27 = vrot.slane %v1997_v14, 2  ;;  %v1548_v41 = vld [vmem:[#allocation3 + $0x20] sm:$0x1]  ;;  %v1796_v49 = vld [vmem:[#allocation7 + $0x2e8] sm:$0xff]  ;;  %v1794_v51 = vld [vmem:[#allocation7 + $0x2d8] sm:$0xff] }
 0x2bb   : > { %4076 = vmatpush3.msra.mxu0 %v1563_v61  ;;  %4654 = vrot.lane.b32.xlu1 %v4643_v52, %s4867_s11  ;;  %v1692_v10 = vsel %vm1569_vm13, %v1687_v60, %v1691_v5  ;;  %v2021_v29 = vsel %vm1909_vm14, %v2019_v20, %v5094_v17  ;;  %v2024_v30 = vsel %vm1909_vm14, %v2022_v23, %v2023_v24  ;;  %v1573_v45 = vrot.slane %v1548_v41, 1  ;;  %v1795_v50 = vld [vmem:[#allocation7 + $0x2e0] sm:$0xff]  ;;  %v1793_v52 = vld [vmem:[#allocation7 + $0x2d0] sm:$0xff]  ;;  %v1792_v53 = vld [vmem:[#allocation7 + $0x2c8] sm:$0xff] }
 0x2bc   : > { %4077 = vmatprep.subr.mxu0 %v1562_v3  ;;  %v4668_v18 = vpack.i.bf16 %v1692_v10, %v1690_v9  ;;  %v2026_v32 = vsel %vm1909_vm14, %v5094_v17, %v2025_v26  ;;  %v2028_v33 = vsel %vm1909_vm14, %v2023_v24, %v2027_v27  ;;  %v4683_v34 = vpack.i.bf16 %v2024_v30, %v2021_v29  ;;  %v1791_v54 = vld [vmem:[#allocation7 + $0x2c0] sm:$0xff]  ;;  %v1790_v55 = vld [vmem:[#allocation7 + $0x2b8] sm:$0xff]  ;;  %v1785_v60 = vld [vmem:[#allocation7 + $0x290] sm:$0xff] }
 0x2bd   : > { %4659 = vrot.lane.b32.xlu0 %v4648_v56, %s4867_s11  ;;  %4078 = vmatpush3.msra.mxu0 %v1562_v3  ;;  %v4688_v36 = vpack.i.bf16 %v2028_v33, %v2026_v32  ;;  %v1574_v47 = vsel %vm1569_vm13, %v5078_v57, %v1573_v45  ;;  %v1789_v56 = vld [vmem:[#allocation7 + $0x2b0] sm:$0xff]  ;;  %v1788_v57 = vld [vmem:[#allocation7 + $0x2a8] sm:$0xff]  ;;  %v1787_v58 = vld [vmem:[#allocation7 + $0x2a0] sm:$0xff] }
 0x2be   : > { %4079 = vmatprep.subr.mxu0 %v1561_v8  ;;  %v1786_v59 = vld [vmem:[#allocation7 + $0x298] sm:$0xff]  ;;  %v1784_v61 = vld [vmem:[#allocation7 + $0x288] sm:$0xff]  ;;  %v1783_v62 = vld [vmem:[#allocation7 + $0x280] sm:$0xff] }
 0x2bf   : > { %4080 = vmatpush3.msra.mxu0 %v1561_v8  ;;  %4664 = vrot.lane.b32.xlu1 %v4663_v15, %s4864_s29  ;;  %v2014_v63 = vld [vmem:[#allocation7 + $0x3f8] sm:$0xff]  ;;  %v1454_v10 = vld [vmem:[#allocation7 + $0x170] sm:$0xff]  ;;  %v1453_v14 = vld [vmem:[#allocation7 + $0x168] sm:$0xff] }
 0x2c0   : > { %4081 = vmatprep.subr.mxu0 %v1560_v16  ;;  %v1451_v23 = vld [vmem:[#allocation7 + $0x158] sm:$0xff]  ;;  %v1449_v30 = vld [vmem:[#allocation7 + $0x148] sm:$0xff]  ;;  %v1446_v41 = vld [vmem:[#allocation7 + $0x130] sm:$0xff] }
 0x2c1   : > { %4669 = vrot.lane.b32.xlu0 %v4668_v18, %s4864_s29  ;;  %4082 = vmatpush3.msra.mxu0 %v1560_v16  ;;  %v2010_v45 = vld [vmem:[#allocation7 + $0x3d8] sm:$0xff] }
 0x2c2   : > { %4083 = vmatprep.subr.mxu0 %v1559_v25 }
 0x2c3   : > { %4084 = vmatpush3.msra.mxu0 %v1559_v25  ;;  %4674 = vrot.lane.b32.xlu1 %v4663_v15, %s4867_s11  ;;  %v1450_v25 = vld [vmem:[#allocation7 + $0x150] sm:$0xff] }
 0x2c4   : > { %4085 = vmatprep.subr.mxu0 %v1558_v28 }
 0x2c5   : > { %4679 = vrot.lane.b32.xlu0 %v4668_v18, %s4867_s11  ;;  %4086 = vmatpush3.msra.mxu0 %v1558_v28  ;;  %v1452_v18 = vld [vmem:[#allocation7 + $0x160] sm:$0xff] }
 0x2c6   : > { %4087 = vmatprep.subr.mxu0 %v1557_v31 }
 0x2c7   : > { %4088 = vmatpush3.msra.mxu0 %v1557_v31  ;;  %4684 = vrot.lane.b32.xlu1 %v4683_v34, %s4864_s29 }
 0x2c8   : > { %4089 = vmatprep.subr.mxu0 %v1556_v35 }
 0x2c9   : > { %4689 = vrot.lane.b32.xlu0 %v4688_v36, %s4864_s29  ;;  %4090 = vmatpush3.msra.mxu0 %v1556_v35  ;;  %v2013_v35 = vld [vmem:[#allocation7 + $0x3f0] sm:$0xff] }
 0x2ca   : > { %4091 = vmatprep.subr.mxu0 %v1555_v37 }
 0x2cb   : > { %4092 = vmatpush3.msra.mxu0 %v1555_v37  ;;  %4694 = vrot.lane.b32.xlu1 %v4683_v34, %s4867_s11  ;;  %v1448_v34 = vld [vmem:[#allocation7 + $0x140] sm:$0xff] }
 0x2cc   : > { %4093 = vmatprep.subr.mxu0 %v1554_v38 }
 0x2cd   : > { %4699 = vrot.lane.b32.xlu0 %v4688_v36, %s4867_s11  ;;  %4094 = vmatpush3.msra.mxu0 %v1554_v38  ;;  %v1447_v38 = vld [vmem:[#allocation7 + $0x138] sm:$0xff] }
 0x2ce   : > { %4095 = vmatprep.subr.mxu0 %v1553_v39 }
 0x2cf   : > { %4096 = vmatpush3.msra.mxu0 %v1553_v39  ;;  %v2012_v39 = vld [vmem:[#allocation7 + $0x3e8] sm:$0xff] }
 0x2d0   : > { %4097 = vmatprep.subr.mxu0 %v1552_v40 }
 0x2d1   : > { %4098 = vmatpush3.msra.mxu0 %v1552_v40 }
 0x2d2   : > { %4099 = vmatprep.subr.mxu0 %v1551_v42 }
 0x2d3   : > { %4100 = vmatpush3.msra.mxu0 %v1551_v42  ;;  %v2011_v42 = vld [vmem:[#allocation7 + $0x3e0] sm:$0xff] }
 0x2d4   : > { %4101 = vmatprep.subr.mxu0 %v1550_v44 }
 0x2d5   : > { %4102 = vmatpush3.msra.mxu0 %v1550_v44  ;;  %v1445_v44 = vld [vmem:[#allocation7 + $0x128] sm:$0xff] }
 0x2d6   : > { %4104 = vmatmul.mubr.f32.vlgmr.msra.gmra.mxu0 %v1574_v47  ;;  %4141 = vmatprep.subr.mxu0 %v1798_v46  ;;  %v2009_v47 = vld [vmem:[#allocation7 + $0x3d0] sm:$0xff] }
 0x2d7   : > { %4142 = vmatpush3.msra.mxu0 %v1798_v46  ;;  %v1444_v46 = vld [vmem:[#allocation7 + $0x120] sm:$0xff] }
 0x2d8   : > { %4143 = vmatprep.subr.mxu0 %v1797_v48 }
 0x2d9   : > { %4144 = vmatpush3.msra.mxu0 %v1797_v48  ;;  %v1443_v48 = vld [vmem:[#allocation7 + $0x118] sm:$0xff] }
 0x2da   : > { %4145 = vmatprep.subr.mxu0 %v1796_v49 }
 0x2db   : > { %4146 = vmatpush3.msra.mxu0 %v1796_v49  ;;  %v2008_v49 = vld [vmem:[#allocation7 + $0x3c8] sm:$0xff] }
 0x2dc   : > { %4147 = vmatprep.subr.mxu0 %v1795_v50 }
 0x2dd   : > { %4148 = vmatpush3.msra.mxu0 %v1795_v50  ;;  %v1442_v50 = vld [vmem:[#allocation7 + $0x110] sm:$0xff] }
 0x2de   : > { %4149 = vmatprep.subr.mxu0 %v1794_v51 }
 0x2df   : > { %4150 = vmatpush3.msra.mxu0 %v1794_v51  ;;  %v2007_v51 = vld [vmem:[#allocation7 + $0x3c0] sm:$0xff] }
 0x2e0   : > { %4151 = vmatprep.subr.mxu0 %v1793_v52 }
 0x2e1   : > { %4152 = vmatpush3.msra.mxu0 %v1793_v52  ;;  %v1441_v52 = vld [vmem:[#allocation7 + $0x108] sm:$0xff] }
 0x2e2   : > { %4153 = vmatprep.subr.mxu0 %v1792_v53 }
 0x2e3   : > { %4154 = vmatpush3.msra.mxu0 %v1792_v53  ;;  %v2006_v53 = vld [vmem:[#allocation7 + $0x3b8] sm:$0xff] }
 0x2e4   : > { %4155 = vmatprep.subr.mxu0 %v1791_v54 }
 0x2e5   : > { %4156 = vmatpush3.msra.mxu0 %v1791_v54 }
 0x2e6   : > { %4157 = vmatprep.subr.mxu0 %v1790_v55 }
 0x2e7   : > { %4158 = vmatpush3.msra.mxu0 %v1790_v55 }
 0x2e8   : > { %4159 = vmatprep.subr.mxu0 %v1789_v56 }
 0x2e9   : > { %4160 = vmatpush3.msra.mxu0 %v1789_v56  ;;  %v1440_v56 = vld [vmem:[#allocation7 + $0x100] sm:$0xff] }
 0x2ea   : > { %4161 = vmatprep.subr.mxu0 %v1788_v57 }
 0x2eb   : > { %4162 = vmatpush3.msra.mxu0 %v1788_v57  ;;  %v2005_v57 = vld [vmem:[#allocation7 + $0x3b0] sm:$0xff] }
 0x2ec   : > { %4163 = vmatprep.subr.mxu0 %v1787_v58 }
 0x2ed   : > { %4164 = vmatpush3.msra.mxu0 %v1787_v58 }
 0x2ee   : > { %4165 = vmatprep.subr.mxu0 %v1786_v59 }
 0x2ef   : > { %4166 = vmatpush3.msra.mxu0 %v1786_v59 }
 0x2f0   : > { %4167 = vmatprep.subr.mxu0 %v1785_v60 }
 0x2f1   : > { %4168 = vmatpush3.msra.mxu0 %v1785_v60  ;;  %v1676_v60 = vld [vmem:[#allocation7 + $0x278] sm:$0xff] }
 0x2f2   : > { %4169 = vmatprep.subr.mxu0 %v1784_v61 }
 0x2f3   : > { %4170 = vmatpush3.msra.mxu0 %v1784_v61  ;;  %v2004_v61 = vld [vmem:[#allocation7 + $0x3a8] sm:$0xff] }
 0x2f4   : > { %4171 = vmatprep.subr.mxu0 %v1783_v62 }
 0x2f5   : > { %4172 = vmatpush3.msra.mxu0 %v1783_v62 }
 0x2f6   : > { %4211 = vmatprep.subr.mxu0 %v2014_v63 }
 0x329   : > { %v4645_v1 = vpop.permute.xlu1 %4644 }
 0x32a   : > { %v4647_v2 = vunpack.i.h.bf16 %v4645_v1  ;;  %v4646_v3 = vunpack.i.l.bf16 %v4645_v1 }
 0x32b   : > { %v4650_v4 = vpop.permute.xlu0 %4649 }
 0x32c   : > { %v4652_v5 = vunpack.i.h.bf16 %v4650_v4  ;;  %v4651_v6 = vunpack.i.l.bf16 %v4650_v4  ;;  %v1285_v7 = vsel %vm1284_vm15, %v4646_v3, %v4647_v2  ;;  %v2003_v2 = vld [vmem:[#allocation7 + $0x3a0] sm:$0xff]  ;;  %v1674_v3 = vld [vmem:[#allocation7 + $0x268] sm:$0xff]  ;;  %v2002_v4 = vld [vmem:[#allocation7 + $0x398] sm:$0xff] }
 0x32d   : > { %v4655_v8 = vpop.permute.xlu1 %4654  ;;  %3998 = vmatprep.mubr.f32.mxu1 %v1285_v7 }
 0x32e   : > { %v1286_v9 = vsel %vm1284_vm15, %v4651_v6, %v4652_v5  ;;  %v4657_v11 = vunpack.i.h.bf16 %v4655_v8  ;;  %v4656_v12 = vunpack.i.l.bf16 %v4655_v8  ;;  %v1673_v5 = vld [vmem:[#allocation7 + $0x260] sm:$0xff]  ;;  %v2001_v6 = vld [vmem:[#allocation7 + $0x390] sm:$0xff]  ;;  %v1672_v8 = vld [vmem:[#allocation7 + $0x258] sm:$0xff] }
 0x32f   : > { %v5115_v13 = vpop.permute.xlu0 %4659  ;;  %3999 = vmatmul.mubr.f32.vlgmr.msra.gmra.mxu1 %v1286_v9  ;;  %v2000_v9 = vld [vmem:[#allocation7 + $0x388] sm:$0xff] }
 0x330   : > { %4037 = vmatpush3.msra.mxu1 %v5066_v43  ;;  %v1465_v15 = vsel %vm1464_vm0, %v4656_v12, %v4657_v11  ;;  %v4662_v54 = vunpack.i.h.bf16 %v5115_v13  ;;  %v4661_v55 = vunpack.i.l.bf16 %v5115_v13  ;;  %v1999_v13 = vld [vmem:[#allocation7 + $0x380] sm:$0xff] }
 0x331   : > { %4038 = vmatprep.subr.mxu1 %v1454_v10  ;;  %v5119_v16 = vpop.permute.xlu1 %4664  ;;  %4068 = vmatprep.mubr.f32.mxu1 %v1465_v15  ;;  %v1669_v15 = vld [vmem:[#allocation7 + $0x240] sm:$0xff] }
 0x332   : > { %4039 = vmatpush3.msra.mxu1 %v1454_v10  ;;  %v4667_v58 = vunpack.i.h.bf16 %v5119_v16  ;;  %v4666_v59 = vunpack.i.l.bf16 %v5119_v16  ;;  %v1466_v62 = vsel %vm1464_vm0, %v4661_v55, %v4662_v54  ;;  %v1671_v10 = vld [vmem:[#allocation7 + $0x250] sm:$0xff] }
 0x333   : > { %4040 = vmatprep.subr.mxu1 %v1453_v14  ;;  %v5121_v20 = vpop.permute.xlu0 %4669 }
 0x334   : > { %4041 = vmatpush3.msra.mxu1 %v1453_v14  ;;  %v1701_v1 = vsel %vm1284_vm15, %v4666_v59, %v4667_v58  ;;  %v1670_v14 = vld [vmem:[#allocation7 + $0x248] sm:$0xff]  ;;  %v2133_v58 = vld [vmem:[#allocation7 + $0x470] sm:$0xff] }
 0x335   : > { %4042 = vmatprep.subr.mxu1 %v1452_v18  ;;  %v4675_v24 = vpop.permute.xlu1 %4674 }
 0x336   : > { %4043 = vmatpush3.msra.mxu1 %v1452_v18  ;;  %v4677_v26 = vunpack.i.h.bf16 %v4675_v24  ;;  %v4676_v43 = vunpack.i.l.bf16 %v4675_v24  ;;  %v1668_v18 = vld [vmem:[#allocation7 + $0x238] sm:$0xff]  ;;  %v1666_v24 = vld [vmem:[#allocation7 + $0x228] sm:$0xff] }
 0x337   : > { %4044 = vmatprep.subr.mxu1 %v1451_v23  ;;  %v4680_v27 = vpop.permute.xlu0 %4679 }
 0x338   : > { %v4682_v28 = vunpack.i.h.bf16 %v4680_v27  ;;  %v4681_v29 = vunpack.i.l.bf16 %v4680_v27  ;;  %4045 = vmatpush3.msra.mxu1 %v1451_v23  ;;  %v1807_v31 = vsel %vm1464_vm0, %v4676_v43, %v4677_v26  ;;  %v1667_v23 = vld [vmem:[#allocation7 + $0x230] sm:$0xff]  ;;  %v1664_v26 = vld [vmem:[#allocation7 + $0x218] sm:$0xff]  ;;  %v1662_v27 = vld [vmem:[#allocation7 + $0x208] sm:$0xff] }
 0x339   : > { %4046 = vmatprep.subr.mxu1 %v1450_v25  ;;  %v4685_v32 = vpop.permute.xlu1 %4684  ;;  %4173 = vmatprep.mubr.f32.mxu0 %v1807_v31  ;;  %v1663_v43 = vld [vmem:[#allocation7 + $0x210] sm:$0xff]  ;;  %v1661_v31 = vld [vmem:[#allocation7 + $0x200] sm:$0xff] }
 0x33a   : > { %4047 = vmatpush3.msra.mxu1 %v1450_v25  ;;  %v1808_v33 = vsel %vm1464_vm0, %v4681_v29, %v4682_v28  ;;  %v4687_v36 = vunpack.i.h.bf16 %v4685_v32  ;;  %v4686_v37 = vunpack.i.l.bf16 %v4685_v32  ;;  %v1665_v25 = vld [vmem:[#allocation7 + $0x220] sm:$0xff]  ;;  %v4672_v29 = vunpack.i.h.bf16 %v5121_v20 }
 0x33b   : > { %4048 = vmatprep.subr.mxu1 %v1449_v30  ;;  %4174 = vmatmul.mubr.f32.vlgmr.msra.gmra.mxu0 %v1808_v33  ;;  %v4690_v7 = vpop.permute.xlu0 %4689  ;;  %v1888_v28 = vld [vmem:[#allocation3] sm:$0xfc]  ;;  %v1906_v33 = vld [vmem:[#allocation7 + $0x378] sm:$0xff] }
 0x33c   : > { %4049 = vmatpush3.msra.mxu1 %v1449_v30  ;;  %4212 = vmatpush3.msra.mxu0 %v2014_v63  ;;  %v2037_v40 = vsel %vm1284_vm15, %v4686_v37, %v4687_v36  ;;  %v1675_v63 = vld [vmem:[#allocation7 + $0x270] sm:$0xff]  ;;  %v4692_v11 = vunpack.i.h.bf16 %v4690_v7  ;;  %v4691_v12 = vunpack.i.l.bf16 %v4690_v7  ;;  %v4671_v30 = vunpack.i.l.bf16 %v5121_v20  ;;  %v1904_v37 = vld [vmem:[#allocation7 + $0x368] sm:$0xff]  ;;  %v1903_v20 = vld [vmem:[#allocation7 + $0x360] sm:$0xff] }
 0x33d   : > { %4050 = vmatprep.subr.mxu1 %v1448_v34  ;;  %4213 = vmatprep.subr.mxu0 %v2013_v35  ;;  %v1910_v32 = vrot.slane %v1888_v28, 2  ;;  %v2121_v7 = vld [vmem:[#allocation7 + $0x410] sm:$0xff]  ;;  %v2262_v28 = vld [vmem:[#allocation9 + $0x28] sm:$0xff] }
 0x33e   : > { %4051 = vmatpush3.msra.mxu1 %v1448_v34  ;;  %4214 = vmatpush3.msra.mxu0 %v2013_v35  ;;  %v2038_v16 = vsel %vm1284_vm15, %v4691_v12, %v4692_v11  ;;  %v1702_v34 = vsel %vm1284_vm15, %v4671_v30, %v4672_v29  ;;  %v1905_v35 = vld [vmem:[#allocation7 + $0x370] sm:$0xff]  ;;  %v2119_v12 = vld [vmem:[#allocation7 + $0x400] sm:$0xff] }
 0x33f   : > { %4052 = vmatprep.subr.mxu1 %v1447_v38  ;;  %4215 = vmatprep.subr.mxu0 %v2012_v39  ;;  %v1912_v36 = vsel %vm1909_vm14, %v1910_v32, %v5094_v17  ;;  %v2261_v29 = vld [vmem:[#allocation9 + $0x20] sm:$0xff] }
 0x340   : > { %4243 = vmatprep.mubr.f32.mxu0 %v2037_v40  ;;  %4053 = vmatpush3.msra.mxu1 %v1447_v38  ;;  %v1902_v38 = vld [vmem:[#allocation7 + $0x358] sm:$0xff]  ;;  %v1900_v40 = vld [vmem:[#allocation7 + $0x348] sm:$0xff] }
 0x341   : > { %4216 = vmatpush3.msra.mxu0 %v2012_v39  ;;  %4054 = vmatprep.subr.mxu1 %v1446_v41  ;;  %v1901_v39 = vld [vmem:[#allocation7 + $0x350] sm:$0xff] }
 0x342   : > { %4217 = vmatprep.subr.mxu0 %v2011_v42  ;;  %4055 = vmatpush3.msra.mxu1 %v1446_v41  ;;  %v1899_v41 = vld [vmem:[#allocation7 + $0x340] sm:$0xff] }
 0x343   : > { %4218 = vmatpush3.msra.mxu0 %v2011_v42  ;;  %4056 = vmatprep.subr.mxu1 %v1445_v44  ;;  %v1898_v42 = vld [vmem:[#allocation7 + $0x338] sm:$0xff] }
 0x344   : > { %4219 = vmatprep.subr.mxu0 %v2010_v45  ;;  %4057 = vmatpush3.msra.mxu1 %v1445_v44  ;;  %v1897_v44 = vld [vmem:[#allocation7 + $0x330] sm:$0xff] }
 0x345   : > { %4220 = vmatpush3.msra.mxu0 %v2010_v45  ;;  %4058 = vmatprep.subr.mxu1 %v1444_v46  ;;  %v1896_v45 = vld [vmem:[#allocation7 + $0x328] sm:$0xff] }
 0x346   : > { %4221 = vmatprep.subr.mxu0 %v2009_v47  ;;  %4059 = vmatpush3.msra.mxu1 %v1444_v46  ;;  %v1895_v46 = vld [vmem:[#allocation7 + $0x320] sm:$0xff] }
 0x347   : > { %4222 = vmatpush3.msra.mxu0 %v2009_v47  ;;  %4060 = vmatprep.subr.mxu1 %v1443_v48  ;;  %v1894_v47 = vld [vmem:[#allocation7 + $0x318] sm:$0xff] }
 0x348   : > { %4223 = vmatprep.subr.mxu0 %v2008_v49  ;;  %4061 = vmatpush3.msra.mxu1 %v1443_v48  ;;  %v1893_v48 = vld [vmem:[#allocation7 + $0x310] sm:$0xff] }
 0x349   : > { %4224 = vmatpush3.msra.mxu0 %v2008_v49  ;;  %4062 = vmatprep.subr.mxu1 %v1442_v50  ;;  %v1889_v49 = vld [vmem:[#allocation3 + $0x20] sm:$0x3] }
 0x34a   : > { %4225 = vmatprep.subr.mxu0 %v2007_v51  ;;  %4063 = vmatpush3.msra.mxu1 %v1442_v50  ;;  %v4695_v50 = vpop.permute.xlu1 %4694 }
 0x34b   : > { %4226 = vmatpush3.msra.mxu0 %v2007_v51  ;;  %4064 = vmatprep.subr.mxu1 %v1441_v52  ;;  %v1892_v51 = vld [vmem:[#allocation7 + $0x308] sm:$0xff]  ;;  %v4697_v54 = vunpack.i.h.bf16 %v4695_v50  ;;  %v4696_v55 = vunpack.i.l.bf16 %v4695_v50 }
 0x34c   : > { %4227 = vmatprep.subr.mxu0 %v2006_v53  ;;  %4065 = vmatpush3.msra.mxu1 %v1441_v52  ;;  %v1891_v52 = vld [vmem:[#allocation7 + $0x300] sm:$0xff] }
 0x34d   : > { %4228 = vmatpush3.msra.mxu0 %v2006_v53  ;;  %4066 = vmatprep.subr.mxu1 %v1440_v56  ;;  %v1913_v53 = vrot.slane %v1889_v49, 2  ;;  %v2143_v59 = vsel %vm1464_vm0, %v4696_v55, %v4697_v54 }
 0x34e   : > { %4229 = vmatprep.subr.mxu0 %v2005_v57  ;;  %4067 = vmatpush3.msra.mxu1 %v1440_v56  ;;  %v2134_v56 = vld [vmem:[#allocation7 + $0x478] sm:$0xff] }
 0x34f   : > { %4230 = vmatpush3.msra.mxu0 %v2005_v57  ;;  %4069 = vmatmul.mubr.f32.vlgmr.msra.gmra.mxu1 %v1466_v62  ;;  %v1914_v57 = vsel %vm1909_vm14, %v5094_v17, %v1913_v53  ;;  %v2130_v62 = vld [vmem:[#allocation7 + $0x458] sm:$0xff]  ;;  %v2128_v17 = vld [vmem:[#allocation7 + $0x448] sm:$0xff] }
 0x350   : > { %4106 = vmatprep.subr.mxu1 %v1676_v60  ;;  %4231 = vmatprep.subr.mxu0 %v2004_v61 }
 0x351   : > { %4107 = vmatpush3.msra.mxu1 %v1676_v60  ;;  %4138 = vmatprep.mubr.f32.mxu1 %v1701_v1  ;;  %v2132_v60 = vld [vmem:[#allocation7 + $0x468] sm:$0xff]  ;;  %v2127_v1 = vld [vmem:[#allocation7 + $0x440] sm:$0xff] }
 0x352   : > { %4232 = vmatpush3.msra.mxu0 %v2004_v61  ;;  %4108 = vmatprep.subr.mxu1 %v1675_v63  ;;  %v2131_v61 = vld [vmem:[#allocation7 + $0x460] sm:$0xff] }
 0x353   : > { %4233 = vmatprep.subr.mxu0 %v2003_v2  ;;  %4109 = vmatpush3.msra.mxu1 %v1675_v63  ;;  %v2129_v63 = vld [vmem:[#allocation7 + $0x450] sm:$0xff] }
 0x354   : > { %4234 = vmatpush3.msra.mxu0 %v2003_v2  ;;  %4110 = vmatprep.subr.mxu1 %v1674_v3  ;;  %v2126_v2 = vld [vmem:[#allocation7 + $0x438] sm:$0xff] }
 0x355   : > { %4235 = vmatprep.subr.mxu0 %v2002_v4  ;;  %4111 = vmatpush3.msra.mxu1 %v1674_v3  ;;  %v2125_v3 = vld [vmem:[#allocation7 + $0x430] sm:$0xff] }
 0x356   : > { %4236 = vmatpush3.msra.mxu0 %v2002_v4  ;;  %4112 = vmatprep.subr.mxu1 %v1673_v5  ;;  %v2124_v4 = vld [vmem:[#allocation7 + $0x428] sm:$0xff] }
 0x357   : > { %4237 = vmatprep.subr.mxu0 %v2001_v6  ;;  %4113 = vmatpush3.msra.mxu1 %v1673_v5  ;;  %v2123_v5 = vld [vmem:[#allocation7 + $0x420] sm:$0xff] }
 0x358   : > { %4238 = vmatpush3.msra.mxu0 %v2001_v6  ;;  %4114 = vmatprep.subr.mxu1 %v1672_v8  ;;  %v2122_v6 = vld [vmem:[#allocation7 + $0x418] sm:$0xff] }
 0x359   : > { %4239 = vmatprep.subr.mxu0 %v2000_v9  ;;  %4115 = vmatpush3.msra.mxu1 %v1672_v8  ;;  %v4700_v8 = vpop.permute.xlu0 %4699 }
 0x35a   : > { %4240 = vmatpush3.msra.mxu0 %v2000_v9  ;;  %4116 = vmatprep.subr.mxu1 %v1671_v10  ;;  %v2120_v9 = vld [vmem:[#allocation7 + $0x408] sm:$0xff]  ;;  %v4701_v11 = vunpack.i.l.bf16 %v4700_v8 }
 0x35b   : > { %4241 = vmatprep.subr.mxu0 %v1999_v13  ;;  %4117 = vmatpush3.msra.mxu1 %v1671_v10  ;;  %v4702_v10 = vunpack.i.h.bf16 %v4700_v8  ;;  %v5145_v8 = vld [vmem:[#allocation9 + $0x1f8] sm:$0xff] }
 0x35c   : > { %4242 = vmatpush3.msra.mxu0 %v1999_v13  ;;  %4118 = vmatprep.subr.mxu1 %v1670_v14 }
 0x35d   : > { %4244 = vmatmul.mubr.f32.vlgmr.msra.gmra.mxu0 %v2038_v16  ;;  %4119 = vmatpush3.msra.mxu1 %v1670_v14  ;;  %v2144_v13 = vsel %vm1464_vm0, %v4701_v11, %v4702_v10  ;;  %v2272_v14 = vld [vmem:[#allocation9 + $0x78] sm:$0xff]  ;;  %v2270_v16 = vld [vmem:[#allocation9 + $0x68] sm:$0xff] }
 0x35e   : > { %4120 = vmatprep.subr.mxu1 %v1669_v15 }
 0x35f   : > { %4121 = vmatpush3.msra.mxu1 %v1669_v15  ;;  %v2271_v15 = vld [vmem:[#allocation9 + $0x70] sm:$0xff] }
 0x360   : > { %4122 = vmatprep.subr.mxu1 %v1668_v18 }
 0x361   : > { %4123 = vmatpush3.msra.mxu1 %v1668_v18  ;;  %v2269_v18 = vld [vmem:[#allocation9 + $0x60] sm:$0xff] }
 0x362   : > { %4124 = vmatprep.subr.mxu1 %v1667_v23 }
 0x363   : > { %4125 = vmatpush3.msra.mxu1 %v1667_v23  ;;  %v2268_v23 = vld [vmem:[#allocation9 + $0x58] sm:$0xff] }
 0x364   : > { %4126 = vmatprep.subr.mxu1 %v1666_v24 }
 0x365   : > { %4127 = vmatpush3.msra.mxu1 %v1666_v24  ;;  %v2267_v24 = vld [vmem:[#allocation9 + $0x50] sm:$0xff] }
 0x366   : > { %4128 = vmatprep.subr.mxu1 %v1665_v25 }
 0x367   : > { %4129 = vmatpush3.msra.mxu1 %v1665_v25  ;;  %v2266_v25 = vld [vmem:[#allocation9 + $0x48] sm:$0xff] }
 0x368   : > { %4130 = vmatprep.subr.mxu1 %v1664_v26 }
 0x369   : > { %4131 = vmatpush3.msra.mxu1 %v1664_v26  ;;  %v2265_v26 = vld [vmem:[#allocation9 + $0x40] sm:$0xff] }
 0x36a   : > { %4132 = vmatprep.subr.mxu1 %v1663_v43 }
 0x36b   : > { %4133 = vmatpush3.msra.mxu1 %v1663_v43  ;;  %v2264_v43 = vld [vmem:[#allocation9 + $0x38] sm:$0xff] }
 0x36c   : > { %4134 = vmatprep.subr.mxu1 %v1662_v27 }
 0x36d   : > { %4135 = vmatpush3.msra.mxu1 %v1662_v27  ;;  %v2263_v27 = vld [vmem:[#allocation9 + $0x30] sm:$0xff] }
 0x36e   : > { %4136 = vmatprep.subr.mxu1 %v1661_v31 }
 0x36f   : > { %4137 = vmatpush3.msra.mxu1 %v1661_v31 }
 0x370   : > { %4139 = vmatmul.mubr.f32.vlgmr.msra.gmra.mxu1 %v1702_v34  ;;  %4176 = vmatprep.subr.mxu1 %v1906_v33 }
 0x371   : > { %4177 = vmatpush3.msra.mxu1 %v1906_v33  ;;  %4208 = vmatprep.mubr.f32.mxu1 %v1912_v36 }
 0x372   : > { %4178 = vmatprep.subr.mxu1 %v1905_v35 }
 0x373   : > { %4179 = vmatpush3.msra.mxu1 %v1905_v35 }
 0x374   : > { %4180 = vmatprep.subr.mxu1 %v1904_v37 }
 0x375   : > { %4181 = vmatpush3.msra.mxu1 %v1904_v37 }
 0x376   : > { %4182 = vmatprep.subr.mxu1 %v1903_v20  ;;  %v4035_v32 = vpop.f32.mrf.mxu0 }
 0x377   : > { %4183 = vmatpush3.msra.mxu1 %v1903_v20 }
 0x378   : > { %4184 = vmatprep.subr.mxu1 %v1902_v38  ;;  %v1430_v35 = vpop.f32.mrf.mxu0 }
 0x379   : > { %4185 = vmatpush3.msra.mxu1 %v1902_v38 }
 0x37a   : > { %4186 = vmatprep.subr.mxu1 %v1901_v39 }
 0x37b   : > { %4187 = vmatpush3.msra.mxu1 %v1901_v39 }
 0x37c   : > { %4188 = vmatprep.subr.mxu1 %v1900_v40 }
 0x37d   : > { %4189 = vmatpush3.msra.mxu1 %v1900_v40 }
 0x37e   : > { %4190 = vmatprep.subr.mxu1 %v1899_v41 }
 0x37f   : > { %4191 = vmatpush3.msra.mxu1 %v1899_v41 }
 0x380   : > { %4192 = vmatprep.subr.mxu1 %v1898_v42 }
 0x381   : > { %4193 = vmatpush3.msra.mxu1 %v1898_v42 }
 0x382   : > { %4194 = vmatprep.subr.mxu1 %v1897_v44 }
 0x383   : > { %4195 = vmatpush3.msra.mxu1 %v1897_v44 }
 0x384   : > { %4196 = vmatprep.subr.mxu1 %v1896_v45 }
 0x385   : > { %4197 = vmatpush3.msra.mxu1 %v1896_v45 }
 0x386   : > { %4198 = vmatprep.subr.mxu1 %v1895_v46 }
 0x387   : > { %4199 = vmatpush3.msra.mxu1 %v1895_v46 }
 0x388   : > { %4200 = vmatprep.subr.mxu1 %v1894_v47 }
 0x389   : > { %4201 = vmatpush3.msra.mxu1 %v1894_v47 }
 0x38a   : > { %4202 = vmatprep.subr.mxu1 %v1893_v48 }
 0x38b   : > { %4203 = vmatpush3.msra.mxu1 %v1893_v48 }
 0x38c   : > { %4204 = vmatprep.subr.mxu1 %v1892_v51 }
 0x38d   : > { %4205 = vmatpush3.msra.mxu1 %v1892_v51 }
 0x38e   : > { %4206 = vmatprep.subr.mxu1 %v1891_v52 }
 0x38f   : > { %4207 = vmatpush3.msra.mxu1 %v1891_v52 }
 0x390   : > { %4209 = vmatmul.mubr.f32.vlgmr.msra.gmra.mxu1 %v1914_v57  ;;  %4246 = vmatprep.subr.mxu1 %v2134_v56  ;;  %v2260_v57 = vld [vmem:[#allocation9 + $0x18] sm:$0xff] }
 0x391   : > { %4247 = vmatpush3.msra.mxu1 %v2134_v56  ;;  %4278 = vmatprep.mubr.f32.mxu1 %v2143_v59  ;;  %v2259_v59 = vld [vmem:[#allocation9 + $0x10] sm:$0xff] }
 0x392   : > { %4248 = vmatprep.subr.mxu1 %v2133_v58 }
 0x393   : > { %4249 = vmatpush3.msra.mxu1 %v2133_v58 }
 0x394   : > { %4250 = vmatprep.subr.mxu1 %v2132_v60 }
 0x395   : > { %4251 = vmatpush3.msra.mxu1 %v2132_v60 }
 0x396   : > { %4252 = vmatprep.subr.mxu1 %v2131_v61  ;;  %v4105_v38 = vpop.f32.mrf.mxu0 }
 0x397   : > { %4253 = vmatpush3.msra.mxu1 %v2131_v61 }
 0x398   : > { %4254 = vmatprep.subr.mxu1 %v2130_v62  ;;  %v1643_v42 = vpop.f32.mrf.mxu0 }
 0x399   : > { %4255 = vmatpush3.msra.mxu1 %v2130_v62  ;;  %v3375_v62 = vld [vmem:[%s5247_s4] ss:$0 sm:$0xff] }
 0x39a   : > { %4256 = vmatprep.subr.mxu1 %v2129_v63 }
 0x39b   : > { %4257 = vmatpush3.msra.mxu1 %v2129_v63 }
 0x39c   : > { %4258 = vmatprep.subr.mxu1 %v2128_v17 }
 0x39d   : > { %4259 = vmatpush3.msra.mxu1 %v2128_v17 }
 0x39e   : > { %4260 = vmatprep.subr.mxu1 %v2127_v1 }
 0x39f   : > { %4261 = vmatpush3.msra.mxu1 %v2127_v1 }
 0x3a0   : > { %4262 = vmatprep.subr.mxu1 %v2126_v2 }
 0x3a1   : > { %4263 = vmatpush3.msra.mxu1 %v2126_v2  ;;  %v2258_v2 = vld [vmem:[#allocation9 + $0x8] sm:$0xff] }
 0x3a2   : > { %4264 = vmatprep.subr.mxu1 %v2125_v3 }
 0x3a3   : > { %4265 = vmatpush3.msra.mxu1 %v2125_v3  ;;  %v2257_v3 = vld [vmem:[#allocation9] sm:$0xff] }
 0x3a4   : > { %4266 = vmatprep.subr.mxu1 %v2124_v4 }
 0x3a5   : > { %4267 = vmatpush3.msra.mxu1 %v2124_v4 }
 0x3a6   : > { %4268 = vmatprep.subr.mxu1 %v2123_v5 }
 0x3a7   : > { %4269 = vmatpush3.msra.mxu1 %v2123_v5 }
 0x3a8   : > { %4270 = vmatprep.subr.mxu1 %v2122_v6 }
 0x3a9   : > { %4271 = vmatpush3.msra.mxu1 %v2122_v6 }
 0x3aa   : > { %4272 = vmatprep.subr.mxu1 %v2121_v7 }
 0x3ab   : > { %4273 = vmatpush3.msra.mxu1 %v2121_v7 }
 0x3ac   : > { %4274 = vmatprep.subr.mxu1 %v2120_v9 }
 0x3ad   : > { %4275 = vmatpush3.msra.mxu1 %v2120_v9 }
 0x3ae   : > { %4276 = vmatprep.subr.mxu1 %v2119_v12 }
 0x3af   : > { %4277 = vmatpush3.msra.mxu1 %v2119_v12 }
 0x3b0   : > { %4279 = vmatmul.mubr.f32.vlgmr.msra.gmra.mxu1 %v2144_v13  ;;  %4316 = vmatprep.subr.mxu1 %v2272_v14  ;;  %v2291_v13 = vld [vmem:[#allocation9 + $0xf8] sm:$0xff] }
 0x3b1   : > { %4317 = vmatpush3.msra.mxu1 %v2272_v14  ;;  %v2290_v14 = vld [vmem:[#allocation9 + $0xf0] sm:$0xff]  ;;  %4281 = vmatprep.subr.mxu0 %v2291_v13 }
 0x3b2   : > { %4318 = vmatprep.subr.mxu1 %v2271_v15  ;;  %4282 = vmatpush3.msra.mxu0 %v2291_v13 }
 0x3b3   : > { %4319 = vmatpush3.msra.mxu1 %v2271_v15  ;;  %v2289_v15 = vld [vmem:[#allocation9 + $0xe8] sm:$0xff]  ;;  %4283 = vmatprep.subr.mxu0 %v2290_v14 }
 0x3b4   : > { %4320 = vmatprep.subr.mxu1 %v2270_v16  ;;  %4284 = vmatpush3.msra.mxu0 %v2290_v14  ;;  %v2576_v14 = vld [vmem:[#allocation9 + $0x1c0] sm:$0xff] }
 0x3b5   : > { %4321 = vmatpush3.msra.mxu1 %v2270_v16  ;;  %v2288_v16 = vld [vmem:[#allocation9 + $0xe0] sm:$0xff]  ;;  %4285 = vmatprep.subr.mxu0 %v2289_v15 }
 0x3b6   : > { %4322 = vmatprep.subr.mxu1 %v2269_v18  ;;  %4286 = vmatpush3.msra.mxu0 %v2289_v15 }
 0x3b7   : > { %4323 = vmatpush3.msra.mxu1 %v2269_v18  ;;  %v2287_v18 = vld [vmem:[#allocation9 + $0xd8] sm:$0xff]  ;;  %4287 = vmatprep.subr.mxu0 %v2288_v16 }
 0x3b8   : > { %4324 = vmatprep.subr.mxu1 %v2268_v23  ;;  %4288 = vmatpush3.msra.mxu0 %v2288_v16 }
 0x3b9   : > { %4325 = vmatpush3.msra.mxu1 %v2268_v23  ;;  %v2286_v23 = vld [vmem:[#allocation9 + $0xd0] sm:$0xff]  ;;  %4289 = vmatprep.subr.mxu0 %v2287_v18 }
 0x3ba   : > { %4326 = vmatprep.subr.mxu1 %v2267_v24  ;;  %4290 = vmatpush3.msra.mxu0 %v2287_v18  ;;  %v2575_v18 = vld [vmem:[#allocation9 + $0x1b8] sm:$0xff] }
 0x3bb   : > { %4327 = vmatpush3.msra.mxu1 %v2267_v24  ;;  %v2285_v24 = vld [vmem:[#allocation9 + $0xc8] sm:$0xff]  ;;  %4291 = vmatprep.subr.mxu0 %v2286_v23 }
 0x3bc   : > { %4328 = vmatprep.subr.mxu1 %v2266_v25  ;;  %4292 = vmatpush3.msra.mxu0 %v2286_v23 }
 0x3bd   : > { %4329 = vmatpush3.msra.mxu1 %v2266_v25  ;;  %v2284_v25 = vld [vmem:[#allocation9 + $0xc0] sm:$0xff]  ;;  %4293 = vmatprep.subr.mxu0 %v2285_v24 }
 0x3be   : > { %4330 = vmatprep.subr.mxu1 %v2265_v26  ;;  %4294 = vmatpush3.msra.mxu0 %v2285_v24 }
 0x3bf   : > { %4331 = vmatpush3.msra.mxu1 %v2265_v26  ;;  %v2283_v26 = vld [vmem:[#allocation9 + $0xb8] sm:$0xff]  ;;  %4295 = vmatprep.subr.mxu0 %v2284_v25 }
 0x3c0   : > { %4332 = vmatprep.subr.mxu1 %v2264_v43  ;;  %4296 = vmatpush3.msra.mxu0 %v2284_v25 }
 0x3c1   : > { %4333 = vmatpush3.msra.mxu1 %v2264_v43  ;;  %v2282_v43 = vld [vmem:[#allocation9 + $0xb0] sm:$0xff]  ;;  %4297 = vmatprep.subr.mxu0 %v2283_v26 }
 0x3c2   : > { %4334 = vmatprep.subr.mxu1 %v2263_v27  ;;  %4298 = vmatpush3.msra.mxu0 %v2283_v26  ;;  %v2574_v26 = vld [vmem:[#allocation9 + $0x1b0] sm:$0xff] }
 0x3c3   : > { %4335 = vmatpush3.msra.mxu1 %v2263_v27  ;;  %v2281_v27 = vld [vmem:[#allocation9 + $0xa8] sm:$0xff]  ;;  %4299 = vmatprep.subr.mxu0 %v2282_v43 }
 0x3c4   : > { %4336 = vmatprep.subr.mxu1 %v2262_v28  ;;  %4300 = vmatpush3.msra.mxu0 %v2282_v43 }
 0x3c5   : > { %4337 = vmatpush3.msra.mxu1 %v2262_v28  ;;  %v2280_v28 = vld [vmem:[#allocation9 + $0xa0] sm:$0xff]  ;;  %4301 = vmatprep.subr.mxu0 %v2281_v27 }
 0x3c6   : > { %4338 = vmatprep.subr.mxu1 %v2261_v29  ;;  %4302 = vmatpush3.msra.mxu0 %v2281_v27  ;;  %v2573_v27 = vld [vmem:[#allocation9 + $0x1a8] sm:$0xff] }
 0x3c7   : > { %4339 = vmatpush3.msra.mxu1 %v2261_v29  ;;  %v2279_v29 = vld [vmem:[#allocation9 + $0x98] sm:$0xff]  ;;  %4303 = vmatprep.subr.mxu0 %v2280_v28 }
 0x3c8   : > { %4340 = vmatprep.subr.mxu1 %v2260_v57  ;;  %4304 = vmatpush3.msra.mxu0 %v2280_v28  ;;  %v2572_v28 = vld [vmem:[#allocation9 + $0x1a0] sm:$0xff] }
 0x3c9   : > { %4341 = vmatpush3.msra.mxu1 %v2260_v57  ;;  %4305 = vmatprep.subr.mxu0 %v2279_v29 }
 0x3ca   : > { %4342 = vmatprep.subr.mxu1 %v2259_v59  ;;  %4306 = vmatpush3.msra.mxu0 %v2279_v29  ;;  %v2571_v29 = vld [vmem:[#allocation9 + $0x198] sm:$0xff] }
 0x3cb   : > { %4343 = vmatpush3.msra.mxu1 %v2259_v59 }
 0x3cc   : > { %4344 = vmatprep.subr.mxu1 %v2258_v2 }
 0x3cd   : > { %4345 = vmatpush3.msra.mxu1 %v2258_v2 }
 0x3ce   : > { %4346 = vmatprep.subr.mxu1 %v2257_v3 }
 0x3cf   : > { %4347 = vmatpush3.msra.mxu1 %v2257_v3 }
 0x3d0   : > { %4386 = vmatprep.subr.mxu1 %v5145_v8 }
 0x3ef   : > { %v4000_v30 = vpop.f32.mrf.mxu1 }
 0x3f0   : > { %v1436_v34 = vadd.f32 %v4035_v32, %v4000_v30  ;;  %v2278_v30 = vld [vmem:[#allocation9 + $0x90] sm:$0xff]  ;;  %v2276_v32 = vld [vmem:[#allocation9 + $0x80] sm:$0xff] }
 0x3f1   : > { %v1355_v31 = vpop.f32.mrf.mxu1  ;;  %4307 = vmatprep.subr.mxu0 %v2278_v30 }
 0x3f2   : > { %v1431_v37 = vadd.f32 %v1430_v35, %v1355_v31  ;;  %v2277_v31 = vld [vmem:[#allocation9 + $0x88] sm:$0xff]  ;;  %4308 = vmatpush3.msra.mxu0 %v2278_v30  ;;  %v2570_v30 = vld [vmem:[#allocation9 + $0x190] sm:$0xff] }
 0x3f3   : > { %4309 = vmatprep.subr.mxu0 %v2277_v31 }
 0x3f4   : > { %4310 = vmatpush3.msra.mxu0 %v2277_v31 }
 0x3f5   : > { %4311 = vmatprep.subr.mxu0 %v2276_v32 }
 0x3f6   : > { %4312 = vmatpush3.msra.mxu0 %v2276_v32  ;;  %v2569_v32 = vld [vmem:[#allocation9 + $0x188] sm:$0xff] }
 0x3fb   : > { %v4175_v47 = vpop.f32.mrf.mxu0 }
 0x3fd   : > { %v1877_v51 = vpop.f32.mrf.mxu0 }
 0x40f   : > { %v4070_v33 = vpop.f32.mrf.mxu1 }
 0x410   : > { %v1545_v20 = vadd.f32 %v4070_v33, %v1436_v34  ;;  %v5152_v33 = vld [vmem:[#allocation9 + $0x178] sm:$0xff] }
 0x411   : > { %v1535_v36 = vpop.f32.mrf.mxu1  ;;  %4351 = vmatprep.subr.mxu0 %v5152_v33 }
 0x412   : > { %v1544_v40 = vadd.f32 %v1535_v36, %v1431_v37  ;;  %v1653_v41 = vadd.f32 %v4105_v38, %v1545_v20  ;;  %v2582_v37 = vld [vmem:[#allocation9 + $0x1f0] sm:$0xff] }
 0x414   : > { %v1652_v46 = vadd.f32 %v1643_v42, %v1544_v40 }
 0x41d   : > { %v4245_v55 = vpop.f32.mrf.mxu0 }
 0x41f   : > { %v2107_v60 = vpop.f32.mrf.mxu0 }
 0x430   : > { %v4140_v39 = vpop.f32.mrf.mxu1 }
 0x431   : > { %v1781_v45 = vadd.f32 %v4140_v39, %v1653_v41 }
 0x432   : > { %v1771_v44 = vpop.f32.mrf.mxu1 }
 0x433   : > { %v1780_v49 = vadd.f32 %v1771_v44, %v1652_v46  ;;  %v1887_v50 = vadd.f32 %v4175_v47, %v1781_v45 }
 0x435   : > { %v1886_v54 = vadd.f32 %v1877_v51, %v1780_v49  ;;  %v2581_v51 = vld [vmem:[#allocation9 + $0x1e8] sm:$0xff] }
 0x450   : > { %v4210_v48 = vpop.f32.mrf.mxu1 }
 0x451   : > { %v1993_v53 = vadd.f32 %v4210_v48, %v1887_v50 }
 0x452   : > { %v1983_v52 = vpop.f32.mrf.mxu1 }
 0x453   : > { %v1992_v56 = vadd.f32 %v1983_v52, %v1886_v54  ;;  %v2117_v58 = vadd.f32 %v4245_v55, %v1993_v53 }
 0x455   : > { %v2116_v17 = vadd.f32 %v2107_v60, %v1992_v56  ;;  %v2580_v56 = vld [vmem:[#allocation9 + $0x1e0] sm:$0xff] }
 0x470   : > { %v4280_v61 = vpop.f32.mrf.mxu1 }
 0x471   : > { %v2223_v63 = vadd.f32 %v4280_v61, %v2117_v58  ;;  %v2579_v61 = vld [vmem:[#allocation9 + $0x1d8] sm:$0xff] }
 0x472   : > { %v2213_v1 = vpop.f32.mrf.mxu1 }
 0x473   : > { %v2232_v4 = vadd.f32 %v3375_v62, %v2223_v63  ;;  %v2222_v5 = vadd.f32 %v2213_v1, %v2116_v17 }
 0x475   : > { %v2234_v6 = vmax.f32 %v2232_v4, 0.0  ;;  %v2231_v7 = vadd.f32 %v3375_v62, %v2222_v5  ;;  %v2578_v5 = vld [vmem:[#allocation9 + $0x1d0] sm:$0xff] }
 0x477   : > { %v2233_v9 = vmax.f32 %v2231_v7, 0.0  ;;  %v2238_v10 = vrot.slane %v2234_v6, 7 }
 0x479   : > { %v2237_v11 = vrot.slane %v2233_v9, 7 }
 0x47b   : > { %2240 = vrot.lane.b32.xlu1 %v2237_v11, %s4866_s10  ;;  %v2239_v12 = vsel %vm1210_vm6, %v2237_v11, %v2238_v10  ;;  %v2577_v11 = vld [vmem:[#allocation9 + $0x1c8] sm:$0xff] }
 0x47c   : > { %2242 = vrot.lane.b32.xlu0 %v2239_v12, %s4866_s10 }
 0x47f   : > { %2244 = vrot.lane.b32.xlu1 %v2238_v10, %s4866_s10 }
 0x4ed   : > { %v2241_v34 = vpop.permute.xlu1 %2240 }
 0x4ee   : > { %2249 = vst.msk [vmem:[#allocation4] sm:$0xfe] %vm1223_vm7, %v2241_v34  ;;  %v2243_v35 = vpop.permute.xlu0 %2242 }
 0x4ef   : > { %2250 = vst.msk [vmem:[#allocation4 + $0x8] sm:$0xfe] %vm1225_vm8, %v2241_v34  ;;  %v2568_v34 = vld [vmem:[#allocation9 + $0x180] sm:$0xff] }
 0x4f0   : > { %2251 = vst.msk [vmem:[#allocation4 + $0x10] sm:$0xff] %vm1227_vm9, %v2243_v35 }
 0x4f1   : > { %2252 = vst.msk [vmem:[#allocation4 + $0x18] sm:$0xff] %vm1229_vm10, %v2243_v35  ;;  %v2245_v36 = vpop.permute.xlu1 %2244 }
 0x4f2   : > { %2253 = vst.msk [vmem:[#allocation4 + $0x20] sm:$0x1] %vm1231_vm11, %v2245_v36 }
 0x4f3   : > { %2254 = vst.msk [vmem:[#allocation4 + $0x28] sm:$0x1] %vm1233_vm12, %v2245_v36  ;;  %v2815_v36 = vld [vmem:[#allocation9 + $0x2f8] sm:$0xff] }
 0x4f5   : > { %v2255_v20 = vld [vmem:[#allocation4] sm:$0xff] }
 0x4f6   : > { %v2273_v38 = vld [vmem:[#allocation4 + $0x8] sm:$0xff]  ;;  %v2564_v39 = vld [vmem:[#allocation4] sm:$0xfe]  ;;  %4348 = vmatprep.mubr.f32.mxu1 %v2255_v20 }
 0x4f7   : > { %v2256_v40 = vld [vmem:[#allocation4 + $0x10] sm:$0xff]  ;;  %v4703_v41 = vpack.i.bf16 %v2273_v38, %v2255_v20  ;;  %v2587_v44 = vrot.slane %v2564_v39, 1  ;;  %v2671_v45 = vld [vmem:[#allocation4] sm:$0xfe]  ;;  %v2672_v48 = vld [vmem:[#allocation4 + $0x8] sm:$0xfe] }
 0x4f8   : > { %v5161_v42 = vld [vmem:[#allocation4 + $0x18] sm:$0xff]  ;;  %4349 = vmatmul.mubr.f32.vlgmr.msra.gmra.mxu1 %v2256_v40  ;;  %v5164_v47 = vrot.slane %v2256_v40, 1  ;;  %v2700_v49 = vrot.slane %v2671_v45, 1  ;;  %v2703_v52 = vrot.slane %v2672_v48, 1  ;;  %v3010_v17 = vld [vmem:[#allocation4] sm:$0xfc] }
 0x4f9   : > { %v4708_v46 = vpack.i.bf16 %v5161_v42, %v2256_v40  ;;  %v2704_v50 = vrot.slane %v5161_v42, 1  ;;  %4387 = vmatpush3.msra.mxu1 %v5145_v8  ;;  %4704 = vrot.lane.b32.xlu0 %v4703_v41, %s4864_s29  ;;  %v2675_v54 = vld [vmem:[#allocation4 + $0x20] sm:$0x1]  ;;  %v3011_v1 = vld [vmem:[#allocation4 + $0x8] sm:$0xfc]  ;;  %v5180_v6 = vrot.slane %v2256_v40, 2 }
 0x4fa   : > { %4388 = vmatprep.subr.mxu1 %v2582_v37  ;;  %v2589_v53 = vsel %vm1569_vm13, %v2587_v44, %v5164_v47  ;;  %v2676_v55 = vld [vmem:[#allocation4 + $0x28] sm:$0x1]  ;;  %v2706_v57 = vrot.slane %v2675_v54, 1  ;;  %v2702_v59 = vsel %vm1569_vm13, %v2700_v49, %v5164_v47  ;;  %v3012_v2 = vld [vmem:[#allocation4 + $0x20] sm:$0x3]  ;;  %v3035_v8 = vrot.slane %v3010_v17, 2 }
 0x4fb   : > { %4709 = vrot.lane.b32.xlu1 %v4708_v46, %s4864_s29  ;;  %4389 = vmatpush3.msra.mxu1 %v2582_v37  ;;  %v2708_v58 = vrot.slane %v2676_v55, 1  ;;  %v2705_v60 = vsel %vm1569_vm13, %v2703_v52, %v2704_v50  ;;  %v3013_v3 = vld [vmem:[#allocation4 + $0x28] sm:$0x3]  ;;  %v3038_v9 = vrot.slane %v3011_v1, 2  ;;  %v3039_v10 = vrot.slane %v5161_v42, 2  ;;  %v2814_v20 = vld [vmem:[#allocation9 + $0x2f0] sm:$0xff] }
 0x4fc   : > { %4418 = vmatprep.mubr.f32.mxu1 %v2589_v53  ;;  %4390 = vmatprep.subr.mxu1 %v2581_v51  ;;  %v2707_v62 = vsel %vm1569_vm13, %v5164_v47, %v2706_v57  ;;  %v4723_v4 = vpack.i.bf16 %v2705_v60, %v2702_v59  ;;  %v3041_v12 = vrot.slane %v3012_v2, 2  ;;  %v3043_v13 = vrot.slane %v3013_v3, 2  ;;  %v2566_v31 = vld [vmem:[#allocation4 + $0x20] sm:$0x1]  ;;  %v2813_v38 = vld [vmem:[#allocation9 + $0x2e8] sm:$0xff]  ;;  %v2812_v39 = vld [vmem:[#allocation9 + $0x2e0] sm:$0xff] }
 0x4fd   : > { %4391 = vmatpush3.msra.mxu1 %v2581_v51  ;;  %4714 = vrot.lane.b32.xlu0 %v4703_v41, %s4867_s11  ;;  %v2709_v63 = vsel %vm1569_vm13, %v2704_v50, %v2708_v58  ;;  %v3037_v15 = vsel %vm1909_vm14, %v3035_v8, %v5180_v6  ;;  %v3040_v16 = vsel %vm1909_vm14, %v3038_v9, %v3039_v10  ;;  %v2590_v35 = vrot.slane %v2566_v31, 1  ;;  %v2811_v40 = vld [vmem:[#allocation9 + $0x2d8] sm:$0xff]  ;;  %v2810_v41 = vld [vmem:[#allocation9 + $0x2d0] sm:$0xff]  ;;  %v2809_v42 = vld [vmem:[#allocation9 + $0x2c8] sm:$0xff] }
 0x4fe   : > { %4392 = vmatprep.subr.mxu1 %v2580_v56  ;;  %v4728_v7 = vpack.i.bf16 %v2709_v63, %v2707_v62  ;;  %v3042_v23 = vsel %vm1909_vm14, %v5180_v6, %v3041_v12  ;;  %v3044_v24 = vsel %vm1909_vm14, %v3039_v10, %v3043_v13  ;;  %v4743_v25 = vpack.i.bf16 %v3040_v16, %v3037_v15  ;;  %v2808_v44 = vld [vmem:[#allocation9 + $0x2c0] sm:$0xff]  ;;  %v2807_v45 = vld [vmem:[#allocation9 + $0x2b8] sm:$0xff]  ;;  %v2802_v50 = vld [vmem:[#allocation9 + $0x290] sm:$0xff] }
 0x4ff   : > { %4719 = vrot.lane.b32.xlu1 %v4708_v46, %s4867_s11  ;;  %4393 = vmatpush3.msra.mxu1 %v2580_v56  ;;  %v4748_v43 = vpack.i.bf16 %v3044_v24, %v3042_v23  ;;  %v2591_v37 = vsel %vm1569_vm13, %v5164_v47, %v2590_v35  ;;  %v2806_v46 = vld [vmem:[#allocation9 + $0x2b0] sm:$0xff]  ;;  %v2805_v47 = vld [vmem:[#allocation9 + $0x2a8] sm:$0xff]  ;;  %v2804_v48 = vld [vmem:[#allocation9 + $0x2a0] sm:$0xff] }
 0x500   : > { %4394 = vmatprep.subr.mxu1 %v2579_v61  ;;  %v2803_v49 = vld [vmem:[#allocation9 + $0x298] sm:$0xff]  ;;  %v2801_v51 = vld [vmem:[#allocation9 + $0x288] sm:$0xff]  ;;  %v2800_v52 = vld [vmem:[#allocation9 + $0x280] sm:$0xff] }
 0x501   : > { %4395 = vmatpush3.msra.mxu1 %v2579_v61  ;;  %4724 = vrot.lane.b32.xlu0 %v4723_v4, %s4864_s29  ;;  %v3030_v53 = vld [vmem:[#allocation9 + $0x3f8] sm:$0xff]  ;;  %v2473_v63 = vld [vmem:[#allocation9 + $0x170] sm:$0xff]  ;;  %v2472_v3 = vld [vmem:[#allocation9 + $0x168] sm:$0xff] }
 0x502   : > { %4396 = vmatprep.subr.mxu1 %v2578_v5  ;;  %v2470_v9 = vld [vmem:[#allocation9 + $0x158] sm:$0xff]  ;;  %v2468_v16 = vld [vmem:[#allocation9 + $0x148] sm:$0xff]  ;;  %v2465_v31 = vld [vmem:[#allocation9 + $0x130] sm:$0xff] }
 0x503   : > { %4729 = vrot.lane.b32.xlu1 %v4728_v7, %s4864_s29  ;;  %4397 = vmatpush3.msra.mxu1 %v2578_v5  ;;  %v3026_v35 = vld [vmem:[#allocation9 + $0x3d8] sm:$0xff] }
 0x504   : > { %4398 = vmatprep.subr.mxu1 %v2577_v11 }
 0x505   : > { %4399 = vmatpush3.msra.mxu1 %v2577_v11  ;;  %4734 = vrot.lane.b32.xlu0 %v4723_v4, %s4867_s11  ;;  %v2469_v11 = vld [vmem:[#allocation9 + $0x150] sm:$0xff] }
 0x506   : > { %4400 = vmatprep.subr.mxu1 %v2576_v14 }
 0x507   : > { %4739 = vrot.lane.b32.xlu1 %v4728_v7, %s4867_s11  ;;  %4401 = vmatpush3.msra.mxu1 %v2576_v14  ;;  %v2471_v7 = vld [vmem:[#allocation9 + $0x160] sm:$0xff] }
 0x508   : > { %4402 = vmatprep.subr.mxu1 %v2575_v18 }
 0x509   : > { %4403 = vmatpush3.msra.mxu1 %v2575_v18  ;;  %4744 = vrot.lane.b32.xlu0 %v4743_v25, %s4864_s29 }
 0x50a   : > { %4404 = vmatprep.subr.mxu1 %v2574_v26 }
 0x50b   : > { %4749 = vrot.lane.b32.xlu1 %v4748_v43, %s4864_s29  ;;  %4405 = vmatpush3.msra.mxu1 %v2574_v26  ;;  %v3029_v26 = vld [vmem:[#allocation9 + $0x3f0] sm:$0xff] }
 0x50c   : > { %4406 = vmatprep.subr.mxu1 %v2573_v27 }
 0x50d   : > { %4407 = vmatpush3.msra.mxu1 %v2573_v27  ;;  %4754 = vrot.lane.b32.xlu0 %v4743_v25, %s4867_s11  ;;  %v2467_v25 = vld [vmem:[#allocation9 + $0x140] sm:$0xff] }
 0x50e   : > { %4408 = vmatprep.subr.mxu1 %v2572_v28 }
 0x50f   : > { %4759 = vrot.lane.b32.xlu1 %v4748_v43, %s4867_s11  ;;  %4409 = vmatpush3.msra.mxu1 %v2572_v28  ;;  %v2466_v28 = vld [vmem:[#allocation9 + $0x138] sm:$0xff] }
 0x510   : > { %4410 = vmatprep.subr.mxu1 %v2571_v29 }
 0x511   : > { %4411 = vmatpush3.msra.mxu1 %v2571_v29  ;;  %v3028_v29 = vld [vmem:[#allocation9 + $0x3e8] sm:$0xff] }
 0x512   : > { %4412 = vmatprep.subr.mxu1 %v2570_v30 }
 0x513   : > { %4413 = vmatpush3.msra.mxu1 %v2570_v30 }
 0x514   : > { %4414 = vmatprep.subr.mxu1 %v2569_v32 }
 0x515   : > { %4415 = vmatpush3.msra.mxu1 %v2569_v32  ;;  %v3027_v32 = vld [vmem:[#allocation9 + $0x3e0] sm:$0xff] }
 0x516   : > { %4416 = vmatprep.subr.mxu1 %v2568_v34 }
 0x517   : > { %4417 = vmatpush3.msra.mxu1 %v2568_v34  ;;  %v2464_v34 = vld [vmem:[#allocation9 + $0x128] sm:$0xff] }
 0x518   : > { %4419 = vmatmul.mubr.f32.vlgmr.msra.gmra.mxu1 %v2591_v37  ;;  %4456 = vmatprep.subr.mxu1 %v2815_v36  ;;  %v3025_v37 = vld [vmem:[#allocation9 + $0x3d0] sm:$0xff] }
 0x519   : > { %4457 = vmatpush3.msra.mxu1 %v2815_v36  ;;  %v2463_v36 = vld [vmem:[#allocation9 + $0x120] sm:$0xff] }
 0x51a   : > { %4458 = vmatprep.subr.mxu1 %v2814_v20 }
 0x51b   : > { %4459 = vmatpush3.msra.mxu1 %v2814_v20  ;;  %v2462_v20 = vld [vmem:[#allocation9 + $0x118] sm:$0xff] }
 0x51c   : > { %4460 = vmatprep.subr.mxu1 %v2813_v38 }
 0x51d   : > { %4461 = vmatpush3.msra.mxu1 %v2813_v38  ;;  %v3024_v38 = vld [vmem:[#allocation9 + $0x3c8] sm:$0xff] }
 0x51e   : > { %4462 = vmatprep.subr.mxu1 %v2812_v39 }
 0x51f   : > { %4463 = vmatpush3.msra.mxu1 %v2812_v39  ;;  %v2461_v39 = vld [vmem:[#allocation9 + $0x110] sm:$0xff] }
 0x520   : > { %4464 = vmatprep.subr.mxu1 %v2811_v40 }
 0x521   : > { %4465 = vmatpush3.msra.mxu1 %v2811_v40  ;;  %v3023_v40 = vld [vmem:[#allocation9 + $0x3c0] sm:$0xff] }
 0x522   : > { %4466 = vmatprep.subr.mxu1 %v2810_v41 }
 0x523   : > { %4467 = vmatpush3.msra.mxu1 %v2810_v41  ;;  %v2460_v41 = vld [vmem:[#allocation9 + $0x108] sm:$0xff] }
 0x524   : > { %4468 = vmatprep.subr.mxu1 %v2809_v42 }
 0x525   : > { %4469 = vmatpush3.msra.mxu1 %v2809_v42  ;;  %v3022_v42 = vld [vmem:[#allocation9 + $0x3b8] sm:$0xff] }
 0x526   : > { %4470 = vmatprep.subr.mxu1 %v2808_v44 }
 0x527   : > { %4471 = vmatpush3.msra.mxu1 %v2808_v44 }
 0x528   : > { %4472 = vmatprep.subr.mxu1 %v2807_v45 }
 0x529   : > { %4473 = vmatpush3.msra.mxu1 %v2807_v45 }
 0x52a   : > { %4474 = vmatprep.subr.mxu1 %v2806_v46 }
 0x52b   : > { %4475 = vmatpush3.msra.mxu1 %v2806_v46  ;;  %v2459_v46 = vld [vmem:[#allocation9 + $0x100] sm:$0xff] }
 0x52c   : > { %4476 = vmatprep.subr.mxu1 %v2805_v47 }
 0x52d   : > { %4477 = vmatpush3.msra.mxu1 %v2805_v47  ;;  %v3021_v47 = vld [vmem:[#allocation9 + $0x3b0] sm:$0xff] }
 0x52e   : > { %4478 = vmatprep.subr.mxu1 %v2804_v48 }
 0x52f   : > { %4479 = vmatpush3.msra.mxu1 %v2804_v48 }
 0x530   : > { %4480 = vmatprep.subr.mxu1 %v2803_v49 }
 0x531   : > { %4481 = vmatpush3.msra.mxu1 %v2803_v49 }
 0x532   : > { %4482 = vmatprep.subr.mxu1 %v2802_v50 }
 0x533   : > { %4483 = vmatpush3.msra.mxu1 %v2802_v50  ;;  %v2693_v50 = vld [vmem:[#allocation9 + $0x278] sm:$0xff] }
 0x534   : > { %4484 = vmatprep.subr.mxu1 %v2801_v51 }
 0x535   : > { %4485 = vmatpush3.msra.mxu1 %v2801_v51  ;;  %v3020_v51 = vld [vmem:[#allocation9 + $0x3a8] sm:$0xff] }
 0x536   : > { %4486 = vmatprep.subr.mxu1 %v2800_v52 }
 0x537   : > { %4487 = vmatpush3.msra.mxu1 %v2800_v52 }
 0x538   : > { %4526 = vmatprep.subr.mxu1 %v3030_v53 }
 0x56b   : > { %v4705_v54 = vpop.permute.xlu0 %4704 }
 0x56c   : > { %v4707_v55 = vunpack.i.h.bf16 %v4705_v54  ;;  %v4706_v56 = vunpack.i.l.bf16 %v4705_v54 }
 0x56d   : > { %v4710_v57 = vpop.permute.xlu1 %4709 }
 0x56e   : > { %v4712_v58 = vunpack.i.h.bf16 %v4710_v57  ;;  %v4711_v59 = vunpack.i.l.bf16 %v4710_v57  ;;  %v2304_v60 = vsel %vm1284_vm15, %v4706_v56, %v4707_v55  ;;  %v3019_v55 = vld [vmem:[#allocation9 + $0x3a0] sm:$0xff]  ;;  %v2691_v56 = vld [vmem:[#allocation9 + $0x268] sm:$0xff]  ;;  %v3018_v57 = vld [vmem:[#allocation9 + $0x398] sm:$0xff] }
 0x56f   : > { %v4715_v61 = vpop.permute.xlu0 %4714  ;;  %4313 = vmatprep.mubr.f32.mxu0 %v2304_v60 }
 0x570   : > { %v2305_v62 = vsel %vm1284_vm15, %v4711_v59, %v4712_v58  ;;  %v4717_v17 = vunpack.i.h.bf16 %v4715_v61  ;;  %v4716_v1 = vunpack.i.l.bf16 %v4715_v61  ;;  %v2690_v58 = vld [vmem:[#allocation9 + $0x260] sm:$0xff]  ;;  %v3017_v59 = vld [vmem:[#allocation9 + $0x390] sm:$0xff]  ;;  %v2689_v61 = vld [vmem:[#allocation9 + $0x258] sm:$0xff] }
 0x571   : > { %v5201_v2 = vpop.permute.xlu1 %4719  ;;  %4314 = vmatmul.mubr.f32.vlgmr.msra.gmra.mxu0 %v2305_v62  ;;  %v3016_v62 = vld [vmem:[#allocation9 + $0x388] sm:$0xff] }
 0x572   : > { %4352 = vmatpush3.msra.mxu0 %v5152_v33  ;;  %v2483_v4 = vsel %vm1464_vm0, %v4716_v1, %v4717_v17  ;;  %v4722_v44 = vunpack.i.h.bf16 %v5201_v2  ;;  %v4721_v45 = vunpack.i.l.bf16 %v5201_v2  ;;  %v3015_v2 = vld [vmem:[#allocation9 + $0x380] sm:$0xff] }
 0x573   : > { %4353 = vmatprep.subr.mxu0 %v2473_v63  ;;  %v5205_v5 = vpop.permute.xlu0 %4724  ;;  %4383 = vmatprep.mubr.f32.mxu0 %v2483_v4  ;;  %v2686_v4 = vld [vmem:[#allocation9 + $0x240] sm:$0xff] }
 0x574   : > { %4354 = vmatpush3.msra.mxu0 %v2473_v63  ;;  %v4727_v48 = vunpack.i.h.bf16 %v5205_v5  ;;  %v4726_v49 = vunpack.i.l.bf16 %v5205_v5  ;;  %v2484_v52 = vsel %vm1464_vm0, %v4721_v45, %v4722_v44  ;;  %v2688_v63 = vld [vmem:[#allocation9 + $0x250] sm:$0xff] }
 0x575   : > { %4355 = vmatprep.subr.mxu0 %v2472_v3  ;;  %v5207_v8 = vpop.permute.xlu1 %4729 }
 0x576   : > { %4356 = vmatpush3.msra.mxu0 %v2472_v3  ;;  %v2718_v54 = vsel %vm1284_vm15, %v4726_v49, %v4727_v48  ;;  %v2687_v3 = vld [vmem:[#allocation9 + $0x248] sm:$0xff]  ;;  %v3149_v48 = vld [vmem:[#allocation9 + $0x470] sm:$0xff] }
 0x577   : > { %4357 = vmatprep.subr.mxu0 %v2471_v7  ;;  %v4735_v10 = vpop.permute.xlu0 %4734 }
 0x578   : > { %4358 = vmatpush3.msra.mxu0 %v2471_v7  ;;  %v4737_v12 = vunpack.i.h.bf16 %v4735_v10  ;;  %v4736_v33 = vunpack.i.l.bf16 %v4735_v10  ;;  %v2685_v7 = vld [vmem:[#allocation9 + $0x238] sm:$0xff]  ;;  %v2683_v10 = vld [vmem:[#allocation9 + $0x228] sm:$0xff] }
 0x579   : > { %4359 = vmatprep.subr.mxu0 %v2470_v9  ;;  %v4740_v13 = vpop.permute.xlu1 %4739 }
 0x57a   : > { %v4742_v14 = vunpack.i.h.bf16 %v4740_v13  ;;  %v4741_v15 = vunpack.i.l.bf16 %v4740_v13  ;;  %4360 = vmatpush3.msra.mxu0 %v2470_v9  ;;  %v2824_v18 = vsel %vm1464_vm0, %v4736_v33, %v4737_v12  ;;  %v2684_v9 = vld [vmem:[#allocation9 + $0x230] sm:$0xff]  ;;  %v2681_v12 = vld [vmem:[#allocation9 + $0x218] sm:$0xff]  ;;  %v2679_v13 = vld [vmem:[#allocation9 + $0x208] sm:$0xff] }
 0x57b   : > { %4361 = vmatprep.subr.mxu0 %v2469_v11  ;;  %v4745_v23 = vpop.permute.xlu0 %4744  ;;  %4488 = vmatprep.mubr.f32.mxu1 %v2824_v18  ;;  %v2680_v33 = vld [vmem:[#allocation9 + $0x210] sm:$0xff]  ;;  %v2678_v18 = vld [vmem:[#allocation9 + $0x200] sm:$0xff] }
 0x57c   : > { %4362 = vmatpush3.msra.mxu0 %v2469_v11  ;;  %v2825_v24 = vsel %vm1464_vm0, %v4741_v15, %v4742_v14  ;;  %v4747_v43 = vunpack.i.h.bf16 %v4745_v23  ;;  %v4746_v27 = vunpack.i.l.bf16 %v4745_v23  ;;  %v2682_v11 = vld [vmem:[#allocation9 + $0x220] sm:$0xff]  ;;  %v2905_v14 = vld [vmem:[#allocation4] sm:$0xfc]  ;;  %v4732_v15 = vunpack.i.h.bf16 %v5207_v8 }
 0x57d   : > { %4363 = vmatprep.subr.mxu0 %v2468_v16  ;;  %4489 = vmatmul.mubr.f32.vlgmr.msra.gmra.mxu1 %v2825_v24  ;;  %v4750_v60 = vpop.permute.xlu1 %4749  ;;  %v2926_v23 = vrot.slane %v2905_v14, 2  ;;  %v2923_v24 = vld [vmem:[#allocation9 + $0x378] sm:$0xff] }
 0x57e   : > { %4364 = vmatpush3.msra.mxu0 %v2468_v16  ;;  %4527 = vmatpush3.msra.mxu1 %v3030_v53  ;;  %v3053_v30 = vsel %vm1284_vm15, %v4746_v27, %v4747_v43  ;;  %v2692_v53 = vld [vmem:[#allocation9 + $0x270] sm:$0xff]  ;;  %v4752_v17 = vunpack.i.h.bf16 %v4750_v60  ;;  %v4751_v1 = vunpack.i.l.bf16 %v4750_v60  ;;  %v4731_v16 = vunpack.i.l.bf16 %v5207_v8  ;;  %v2921_v27 = vld [vmem:[#allocation9 + $0x368] sm:$0xff]  ;;  %v2920_v8 = vld [vmem:[#allocation9 + $0x360] sm:$0xff] }
 0x57f   : > { %4365 = vmatprep.subr.mxu0 %v2467_v25  ;;  %4528 = vmatprep.subr.mxu1 %v3029_v26  ;;  %v2928_v43 = vsel %vm1909_vm14, %v2926_v23, %v5180_v6  ;;  %v3137_v60 = vld [vmem:[#allocation9 + $0x410] sm:$0xff] }
 0x580   : > { %4366 = vmatpush3.msra.mxu0 %v2467_v25  ;;  %4529 = vmatpush3.msra.mxu1 %v3029_v26  ;;  %v3054_v5 = vsel %vm1284_vm15, %v4751_v1, %v4752_v17  ;;  %v2719_v25 = vsel %vm1284_vm15, %v4731_v16, %v4732_v15  ;;  %v2922_v26 = vld [vmem:[#allocation9 + $0x370] sm:$0xff]  ;;  %v3135_v1 = vld [vmem:[#allocation9 + $0x400] sm:$0xff] }
 0x581   : > { %4367 = vmatprep.subr.mxu0 %v2466_v28  ;;  %4530 = vmatprep.subr.mxu1 %v3028_v29 }
 0x582   : > { %4558 = vmatprep.mubr.f32.mxu1 %v3053_v30  ;;  %4368 = vmatpush3.msra.mxu0 %v2466_v28  ;;  %v2919_v28 = vld [vmem:[#allocation9 + $0x358] sm:$0xff]  ;;  %v2917_v30 = vld [vmem:[#allocation9 + $0x348] sm:$0xff] }
 0x583   : > { %4531 = vmatpush3.msra.mxu1 %v3028_v29  ;;  %4369 = vmatprep.subr.mxu0 %v2465_v31  ;;  %v2918_v29 = vld [vmem:[#allocation9 + $0x350] sm:$0xff] }
 0x584   : > { %4532 = vmatprep.subr.mxu1 %v3027_v32  ;;  %4370 = vmatpush3.msra.mxu0 %v2465_v31  ;;  %v2916_v31 = vld [vmem:[#allocation9 + $0x340] sm:$0xff] }
 0x585   : > { %4533 = vmatpush3.msra.mxu1 %v3027_v32  ;;  %4371 = vmatprep.subr.mxu0 %v2464_v34  ;;  %v2915_v32 = vld [vmem:[#allocation9 + $0x338] sm:$0xff] }
 0x586   : > { %4534 = vmatprep.subr.mxu1 %v3026_v35  ;;  %4372 = vmatpush3.msra.mxu0 %v2464_v34  ;;  %v2914_v34 = vld [vmem:[#allocation9 + $0x330] sm:$0xff] }
 0x587   : > { %4535 = vmatpush3.msra.mxu1 %v3026_v35  ;;  %4373 = vmatprep.subr.mxu0 %v2463_v36  ;;  %v2913_v35 = vld [vmem:[#allocation9 + $0x328] sm:$0xff] }
 0x588   : > { %4536 = vmatprep.subr.mxu1 %v3025_v37  ;;  %4374 = vmatpush3.msra.mxu0 %v2463_v36  ;;  %v2912_v36 = vld [vmem:[#allocation9 + $0x320] sm:$0xff] }
 0x589   : > { %4537 = vmatpush3.msra.mxu1 %v3025_v37  ;;  %4375 = vmatprep.subr.mxu0 %v2462_v20  ;;  %v2911_v37 = vld [vmem:[#allocation9 + $0x318] sm:$0xff] }
 0x58a   : > { %4538 = vmatprep.subr.mxu1 %v3024_v38  ;;  %4376 = vmatpush3.msra.mxu0 %v2462_v20  ;;  %v2910_v20 = vld [vmem:[#allocation9 + $0x310] sm:$0xff] }
 0x58b   : > { %4539 = vmatpush3.msra.mxu1 %v3024_v38  ;;  %4377 = vmatprep.subr.mxu0 %v2461_v39  ;;  %v2906_v38 = vld [vmem:[#allocation4 + $0x20] sm:$0x3] }
 0x58c   : > { %4540 = vmatprep.subr.mxu1 %v3023_v40  ;;  %4378 = vmatpush3.msra.mxu0 %v2461_v39  ;;  %v4755_v39 = vpop.permute.xlu0 %4754 }
 0x58d   : > { %4541 = vmatpush3.msra.mxu1 %v3023_v40  ;;  %4379 = vmatprep.subr.mxu0 %v2460_v41  ;;  %v2909_v40 = vld [vmem:[#allocation9 + $0x308] sm:$0xff]  ;;  %v4757_v44 = vunpack.i.h.bf16 %v4755_v39  ;;  %v4756_v45 = vunpack.i.l.bf16 %v4755_v39 }
 0x58e   : > { %4542 = vmatprep.subr.mxu1 %v3022_v42  ;;  %4380 = vmatpush3.msra.mxu0 %v2460_v41  ;;  %v2908_v41 = vld [vmem:[#allocation9 + $0x300] sm:$0xff] }
 0x58f   : > { %4543 = vmatpush3.msra.mxu1 %v3022_v42  ;;  %4381 = vmatprep.subr.mxu0 %v2459_v46  ;;  %v2929_v42 = vrot.slane %v2906_v38, 2  ;;  %v3159_v49 = vsel %vm1464_vm0, %v4756_v45, %v4757_v44 }
 0x590   : > { %4544 = vmatprep.subr.mxu1 %v3021_v47  ;;  %4382 = vmatpush3.msra.mxu0 %v2459_v46  ;;  %v3150_v46 = vld [vmem:[#allocation9 + $0x478] sm:$0xff] }
 0x591   : > { %4545 = vmatpush3.msra.mxu1 %v3021_v47  ;;  %4384 = vmatmul.mubr.f32.vlgmr.msra.gmra.mxu0 %v2484_v52  ;;  %v2930_v47 = vsel %vm1909_vm14, %v5180_v6, %v2929_v42  ;;  %v3146_v52 = vld [vmem:[#allocation9 + $0x458] sm:$0xff]  ;;  %v3144_v6 = vld [vmem:[#allocation9 + $0x448] sm:$0xff] }
 0x592   : > { %4421 = vmatprep.subr.mxu0 %v2693_v50  ;;  %4546 = vmatprep.subr.mxu1 %v3020_v51 }
 0x593   : > { %4422 = vmatpush3.msra.mxu0 %v2693_v50  ;;  %4453 = vmatprep.mubr.f32.mxu0 %v2718_v54  ;;  %v3148_v50 = vld [vmem:[#allocation9 + $0x468] sm:$0xff]  ;;  %v3143_v54 = vld [vmem:[#allocation9 + $0x440] sm:$0xff] }
 0x594   : > { %4547 = vmatpush3.msra.mxu1 %v3020_v51  ;;  %4423 = vmatprep.subr.mxu0 %v2692_v53  ;;  %v3147_v51 = vld [vmem:[#allocation9 + $0x460] sm:$0xff] }
 0x595   : > { %4548 = vmatprep.subr.mxu1 %v3019_v55  ;;  %4424 = vmatpush3.msra.mxu0 %v2692_v53  ;;  %v3145_v53 = vld [vmem:[#allocation9 + $0x450] sm:$0xff] }
 0x596   : > { %4549 = vmatpush3.msra.mxu1 %v3019_v55  ;;  %4425 = vmatprep.subr.mxu0 %v2691_v56  ;;  %v3142_v55 = vld [vmem:[#allocation9 + $0x438] sm:$0xff] }
 0x597   : > { %4550 = vmatprep.subr.mxu1 %v3018_v57  ;;  %4426 = vmatpush3.msra.mxu0 %v2691_v56  ;;  %v3141_v56 = vld [vmem:[#allocation9 + $0x430] sm:$0xff] }
 0x598   : > { %4551 = vmatpush3.msra.mxu1 %v3018_v57  ;;  %4427 = vmatprep.subr.mxu0 %v2690_v58  ;;  %v3140_v57 = vld [vmem:[#allocation9 + $0x428] sm:$0xff] }
 0x599   : > { %4552 = vmatprep.subr.mxu1 %v3017_v59  ;;  %4428 = vmatpush3.msra.mxu0 %v2690_v58  ;;  %v3139_v58 = vld [vmem:[#allocation9 + $0x420] sm:$0xff] }
 0x59a   : > { %4553 = vmatpush3.msra.mxu1 %v3017_v59  ;;  %4429 = vmatprep.subr.mxu0 %v2689_v61  ;;  %v3138_v59 = vld [vmem:[#allocation9 + $0x418] sm:$0xff] }
 0x59b   : > { %4554 = vmatprep.subr.mxu1 %v3016_v62  ;;  %4430 = vmatpush3.msra.mxu0 %v2689_v61  ;;  %v4760_v61 = vpop.permute.xlu1 %4759 }
 0x59c   : > { %4555 = vmatpush3.msra.mxu1 %v3016_v62  ;;  %4431 = vmatprep.subr.mxu0 %v2688_v63  ;;  %v3136_v62 = vld [vmem:[#allocation9 + $0x408] sm:$0xff]  ;;  %v4761_v17 = vunpack.i.l.bf16 %v4760_v61 }
 0x59d   : > { %4556 = vmatprep.subr.mxu1 %v3015_v2  ;;  %4432 = vmatpush3.msra.mxu0 %v2688_v63  ;;  %v4762_v63 = vunpack.i.h.bf16 %v4760_v61 }
 0x59e   : > { %4557 = vmatpush3.msra.mxu1 %v3015_v2  ;;  %4433 = vmatprep.subr.mxu0 %v2687_v3 }
 0x59f   : > { %4559 = vmatmul.mubr.f32.vlgmr.msra.gmra.mxu1 %v3054_v5  ;;  %4434 = vmatpush3.msra.mxu0 %v2687_v3  ;;  %v3160_v2 = vsel %vm1464_vm0, %v4761_v17, %v4762_v63 }
 0x5a0   : > { %4435 = vmatprep.subr.mxu0 %v2686_v4 }
 0x5a1   : > { %4436 = vmatpush3.msra.mxu0 %v2686_v4 }
 0x5a2   : > { %4437 = vmatprep.subr.mxu0 %v2685_v7 }
 0x5a3   : > { %4438 = vmatpush3.msra.mxu0 %v2685_v7 }
 0x5a4   : > { %4439 = vmatprep.subr.mxu0 %v2684_v9 }
 0x5a5   : > { %4440 = vmatpush3.msra.mxu0 %v2684_v9 }
 0x5a6   : > { %4441 = vmatprep.subr.mxu0 %v2683_v10 }
 0x5a7   : > { %4442 = vmatpush3.msra.mxu0 %v2683_v10 }
 0x5a8   : > { %4443 = vmatprep.subr.mxu0 %v2682_v11 }
 0x5a9   : > { %4444 = vmatpush3.msra.mxu0 %v2682_v11 }
 0x5aa   : > { %4445 = vmatprep.subr.mxu0 %v2681_v12 }
 0x5ab   : > { %4446 = vmatpush3.msra.mxu0 %v2681_v12 }
 0x5ac   : > { %4447 = vmatprep.subr.mxu0 %v2680_v33 }
 0x5ad   : > { %4448 = vmatpush3.msra.mxu0 %v2680_v33 }
 0x5ae   : > { %4449 = vmatprep.subr.mxu0 %v2679_v13 }
 0x5af   : > { %4450 = vmatpush3.msra.mxu0 %v2679_v13 }
 0x5b0   : > { %4451 = vmatprep.subr.mxu0 %v2678_v18 }
 0x5b1   : > { %4452 = vmatpush3.msra.mxu0 %v2678_v18 }
 0x5b2   : > { %4454 = vmatmul.mubr.f32.vlgmr.msra.gmra.mxu0 %v2719_v25  ;;  %4491 = vmatprep.subr.mxu0 %v2923_v24 }
 0x5b3   : > { %4492 = vmatpush3.msra.mxu0 %v2923_v24  ;;  %4523 = vmatprep.mubr.f32.mxu0 %v2928_v43 }
 0x5b4   : > { %4493 = vmatprep.subr.mxu0 %v2922_v26 }
 0x5b5   : > { %4494 = vmatpush3.msra.mxu0 %v2922_v26 }
 0x5b6   : > { %4495 = vmatprep.subr.mxu0 %v2921_v27 }
 0x5b7   : > { %4496 = vmatpush3.msra.mxu0 %v2921_v27 }
 0x5b8   : > { %4497 = vmatprep.subr.mxu0 %v2920_v8  ;;  %v4350_v5 = vpop.f32.mrf.mxu1 }
 0x5b9   : > { %4498 = vmatpush3.msra.mxu0 %v2920_v8 }
 0x5ba   : > { %4499 = vmatprep.subr.mxu0 %v2919_v28  ;;  %v2449_v10 = vpop.f32.mrf.mxu1 }
 0x5bb   : > { %4500 = vmatpush3.msra.mxu0 %v2919_v28 }
 0x5bc   : > { %4501 = vmatprep.subr.mxu0 %v2918_v29 }
 0x5bd   : > { %4502 = vmatpush3.msra.mxu0 %v2918_v29 }
 0x5be   : > { %4503 = vmatprep.subr.mxu0 %v2917_v30 }
 0x5bf   : > { %4504 = vmatpush3.msra.mxu0 %v2917_v30 }
 0x5c0   : > { %4505 = vmatprep.subr.mxu0 %v2916_v31 }
 0x5c1   : > { %4506 = vmatpush3.msra.mxu0 %v2916_v31 }
 0x5c2   : > { %4507 = vmatprep.subr.mxu0 %v2915_v32 }
 0x5c3   : > { %4508 = vmatpush3.msra.mxu0 %v2915_v32 }
 0x5c4   : > { %4509 = vmatprep.subr.mxu0 %v2914_v34 }
 0x5c5   : > { %4510 = vmatpush3.msra.mxu0 %v2914_v34 }
 0x5c6   : > { %4511 = vmatprep.subr.mxu0 %v2913_v35 }
 0x5c7   : > { %4512 = vmatpush3.msra.mxu0 %v2913_v35 }
 0x5c8   : > { %4513 = vmatprep.subr.mxu0 %v2912_v36 }
 0x5c9   : > { %4514 = vmatpush3.msra.mxu0 %v2912_v36 }
 0x5ca   : > { %4515 = vmatprep.subr.mxu0 %v2911_v37 }
 0x5cb   : > { %4516 = vmatpush3.msra.mxu0 %v2911_v37 }
 0x5cc   : > { %4517 = vmatprep.subr.mxu0 %v2910_v20 }
 0x5cd   : > { %4518 = vmatpush3.msra.mxu0 %v2910_v20  ;;  %v3376_v20 = vld [vmem:[%s5249_s6] ss:$0 sm:$0xff] }
 0x5ce   : > { %4519 = vmatprep.subr.mxu0 %v2909_v40 }
 0x5cf   : > { %4520 = vmatpush3.msra.mxu0 %v2909_v40 }
 0x5d0   : > { %4521 = vmatprep.subr.mxu0 %v2908_v41 }
 0x5d1   : > { %4522 = vmatpush3.msra.mxu0 %v2908_v41 }
 0x5d2   : > { %4524 = vmatmul.mubr.f32.vlgmr.msra.gmra.mxu0 %v2930_v47  ;;  %4561 = vmatprep.subr.mxu0 %v3150_v46 }
 0x5d3   : > { %4562 = vmatpush3.msra.mxu0 %v3150_v46  ;;  %4593 = vmatprep.mubr.f32.mxu0 %v3159_v49 }
 0x5d4   : > { %4563 = vmatprep.subr.mxu0 %v3149_v48 }
 0x5d5   : > { %4564 = vmatpush3.msra.mxu0 %v3149_v48 }
 0x5d6   : > { %4565 = vmatprep.subr.mxu0 %v3148_v50 }
 0x5d7   : > { %4566 = vmatpush3.msra.mxu0 %v3148_v50 }
 0x5d8   : > { %4567 = vmatprep.subr.mxu0 %v3147_v51  ;;  %v4420_v13 = vpop.f32.mrf.mxu1 }
 0x5d9   : > { %4568 = vmatpush3.msra.mxu0 %v3147_v51 }
 0x5da   : > { %4569 = vmatprep.subr.mxu0 %v3146_v52  ;;  %v2660_v18 = vpop.f32.mrf.mxu1 }
 0x5db   : > { %4570 = vmatpush3.msra.mxu0 %v3146_v52 }
 0x5dc   : > { %4571 = vmatprep.subr.mxu0 %v3145_v53 }
 0x5dd   : > { %4572 = vmatpush3.msra.mxu0 %v3145_v53 }
 0x5de   : > { %4573 = vmatprep.subr.mxu0 %v3144_v6 }
 0x5df   : > { %4574 = vmatpush3.msra.mxu0 %v3144_v6 }
 0x5e0   : > { %4575 = vmatprep.subr.mxu0 %v3143_v54 }
 0x5e1   : > { %4576 = vmatpush3.msra.mxu0 %v3143_v54 }
 0x5e2   : > { %4577 = vmatprep.subr.mxu0 %v3142_v55 }
 0x5e3   : > { %4578 = vmatpush3.msra.mxu0 %v3142_v55 }
 0x5e4   : > { %4579 = vmatprep.subr.mxu0 %v3141_v56 }
 0x5e5   : > { %4580 = vmatpush3.msra.mxu0 %v3141_v56 }
 0x5e6   : > { %4581 = vmatprep.subr.mxu0 %v3140_v57 }
 0x5e7   : > { %4582 = vmatpush3.msra.mxu0 %v3140_v57 }
 0x5e8   : > { %4583 = vmatprep.subr.mxu0 %v3139_v58 }
 0x5e9   : > { %4584 = vmatpush3.msra.mxu0 %v3139_v58 }
 0x5ea   : > { %4585 = vmatprep.subr.mxu0 %v3138_v59 }
 0x5eb   : > { %4586 = vmatpush3.msra.mxu0 %v3138_v59 }
 0x5ec   : > { %4587 = vmatprep.subr.mxu0 %v3137_v60 }
 0x5ed   : > { %4588 = vmatpush3.msra.mxu0 %v3137_v60 }
 0x5ee   : > { %4589 = vmatprep.subr.mxu0 %v3136_v62 }
 0x5ef   : > { %4590 = vmatpush3.msra.mxu0 %v3136_v62 }
 0x5f0   : > { %4591 = vmatprep.subr.mxu0 %v3135_v1 }
 0x5f1   : > { %4592 = vmatpush3.msra.mxu0 %v3135_v1 }
 0x5f2   : > { %4594 = vmatmul.mubr.f32.vlgmr.msra.gmra.mxu0 %v3160_v2 }
 0x631   : > { %v4315_v3 = vpop.f32.mrf.mxu0 }
 0x632   : > { %v2455_v9 = vadd.f32 %v4350_v5, %v4315_v3 }
 0x633   : > { %v2374_v4 = vpop.f32.mrf.mxu0 }
 0x634   : > { %v2450_v12 = vadd.f32 %v2449_v10, %v2374_v4 }
 0x63d   : > { %v4490_v26 = vpop.f32.mrf.mxu1 }
 0x63f   : > { %v2894_v28 = vpop.f32.mrf.mxu1 }
 0x651   : > { %v4385_v7 = vpop.f32.mrf.mxu0 }
 0x652   : > { %v2563_v33 = vadd.f32 %v4385_v7, %v2455_v9 }
 0x653   : > { %v2553_v11 = vpop.f32.mrf.mxu0 }
 0x654   : > { %v2562_v15 = vadd.f32 %v2553_v11, %v2450_v12  ;;  %v2670_v16 = vadd.f32 %v4420_v13, %v2563_v33 }
 0x656   : > { %v2669_v25 = vadd.f32 %v2660_v18, %v2562_v15 }
 0x65f   : > { %v4560_v32 = vpop.f32.mrf.mxu1 }
 0x661   : > { %v3123_v36 = vpop.f32.mrf.mxu1 }
 0x672   : > { %v4455_v14 = vpop.f32.mrf.mxu0 }
 0x673   : > { %v2798_v24 = vadd.f32 %v4455_v14, %v2670_v16 }
 0x674   : > { %v2788_v23 = vpop.f32.mrf.mxu0 }
 0x675   : > { %v2797_v27 = vadd.f32 %v2788_v23, %v2669_v25  ;;  %v2904_v8 = vadd.f32 %v4490_v26, %v2798_v24 }
 0x677   : > { %v2903_v31 = vadd.f32 %v2894_v28, %v2797_v27 }
 0x692   : > { %v4525_v43 = vpop.f32.mrf.mxu0 }
 0x693   : > { %v3009_v30 = vadd.f32 %v4525_v43, %v2904_v8 }
 0x694   : > { %v2999_v29 = vpop.f32.mrf.mxu0 }
 0x695   : > { %v3008_v34 = vadd.f32 %v2999_v29, %v2903_v31  ;;  %v3133_v35 = vadd.f32 %v4560_v32, %v3009_v30 }
 0x697   : > { %v3132_v39 = vadd.f32 %v3123_v36, %v3008_v34 }
 0x6b2   : > { %v4595_v37 = vpop.f32.mrf.mxu0 }
 0x6b3   : > { %v3239_v38 = vadd.f32 %v4595_v37, %v3133_v35 }
 0x6b4   : > { %v3229_v40 = vpop.f32.mrf.mxu0 }
 0x6b5   : > { %v3248_v41 = vadd.f32 %v3376_v20, %v3239_v38  ;;  %v3238_v42 = vadd.f32 %v3229_v40, %v3132_v39 }
 0x6b7   : > { %v3250_v44 = vmax.f32 %v3248_v41, 0.0  ;;  %v3247_v45 = vadd.f32 %v3376_v20, %v3238_v42 }
 0x6b9   : > { %v3252_v46 = vadd.f32 %v3250_v44, %v1207_v21  ;;  %v3249_v47 = vmax.f32 %v3247_v45, 0.0 }
 0x6bb   : > { %3254 = vst [vmem:[%s322_s18 + $0x8] sm:$0xff] %v3252_v46  ;;  %v3251_v48 = vadd.f32 %v3249_v47, %v1206_v0 }
 0x6bd   : > { %3253 = vst [vmem:[%s322_s18] sm:$0xff] %v3251_v48 }
 0x6be PF: > { %s19_s24 = sadd.s32 1, %s4855_s24  }
 0x6bf   : > { %p16_p2 = scmp.ge.s32.totalorder %s19_s24, 4  }
 0x6c1   :  { %18 = sbr.rel (!%p16_p2) target bundleno = 2 (0x2), region = 115 }
 0x6c6   :  { %3276 = vsyncpa [#allocation6], 1 }
 0x6c7   :  { %3278 = vsyncpa [#allocation6 + $0x1], 1 }
 0x6c8   :  { %3279 = vsyncpa [#allocation8], 1 }

</bundles_post_ra>
